<compile_context>
chip_gen: v6e
topology: v6e:2x2x1
jax: 0.10.0
libtpu: 0.0.40
codegen_flags: <defaults>
</compile_context>

<pallas_src>
import jax
import jax.numpy as jnp
from jax import lax
from jax.experimental import pallas as pl
from jax.experimental.pallas import tpu as pltpu


# ---------------------------------------------------------------------------
# small helpers
# ---------------------------------------------------------------------------

def _round_up(x, m):
    return (x + m - 1) // m * m


def _pad_rows(m):
    """Return (Mp, tm): padded row count and M-tile with tm | Mp, tm <= 512."""
    if m <= 512:
        mp = _round_up(m, 16)          # bf16 sublane friendly
        return mp, mp
    mp = _round_up(m, 512)
    return mp, 512


def _choose_tn(np_):
    for c in (512, 256, 128):
        if np_ % c == 0:
            return c
    return np_


# ---------------------------------------------------------------------------
# Pallas kernels
# ---------------------------------------------------------------------------

def _mm_stats_kernel(a_ref, b_ref, y_ref, s_ref, ss_ref):
    # One (parity, m-tile, n-tile) block: full-K MXU matmul, bf16 in / f32 acc.
    y = jnp.dot(a_ref[0], b_ref[0], preferred_element_type=jnp.float32)
    y_ref[0] = y.astype(y_ref.dtype)
    # Fused epilogue: per-column partial sums / sums-of-squares for BatchNorm.
    cs = jnp.sum(y, axis=0, keepdims=True)        # (1, tn)
    css = jnp.sum(y * y, axis=0, keepdims=True)   # (1, tn)
    s_ref[...] = jnp.broadcast_to(cs[None, None], s_ref.shape)
    ss_ref[...] = jnp.broadcast_to(css[None, None], ss_ref.shape)


def _mm_tanh_kernel(a_ref, b_ref, y_ref):
    y = jnp.dot(a_ref[0], b_ref[0], preferred_element_type=jnp.float32)
    y_ref[0] = jnp.tanh(y).astype(y_ref.dtype)    # fused Tanh epilogue (EUP)


def _bn_relu_kernel(y_ref, s_ref, b_ref, o_ref):
    # Lane-dense scale/shift + ReLU; f32 VPU math, bf16 store for next layer.
    y = y_ref[0].astype(jnp.float32)
    o_ref[0] = jnp.maximum(y * s_ref[...] + b_ref[...], 0.0).astype(o_ref.dtype)


# ---------------------------------------------------------------------------
# pallas_call wrappers
# ---------------------------------------------------------------------------

def fused_matmul(a, b, mode, tm):
    """Batched matmul over the leading 'parity' axis.

    a: (P, Mp, K) bf16, b: (P, K, Np) bf16, tm | Mp.
    mode == "stats": returns (y bf16 (P,Mp,Np), colsum f32, colsumsq f32)
    mode == "tanh" : returns tanh(a @ b) f32 (P, Mp, Np)
    """
    P, Mp, K = a.shape
    Np = b.shape[2]
    tn = _choose_tn(Np)
    nm, nn = Mp // tm, Np // tn

    a_spec = pl.BlockSpec((1, tm, K), lambda p, i, j: (p, i, 0))
    b_spec = pl.BlockSpec((1, K, tn), lambda p, i, j: (p, 0, j))
    y_spec = pl.BlockSpec((1, tm, tn), lambda p, i, j: (p, i, j))

    flops = 2 * P * Mp * Np * K
    if mode == "stats":
        kernel = _mm_stats_kernel
        out_shape = (jax.ShapeDtypeStruct((P, Mp, Np), jnp.bfloat16),
                     jax.ShapeDtypeStruct((P, nm, 8, Np), jnp.float32),
                     jax.ShapeDtypeStruct((P, nm, 8, Np), jnp.float32))
        s_spec = pl.BlockSpec((1, 1, 8, tn), lambda p, i, j: (p, i, 0, j))
        out_specs = (y_spec, s_spec, s_spec)
        transcendentals = 0
        out_bytes = 2 * P * Mp * Np
    else:
        kernel = _mm_tanh_kernel
        out_shape = jax.ShapeDtypeStruct((P, Mp, Np), jnp.float32)
        out_specs = y_spec
        transcendentals = P * Mp * Np
        out_bytes = 4 * P * Mp * Np

    return pl.pallas_call(
        kernel,
        out_shape=out_shape,
        grid=(P, nm, nn),
        in_specs=[a_spec, b_spec],
        out_specs=out_specs,
        compiler_params=pltpu.CompilerParams(
            dimension_semantics=("parallel", "parallel", "parallel")),
        cost_estimate=pl.CostEstimate(
            flops=flops, transcendentals=transcendentals,
            bytes_accessed=2 * a.size + 2 * b.size + out_bytes),
    )(a, b)


def bn_relu_apply(y, scale, shift, tm):
    """ReLU(y * scale + shift) per channel column.  y: (P, Mp, Np) bf16."""
    P, Mp, Np = y.shape
    return pl.pallas_call(
        _bn_relu_kernel,
        out_shape=jax.ShapeDtypeStruct((P, Mp, Np), jnp.bfloat16),
        grid=(P, Mp // tm),
        in_specs=[pl.BlockSpec((1, tm, Np), lambda p, i: (p, i, 0)),
                  pl.BlockSpec((1, Np), lambda p, i: (0, 0)),
                  pl.BlockSpec((1, Np), lambda p, i: (0, 0))],
        out_specs=pl.BlockSpec((1, tm, Np), lambda p, i: (p, i, 0)),
        compiler_params=pltpu.CompilerParams(
            dimension_semantics=("parallel", "parallel")),
    )(y, scale.astype(jnp.float32).reshape(1, Np),
      shift.astype(jnp.float32).reshape(1, Np))


# ---------------------------------------------------------------------------
# Sub-pixel ConvTranspose2d(4, 2, 1) lowering (host-side glue)
# ---------------------------------------------------------------------------

# out[2q+r] = sum_d x_pad[q + r + d] * w[KTAB[r][d]]  (per axis), pad=1
_KTAB = ((3, 1), (2, 0))


def _make_subpix_weight(w):
    """w: (Cin, Cout, 4, 4) PyTorch ConvTranspose2d layout -> (4, 4*Cin, Np) bf16."""
    cin, cout = w.shape[0], w.shape[1]
    npad = _round_up(cout, 128)
    mats = []
    for ry in (0, 1):
        for rx in (0, 1):
            slabs = [w[:, :, _KTAB[ry][dy], _KTAB[rx][dx]]
                     for dy in (0, 1) for dx in (0, 1)]          # each (Cin, Cout)
            m = jnp.concatenate(slabs, axis=0)                    # (4*Cin, Cout)
            mats.append(jnp.pad(m, ((0, 0), (0, npad - cout))))
    return jnp.stack(mats, axis=0).astype(jnp.bfloat16)           # (4, 4*Cin, Np)


def _make_first_weight(w):
    """Layer 1 (1x1 input, s=1, p=0): w (nz, Co1, 4, 4) -> (1, nz, 16*Co1) bf16."""
    nz, co1 = w.shape[0], w.shape[1]
    assert (16 * co1) % 128 == 0, "ngf*8 must be a multiple of 8"
    m = w.transpose(0, 2, 3, 1).reshape(nz, 16 * co1)   # columns = (i, j, co)
    return m[None].astype(jnp.bfloat16)


def _subpix_patches(act):
    """act: (N, H, W, C) bf16 -> (4, N*H*W, 4*C) patches (one row per parity)."""
    n, h, w, c = act.shape
    xp = jnp.pad(act, ((0, 0), (1, 1), (1, 1), (0, 0)))
    pats = []
    for ry in (0, 1):
        for rx in (0, 1):
            wins = [xp[:, ry + dy:ry + dy + h, rx + dx:rx + dx + w, :]
                    for dy in (0, 1) for dx in (0, 1)]
            pats.append(jnp.concatenate(wins, axis=-1).reshape(n * h * w, 4 * c))
    return jnp.stack(pats, axis=0)


def _pixel_shuffle(y, n, h, w, c):
    """y: (4, Mp, Np) -> NHWC (N, 2H, 2W, C) interleaving the 4 parity classes."""
    m = n * h * w
    y = y[:, :m, :c].reshape(2, 2, n, h, w, c)
    return y.transpose(2, 3, 0, 4, 1, 5).reshape(n, 2 * h, 2 * w, c)


# ---------------------------------------------------------------------------
# Parameters
# ---------------------------------------------------------------------------

def init_params(key, ngf, nc, nz):
    chans = [nz, ngf * 8, ngf * 4, ngf * 2, ngf, nc]
    ws, gs, bs = [], [], []
    for li in range(5):
        cin, cout = chans[li], chans[li + 1]
        k = jax.random.fold_in(key, li)
        # DCGAN init N(0, 0.02); PyTorch ConvTranspose2d weight (Cin,Cout,KH,KW)
        ws.append(0.02 * jax.random.normal(k, (cin, cout, 4, 4), jnp.float32))
        if li < 4:
            gs.append(jnp.ones((cout,), jnp.float32))   # BatchNorm2d affine
            bs.append(jnp.zeros((cout,), jnp.float32))
    return {"w": ws, "gamma": gs, "beta": bs}


def prepare_params(params):
    """One-time conversion to padded bf16 matmul-layout weights."""
    W = [_make_first_weight(params["w"][0])]
    for li in range(1, 5):
        W.append(_make_subpix_weight(params["w"][li]))
    gamma_p = [params["gamma"][0].astype(jnp.float32)]
    beta_p = [params["beta"][0].astype(jnp.float32)]
    for li in range(1, 4):
        cout = params["w"][li].shape[1]
        pad = _round_up(cout, 128) - cout
        gamma_p.append(jnp.pad(params["gamma"][li], (0, pad)))
        beta_p.append(jnp.pad(params["beta"][li], (0, pad)))
    chans = tuple(int(w.shape[1]) for w in params["w"])
    return {"W": W, "gamma_p": gamma_p, "beta_p": beta_p}, chans


# ---------------------------------------------------------------------------
# Generator forward (mirrors the PyTorch nn.Sequential, train-mode BN)
# ---------------------------------------------------------------------------

def _bn_scale_shift(s, ss, gamma, beta, count):
    cs = s[:, :, 0, :].sum(axis=(0, 1))
    css = ss[:, :, 0, :].sum(axis=(0, 1))
    mean = cs / count
    var = css / count - mean * mean        # biased batch variance (train mode)
    scale = gamma * lax.rsqrt(var + 1e-5)
    shift = beta - mean * scale
    return scale, shift


def generator_forward(z, prepared, chans):
    """z: (N, nz, 1, 1) NCHW f32.  Returns (N, nc, 64, 64) NCHW f32."""
    W = prepared["W"]
    gammas, betas = prepared["gamma_p"], prepared["beta_p"]
    N, nz = z.shape[0], z.shape[1]

    # ---- layer 1: ConvTranspose2d(nz, ngf*8, 4, 1, 0) on 1x1 input ----------
    Co1 = chans[0]
    a = z.reshape(N, nz).astype(jnp.bfloat16)
    Mp, tm = _pad_rows(N)
    if Mp > N:
        a = jnp.pad(a, ((0, Mp - N), (0, 0)))
    y, s, ss = fused_matmul(a[None], W[0], "stats", tm)      # (1, Mp, 16*Co1)
    # per-channel stats: reduce the 16 spatial columns per channel
    cs = s[:, :, 0, :].sum(axis=(0, 1)).reshape(16, Co1).sum(axis=0)
    css = ss[:, :, 0, :].sum(axis=(0, 1)).reshape(16, Co1).sum(axis=0)
    cnt = float(N * 16)
    mean = cs / cnt
    var = css / cnt - mean * mean
    scale = gammas[0] * lax.rsqrt(var + 1e-5)
    shift = betas[0] - mean * scale
    act = bn_relu_apply(y, jnp.tile(scale, 16), jnp.tile(shift, 16), tm)
    act = act[0, :N].reshape(N, 4, 4, Co1)                    # NHWC bf16

    # ---- layers 2..4: ConvTranspose2d(4,2,1) + BN + ReLU (sub-pixel) --------
    H = Wd = 4
    for li in range(1, 4):
        Cout = chans[li]
        M = N * H * Wd
        A = _subpix_patches(act)                              # (4, M, 4*Cin)
        Mp, tm = _pad_rows(M)
        if Mp > M:
            A = jnp.pad(A, ((0, 0), (0, Mp - M), (0, 0)))
        y, s, ss = fused_matmul(A, W[li], "stats", tm)        # (4, Mp, 128)
        scale, shift = _bn_scale_shift(s, ss, gammas[li], betas[li],
                                       float(4 * M))
        yb = bn_relu_apply(y, scale, shift, tm)
        act = _pixel_shuffle(yb, N, H, Wd, Cout)              # (N, 2H, 2W, Cout)
        H, Wd = 2 * H, 2 * Wd

    # ---- layer 5: ConvTranspose2d(ngf, nc, 4, 2, 1) + fused Tanh ------------
    Cout = chans[4]
    M = N * H * Wd
    A = _subpix_patches(act)
    Mp, tm = _pad_rows(M)
    if Mp > M:
        A = jnp.pad(A, ((0, 0), (0, Mp - M), (0, 0)))
    y = fused_matmul(A, W[4], "tanh", tm)                     # (4, Mp, 128) f32
    out = _pixel_shuffle(y, N, H, Wd, Cout)                   # (N, 64, 64, nc)
    # TODO(synk): pixel-shuffle / patch gather / final NHWC->NCHW are XLA glue,
    # not Pallas kernels.
    return out.transpose(0, 3, 1, 2)


if __name__ == "__main__":
    ngf, nc, nz, batch = 8, 3, 16, 2
    key = jax.random.PRNGKey(0)
    params = init_params(jax.random.fold_in(key, 1), ngf, nc, nz)
    prepared, chans = prepare_params(params)
    z = jax.random.normal(jax.random.fold_in(key, 2), (batch, nz, 1, 1),
                          jnp.float32)

    fwd = jax.jit(lambda zz, pp: generator_forward(zz, pp, chans))
    out = jax.block_until_ready(fwd(z, prepared))

    assert out.shape == (batch, nc, 64, 64), out.shape
    assert bool(jnp.all(jnp.isfinite(out)))
    print("KERNEL_OK")
</pallas_src>

<mosaic_0001>
module attributes {stable_mosaic.version = 11 : i64} {
  func.func @_mm_stats_kernel(%arg0: i32, %arg1: i32, %arg2: i32, %arg3: memref<1x16x16xbf16, #tpu.memory_space<vmem>>, %arg4: memref<1x16x512xbf16, #tpu.memory_space<vmem>>, %arg5: memref<1x16x512xbf16, #tpu.memory_space<vmem>>, %arg6: memref<1x1x8x512xf32, #tpu.memory_space<vmem>>, %arg7: memref<1x1x8x512xf32, #tpu.memory_space<vmem>>) attributes {dimension_semantics = [#tpu.dimension_semantics<parallel>, #tpu.dimension_semantics<parallel>, #tpu.dimension_semantics<parallel>], iteration_bounds = array<i64: 1, 1, 2>, scalar_prefetch = 0 : i64, scratch_operands = 0 : i64, tpu.core_type = #tpu.core_type<tc>, window_params = [{transform_indices = @transform_0, window_bounds = array<i64: 1, 16, 16>}, {transform_indices = @transform_1, window_bounds = array<i64: 1, 16, 512>}, {transform_indices = @transform_2, window_bounds = array<i64: 1, 16, 512>}, {transform_indices = @transform_3, window_bounds = array<i64: 1, 1, 8, 512>}, {transform_indices = @transform_4, window_bounds = array<i64: 1, 1, 8, 512>}]} {
    %c0 = arith.constant 0 : index
    %c0_0 = arith.constant 0 : index
    %c0_1 = arith.constant 0 : index
    %0 = vector.load %arg3[%c0, %c0_0, %c0_1] : memref<1x16x16xbf16, #tpu.memory_space<vmem>>, vector<1x16x16xbf16>
    %1 = vector.shape_cast %0 : vector<1x16x16xbf16> to vector<16x16xbf16>
    %c0_2 = arith.constant 0 : index
    %c0_3 = arith.constant 0 : index
    %c0_4 = arith.constant 0 : index
    %2 = vector.load %arg4[%c0_2, %c0_3, %c0_4] : memref<1x16x512xbf16, #tpu.memory_space<vmem>>, vector<1x16x512xbf16>
    %3 = vector.shape_cast %2 : vector<1x16x512xbf16> to vector<16x512xbf16>
    %cst = arith.constant dense<0.000000e+00> : vector<16x512xf32>
    %4 = tpu.matmul %1, %3, %cst {dimension_numbers = #tpu.dot_dimension_numbers<[1], [0], [0], [1], [0, 0, 1, 1], [], []>} : vector<16x16xbf16>, vector<16x512xbf16>, vector<16x512xf32> -> vector<16x512xf32>
    %5 = arith.truncf %4 : vector<16x512xf32> to vector<16x512xbf16>
    %c0_5 = arith.constant 0 : index
    %c0_6 = arith.constant 0 : index
    %c0_7 = arith.constant 0 : index
    %6 = vector.load %arg5[%c0_5, %c0_6, %c0_7] : memref<1x16x512xbf16, #tpu.memory_space<vmem>>, vector<1x16x512xbf16>
    %7 = vector.shape_cast %6 : vector<1x16x512xbf16> to vector<16x512xbf16>
    %8 = vector.shape_cast %5 : vector<16x512xbf16> to vector<1x16x512xbf16>
    tpu.vector_store %arg5[%c0_5, %c0_6, %c0_7], %8 {strides = array<i32>} : memref<1x16x512xbf16, #tpu.memory_space<vmem>>, vector<1x16x512xbf16>,
    %cst_8 = arith.constant dense<0.000000e+00> : vector<512xf32>
    %9 = vector.multi_reduction <add>, %4, %cst_8 [0] : vector<16x512xf32> to vector<512xf32>
    %10 = vector.shape_cast %9 : vector<512xf32> to vector<1x512xf32>
    %11 = arith.mulf %4, %4 : vector<16x512xf32>
    %cst_9 = arith.constant dense<0.000000e+00> : vector<512xf32>
    %12 = vector.multi_reduction <add>, %11, %cst_9 [0] : vector<16x512xf32> to vector<512xf32>
    %13 = vector.shape_cast %12 : vector<512xf32> to vector<1x512xf32>
    %14 = vector.shape_cast %10 : vector<1x512xf32> to vector<1x1x1x512xf32>
    %15 = vector.shape_cast %14 : vector<1x1x1x512xf32> to vector<1x1x1x512xf32>
    %16 = vector.broadcast %15 : vector<1x1x1x512xf32> to vector<1x1x8x512xf32>
    %c0_10 = arith.constant 0 : index
    %c0_11 = arith.constant 0 : index
    %c0_12 = arith.constant 0 : index
    %c0_13 = arith.constant 0 : index
    %17 = vector.load %arg6[%c0_10, %c0_11, %c0_12, %c0_13] : memref<1x1x8x512xf32, #tpu.memory_space<vmem>>, vector<1x1x8x512xf32>
    tpu.vector_store %arg6[%c0_10, %c0_11, %c0_12, %c0_13], %16 {strides = array<i32>} : memref<1x1x8x512xf32, #tpu.memory_space<vmem>>, vector<1x1x8x512xf32>,
    %18 = vector.shape_cast %13 : vector<1x512xf32> to vector<1x1x1x512xf32>
    %19 = vector.shape_cast %18 : vector<1x1x1x512xf32> to vector<1x1x1x512xf32>
    %20 = vector.broadcast %19 : vector<1x1x1x512xf32> to vector<1x1x8x512xf32>
    %c0_14 = arith.constant 0 : index
    %c0_15 = arith.constant 0 : index
    %c0_16 = arith.constant 0 : index
    %c0_17 = arith.constant 0 : index
    %21 = vector.load %arg7[%c0_14, %c0_15, %c0_16, %c0_17] : memref<1x1x8x512xf32, #tpu.memory_space<vmem>>, vector<1x1x8x512xf32>
    tpu.vector_store %arg7[%c0_14, %c0_15, %c0_16, %c0_17], %20 {strides = array<i32>} : memref<1x1x8x512xf32, #tpu.memory_space<vmem>>, vector<1x1x8x512xf32>,
    return
  }
  func.func @transform_0(%arg0: i32, %arg1: i32, %arg2: i32) -> (i32, i32, i32) {
    %c0_i32 = arith.constant 0 : i32
    %c0_i32_0 = arith.constant 0 : i32
    return %arg0, %arg1, %c0_i32 : i32, i32, i32
  }
  func.func @transform_1(%arg0: i32, %arg1: i32, %arg2: i32) -> (i32, i32, i32) {
    %c0_i32 = arith.constant 0 : i32
    %c0_i32_0 = arith.constant 0 : i32
    return %arg0, %c0_i32, %arg2 : i32, i32, i32
  }
  func.func @transform_2(%arg0: i32, %arg1: i32, %arg2: i32) -> (i32, i32, i32) {
    %c0_i32 = arith.constant 0 : i32
    return %arg0, %arg1, %arg2 : i32, i32, i32
  }
  func.func @transform_3(%arg0: i32, %arg1: i32, %arg2: i32) -> (i32, i32, i32, i32) {
    %c0_i32 = arith.constant 0 : i32
    %c0_i32_0 = arith.constant 0 : i32
    return %arg0, %arg1, %c0_i32, %arg2 : i32, i32, i32, i32
  }
  func.func @transform_4(%arg0: i32, %arg1: i32, %arg2: i32) -> (i32, i32, i32, i32) {
    %c0_i32 = arith.constant 0 : i32
    %c0_i32_0 = arith.constant 0 : i32
    return %arg0, %arg1, %c0_i32, %arg2 : i32, i32, i32, i32
  }
}

module attributes {stable_mosaic.version = 11 : i64} {
  func.func @_bn_relu_kernel(%arg0: i32, %arg1: i32, %arg2: memref<1x16x1024xbf16, #tpu.memory_space<vmem>>, %arg3: memref<1x1024xf32, #tpu.memory_space<vmem>>, %arg4: memref<1x1024xf32, #tpu.memory_space<vmem>>, %arg5: memref<1x16x1024xbf16, #tpu.memory_space<vmem>>) attributes {dimension_semantics = [#tpu.dimension_semantics<parallel>, #tpu.dimension_semantics<parallel>], iteration_bounds = array<i64: 1, 1>, scalar_prefetch = 0 : i64, scratch_operands = 0 : i64, tpu.core_type = #tpu.core_type<tc>, window_params = [{transform_indices = @transform_0, window_bounds = array<i64: 1, 16, 1024>}, {pipeline_mode = #tpu.pipeline_mode<synchronous>, transform_indices = @transform_1, window_bounds = array<i64: 1, 1024>}, {pipeline_mode = #tpu.pipeline_mode<synchronous>, transform_indices = @transform_2, window_bounds = array<i64: 1, 1024>}, {transform_indices = @transform_3, window_bounds = array<i64: 1, 16, 1024>}]} {
    %c0 = arith.constant 0 : index
    %c0_0 = arith.constant 0 : index
    %c0_1 = arith.constant 0 : index
    %0 = vector.load %arg2[%c0, %c0_0, %c0_1] : memref<1x16x1024xbf16, #tpu.memory_space<vmem>>, vector<1x16x1024xbf16>
    %1 = vector.shape_cast %0 : vector<1x16x1024xbf16> to vector<16x1024xbf16>
    %2 = arith.extf %1 : vector<16x1024xbf16> to vector<16x1024xf32>
    %c0_2 = arith.constant 0 : index
    %c0_3 = arith.constant 0 : index
    %3 = vector.load %arg3[%c0_2, %c0_3] : memref<1x1024xf32, #tpu.memory_space<vmem>>, vector<1x1024xf32>
    %4 = vector.broadcast %3 : vector<1x1024xf32> to vector<16x1024xf32>
    %5 = arith.mulf %2, %4 : vector<16x1024xf32>
    %c0_4 = arith.constant 0 : index
    %c0_5 = arith.constant 0 : index
    %6 = vector.load %arg4[%c0_4, %c0_5] : memref<1x1024xf32, #tpu.memory_space<vmem>>, vector<1x1024xf32>
    %7 = vector.broadcast %6 : vector<1x1024xf32> to vector<16x1024xf32>
    %8 = arith.addf %5, %7 : vector<16x1024xf32>
    %cst = arith.constant 0.000000e+00 : f32
    %9 = vector.broadcast %cst : f32 to vector<16x1024xf32>
    %10 = arith.maximumf %8, %9 : vector<16x1024xf32>
    %11 = arith.truncf %10 : vector<16x1024xf32> to vector<16x1024xbf16>
    %c0_6 = arith.constant 0 : index
    %c0_7 = arith.constant 0 : index
    %c0_8 = arith.constant 0 : index
    %12 = vector.load %arg5[%c0_6, %c0_7, %c0_8] : memref<1x16x1024xbf16, #tpu.memory_space<vmem>>, vector<1x16x1024xbf16>
    %13 = vector.shape_cast %12 : vector<1x16x1024xbf16> to vector<16x1024xbf16>
    %14 = vector.shape_cast %11 : vector<16x1024xbf16> to vector<1x16x1024xbf16>
    tpu.vector_store %arg5[%c0_6, %c0_7, %c0_8], %14 {strides = array<i32>} : memref<1x16x1024xbf16, #tpu.memory_space<vmem>>, vector<1x16x1024xbf16>,
    return
  }
  func.func @transform_0(%arg0: i32, %arg1: i32) -> (i32, i32, i32) {
    %c0_i32 = arith.constant 0 : i32
    %c0_i32_0 = arith.constant 0 : i32
    return %arg0, %arg1, %c0_i32 : i32, i32, i32
  }
  func.func @transform_1(%arg0: i32, %arg1: i32) -> (i32, i32) {
    %c0_i32 = arith.constant 0 : i32
    %c0_i32_0 = arith.constant 0 : i32
    %c0_i32_1 = arith.constant 0 : i32
    return %c0_i32, %c0_i32_0 : i32, i32
  }
  func.func @transform_2(%arg0: i32, %arg1: i32) -> (i32, i32) {
    %c0_i32 = arith.constant 0 : i32
    %c0_i32_0 = arith.constant 0 : i32
    %c0_i32_1 = arith.constant 0 : i32
    return %c0_i32, %c0_i32_0 : i32, i32
  }
  func.func @transform_3(%arg0: i32, %arg1: i32) -> (i32, i32, i32) {
    %c0_i32 = arith.constant 0 : i32
    %c0_i32_0 = arith.constant 0 : i32
    return %arg0, %arg1, %c0_i32 : i32, i32, i32
  }
}

module attributes {stable_mosaic.version = 11 : i64} {
  func.func @_mm_stats_kernel(%arg0: i32, %arg1: i32, %arg2: i32, %arg3: memref<1x32x256xbf16, #tpu.memory_space<vmem>>, %arg4: memref<1x256x128xbf16, #tpu.memory_space<vmem>>, %arg5: memref<1x32x128xbf16, #tpu.memory_space<vmem>>, %arg6: memref<1x1x8x128xf32, #tpu.memory_space<vmem>>, %arg7: memref<1x1x8x128xf32, #tpu.memory_space<vmem>>) attributes {dimension_semantics = [#tpu.dimension_semantics<parallel>, #tpu.dimension_semantics<parallel>, #tpu.dimension_semantics<parallel>], iteration_bounds = array<i64: 4, 1, 1>, scalar_prefetch = 0 : i64, scratch_operands = 0 : i64, tpu.core_type = #tpu.core_type<tc>, window_params = [{transform_indices = @transform_0, window_bounds = array<i64: 1, 32, 256>}, {transform_indices = @transform_1, window_bounds = array<i64: 1, 256, 128>}, {transform_indices = @transform_2, window_bounds = array<i64: 1, 32, 128>}, {transform_indices = @transform_3, window_bounds = array<i64: 1, 1, 8, 128>}, {transform_indices = @transform_4, window_bounds = array<i64: 1, 1, 8, 128>}]} {
    %c0 = arith.constant 0 : index
    %c0_0 = arith.constant 0 : index
    %c0_1 = arith.constant 0 : index
    %0 = vector.load %arg3[%c0, %c0_0, %c0_1] : memref<1x32x256xbf16, #tpu.memory_space<vmem>>, vector<1x32x256xbf16>
    %1 = vector.shape_cast %0 : vector<1x32x256xbf16> to vector<32x256xbf16>
    %c0_2 = arith.constant 0 : index
    %c0_3 = arith.constant 0 : index
    %c0_4 = arith.constant 0 : index
    %2 = vector.load %arg4[%c0_2, %c0_3, %c0_4] : memref<1x256x128xbf16, #tpu.memory_space<vmem>>, vector<1x256x128xbf16>
    %3 = vector.shape_cast %2 : vector<1x256x128xbf16> to vector<256x128xbf16>
    %cst = arith.constant dense<0.000000e+00> : vector<32x128xf32>
    %4 = tpu.matmul %1, %3, %cst {dimension_numbers = #tpu.dot_dimension_numbers<[1], [0], [0], [1], [0, 0, 1, 1], [], []>} : vector<32x256xbf16>, vector<256x128xbf16>, vector<32x128xf32> -> vector<32x128xf32>
    %5 = arith.truncf %4 : vector<32x128xf32> to vector<32x128xbf16>
    %c0_5 = arith.constant 0 : index
    %c0_6 = arith.constant 0 : index
    %c0_7 = arith.constant 0 : index
    %6 = vector.load %arg5[%c0_5, %c0_6, %c0_7] : memref<1x32x128xbf16, #tpu.memory_space<vmem>>, vector<1x32x128xbf16>
    %7 = vector.shape_cast %6 : vector<1x32x128xbf16> to vector<32x128xbf16>
    %8 = vector.shape_cast %5 : vector<32x128xbf16> to vector<1x32x128xbf16>
    tpu.vector_store %arg5[%c0_5, %c0_6, %c0_7], %8 {strides = array<i32>} : memref<1x32x128xbf16, #tpu.memory_space<vmem>>, vector<1x32x128xbf16>,
    %cst_8 = arith.constant dense<0.000000e+00> : vector<128xf32>
    %9 = vector.multi_reduction <add>, %4, %cst_8 [0] : vector<32x128xf32> to vector<128xf32>
    %10 = vector.shape_cast %9 : vector<128xf32> to vector<1x128xf32>
    %11 = arith.mulf %4, %4 : vector<32x128xf32>
    %cst_9 = arith.constant dense<0.000000e+00> : vector<128xf32>
    %12 = vector.multi_reduction <add>, %11, %cst_9 [0] : vector<32x128xf32> to vector<128xf32>
    %13 = vector.shape_cast %12 : vector<128xf32> to vector<1x128xf32>
    %14 = vector.shape_cast %10 : vector<1x128xf32> to vector<1x1x1x128xf32>
    %15 = vector.shape_cast %14 : vector<1x1x1x128xf32> to vector<1x1x1x128xf32>
    %16 = vector.broadcast %15 : vector<1x1x1x128xf32> to vector<1x1x8x128xf32>
    %c0_10 = arith.constant 0 : index
    %c0_11 = arith.constant 0 : index
    %c0_12 = arith.constant 0 : index
    %c0_13 = arith.constant 0 : index
    %17 = vector.load %arg6[%c0_10, %c0_11, %c0_12, %c0_13] : memref<1x1x8x128xf32, #tpu.memory_space<vmem>>, vector<1x1x8x128xf32>
    tpu.vector_store %arg6[%c0_10, %c0_11, %c0_12, %c0_13], %16 {strides = array<i32>} : memref<1x1x8x128xf32, #tpu.memory_space<vmem>>, vector<1x1x8x128xf32>,
    %18 = vector.shape_cast %13 : vector<1x128xf32> to vector<1x1x1x128xf32>
    %19 = vector.shape_cast %18 : vector<1x1x1x128xf32> to vector<1x1x1x128xf32>
    %20 = vector.broadcast %19 : vector<1x1x1x128xf32> to vector<1x1x8x128xf32>
    %c0_14 = arith.constant 0 : index
    %c0_15 = arith.constant 0 : index
    %c0_16 = arith.constant 0 : index
    %c0_17 = arith.constant 0 : index
    %21 = vector.load %arg7[%c0_14, %c0_15, %c0_16, %c0_17] : memref<1x1x8x128xf32, #tpu.memory_space<vmem>>, vector<1x1x8x128xf32>
    tpu.vector_store %arg7[%c0_14, %c0_15, %c0_16, %c0_17], %20 {strides = array<i32>} : memref<1x1x8x128xf32, #tpu.memory_space<vmem>>, vector<1x1x8x128xf32>,
    return
  }
  func.func @transform_0(%arg0: i32, %arg1: i32, %arg2: i32) -> (i32, i32, i32) {
    %c0_i32 = arith.constant 0 : i32
    %c0_i32_0 = arith.constant 0 : i32
    return %arg0, %arg1, %c0_i32 : i32, i32, i32
  }
  func.func @transform_1(%arg0: i32, %arg1: i32, %arg2: i32) -> (i32, i32, i32) {
    %c0_i32 = arith.constant 0 : i32
    %c0_i32_0 = arith.constant 0 : i32
    return %arg0, %c0_i32, %arg2 : i32, i32, i32
  }
  func.func @transform_2(%arg0: i32, %arg1: i32, %arg2: i32) -> (i32, i32, i32) {
    %c0_i32 = arith.constant 0 : i32
    return %arg0, %arg1, %arg2 : i32, i32, i32
  }
  func.func @transform_3(%arg0: i32, %arg1: i32, %arg2: i32) -> (i32, i32, i32, i32) {
    %c0_i32 = arith.constant 0 : i32
    %c0_i32_0 = arith.constant 0 : i32
    return %arg0, %arg1, %c0_i32, %arg2 : i32, i32, i32, i32
  }
  func.func @transform_4(%arg0: i32, %arg1: i32, %arg2: i32) -> (i32, i32, i32, i32) {
    %c0_i32 = arith.constant 0 : i32
    %c0_i32_0 = arith.constant 0 : i32
    return %arg0, %arg1, %c0_i32, %arg2 : i32, i32, i32, i32
  }
}

module attributes {stable_mosaic.version = 11 : i64} {
  func.func @_bn_relu_kernel(%arg0: i32, %arg1: i32, %arg2: memref<1x32x128xbf16, #tpu.memory_space<vmem>>, %arg3: memref<1x128xf32, #tpu.memory_space<vmem>>, %arg4: memref<1x128xf32, #tpu.memory_space<vmem>>, %arg5: memref<1x32x128xbf16, #tpu.memory_space<vmem>>) attributes {dimension_semantics = [#tpu.dimension_semantics<parallel>, #tpu.dimension_semantics<parallel>], iteration_bounds = array<i64: 4, 1>, scalar_prefetch = 0 : i64, scratch_operands = 0 : i64, tpu.core_type = #tpu.core_type<tc>, window_params = [{transform_indices = @transform_0, window_bounds = array<i64: 1, 32, 128>}, {pipeline_mode = #tpu.pipeline_mode<synchronous>, transform_indices = @transform_1, window_bounds = array<i64: 1, 128>}, {pipeline_mode = #tpu.pipeline_mode<synchronous>, transform_indices = @transform_2, window_bounds = array<i64: 1, 128>}, {transform_indices = @transform_3, window_bounds = array<i64: 1, 32, 128>}]} {
    %c0 = arith.constant 0 : index
    %c0_0 = arith.constant 0 : index
    %c0_1 = arith.constant 0 : index
    %0 = vector.load %arg2[%c0, %c0_0, %c0_1] : memref<1x32x128xbf16, #tpu.memory_space<vmem>>, vector<1x32x128xbf16>
    %1 = vector.shape_cast %0 : vector<1x32x128xbf16> to vector<32x128xbf16>
    %2 = arith.extf %1 : vector<32x128xbf16> to vector<32x128xf32>
    %c0_2 = arith.constant 0 : index
    %c0_3 = arith.constant 0 : index
    %3 = vector.load %arg3[%c0_2, %c0_3] : memref<1x128xf32, #tpu.memory_space<vmem>>, vector<1x128xf32>
    %4 = vector.broadcast %3 : vector<1x128xf32> to vector<32x128xf32>
    %5 = arith.mulf %2, %4 : vector<32x128xf32>
    %c0_4 = arith.constant 0 : index
    %c0_5 = arith.constant 0 : index
    %6 = vector.load %arg4[%c0_4, %c0_5] : memref<1x128xf32, #tpu.memory_space<vmem>>, vector<1x128xf32>
    %7 = vector.broadcast %6 : vector<1x128xf32> to vector<32x128xf32>
    %8 = arith.addf %5, %7 : vector<32x128xf32>
    %cst = arith.constant 0.000000e+00 : f32
    %9 = vector.broadcast %cst : f32 to vector<32x128xf32>
    %10 = arith.maximumf %8, %9 : vector<32x128xf32>
    %11 = arith.truncf %10 : vector<32x128xf32> to vector<32x128xbf16>
    %c0_6 = arith.constant 0 : index
    %c0_7 = arith.constant 0 : index
    %c0_8 = arith.constant 0 : index
    %12 = vector.load %arg5[%c0_6, %c0_7, %c0_8] : memref<1x32x128xbf16, #tpu.memory_space<vmem>>, vector<1x32x128xbf16>
    %13 = vector.shape_cast %12 : vector<1x32x128xbf16> to vector<32x128xbf16>
    %14 = vector.shape_cast %11 : vector<32x128xbf16> to vector<1x32x128xbf16>
    tpu.vector_store %arg5[%c0_6, %c0_7, %c0_8], %14 {strides = array<i32>} : memref<1x32x128xbf16, #tpu.memory_space<vmem>>, vector<1x32x128xbf16>,
    return
  }
  func.func @transform_0(%arg0: i32, %arg1: i32) -> (i32, i32, i32) {
    %c0_i32 = arith.constant 0 : i32
    %c0_i32_0 = arith.constant 0 : i32
    return %arg0, %arg1, %c0_i32 : i32, i32, i32
  }
  func.func @transform_1(%arg0: i32, %arg1: i32) -> (i32, i32) {
    %c0_i32 = arith.constant 0 : i32
    %c0_i32_0 = arith.constant 0 : i32
    %c0_i32_1 = arith.constant 0 : i32
    return %c0_i32, %c0_i32_0 : i32, i32
  }
  func.func @transform_2(%arg0: i32, %arg1: i32) -> (i32, i32) {
    %c0_i32 = arith.constant 0 : i32
    %c0_i32_0 = arith.constant 0 : i32
    %c0_i32_1 = arith.constant 0 : i32
    return %c0_i32, %c0_i32_0 : i32, i32
  }
  func.func @transform_3(%arg0: i32, %arg1: i32) -> (i32, i32, i32) {
    %c0_i32 = arith.constant 0 : i32
    %c0_i32_0 = arith.constant 0 : i32
    return %arg0, %arg1, %c0_i32 : i32, i32, i32
  }
}

module attributes {stable_mosaic.version = 11 : i64} {
  func.func @_bn_relu_kernel(%arg0: i32, %arg1: i32, %arg2: memref<1x128x128xbf16, #tpu.memory_space<vmem>>, %arg3: memref<1x128xf32, #tpu.memory_space<vmem>>, %arg4: memref<1x128xf32, #tpu.memory_space<vmem>>, %arg5: memref<1x128x128xbf16, #tpu.memory_space<vmem>>) attributes {dimension_semantics = [#tpu.dimension_semantics<parallel>, #tpu.dimension_semantics<parallel>], iteration_bounds = array<i64: 4, 1>, scalar_prefetch = 0 : i64, scratch_operands = 0 : i64, tpu.core_type = #tpu.core_type<tc>, window_params = [{transform_indices = @transform_0, window_bounds = array<i64: 1, 128, 128>}, {pipeline_mode = #tpu.pipeline_mode<synchronous>, transform_indices = @transform_1, window_bounds = array<i64: 1, 128>}, {pipeline_mode = #tpu.pipeline_mode<synchronous>, transform_indices = @transform_2, window_bounds = array<i64: 1, 128>}, {transform_indices = @transform_3, window_bounds = array<i64: 1, 128, 128>}]} {
    %c0 = arith.constant 0 : index
    %c0_0 = arith.constant 0 : index
    %c0_1 = arith.constant 0 : index
    %0 = vector.load %arg2[%c0, %c0_0, %c0_1] : memref<1x128x128xbf16, #tpu.memory_space<vmem>>, vector<1x128x128xbf16>
    %1 = vector.shape_cast %0 : vector<1x128x128xbf16> to vector<128x128xbf16>
    %2 = arith.extf %1 : vector<128x128xbf16> to vector<128x128xf32>
    %c0_2 = arith.constant 0 : index
    %c0_3 = arith.constant 0 : index
    %3 = vector.load %arg3[%c0_2, %c0_3] : memref<1x128xf32, #tpu.memory_space<vmem>>, vector<1x128xf32>
    %4 = vector.broadcast %3 : vector<1x128xf32> to vector<128x128xf32>
    %5 = arith.mulf %2, %4 : vector<128x128xf32>
    %c0_4 = arith.constant 0 : index
    %c0_5 = arith.constant 0 : index
    %6 = vector.load %arg4[%c0_4, %c0_5] : memref<1x128xf32, #tpu.memory_space<vmem>>, vector<1x128xf32>
    %7 = vector.broadcast %6 : vector<1x128xf32> to vector<128x128xf32>
    %8 = arith.addf %5, %7 : vector<128x128xf32>
    %cst = arith.constant 0.000000e+00 : f32
    %9 = vector.broadcast %cst : f32 to vector<128x128xf32>
    %10 = arith.maximumf %8, %9 : vector<128x128xf32>
    %11 = arith.truncf %10 : vector<128x128xf32> to vector<128x128xbf16>
    %c0_6 = arith.constant 0 : index
    %c0_7 = arith.constant 0 : index
    %c0_8 = arith.constant 0 : index
    %12 = vector.load %arg5[%c0_6, %c0_7, %c0_8] : memref<1x128x128xbf16, #tpu.memory_space<vmem>>, vector<1x128x128xbf16>
    %13 = vector.shape_cast %12 : vector<1x128x128xbf16> to vector<128x128xbf16>
    %14 = vector.shape_cast %11 : vector<128x128xbf16> to vector<1x128x128xbf16>
    tpu.vector_store %arg5[%c0_6, %c0_7, %c0_8], %14 {strides = array<i32>} : memref<1x128x128xbf16, #tpu.memory_space<vmem>>, vector<1x128x128xbf16>,
    return
  }
  func.func @transform_0(%arg0: i32, %arg1: i32) -> (i32, i32, i32) {
    %c0_i32 = arith.constant 0 : i32
    %c0_i32_0 = arith.constant 0 : i32
    return %arg0, %arg1, %c0_i32 : i32, i32, i32
  }
  func.func @transform_1(%arg0: i32, %arg1: i32) -> (i32, i32) {
    %c0_i32 = arith.constant 0 : i32
    %c0_i32_0 = arith.constant 0 : i32
    %c0_i32_1 = arith.constant 0 : i32
    return %c0_i32, %c0_i32_0 : i32, i32
  }
  func.func @transform_2(%arg0: i32, %arg1: i32) -> (i32, i32) {
    %c0_i32 = arith.constant 0 : i32
    %c0_i32_0 = arith.constant 0 : i32
    %c0_i32_1 = arith.constant 0 : i32
    return %c0_i32, %c0_i32_0 : i32, i32
  }
  func.func @transform_3(%arg0: i32, %arg1: i32) -> (i32, i32, i32) {
    %c0_i32 = arith.constant 0 : i32
    %c0_i32_0 = arith.constant 0 : i32
    return %arg0, %arg1, %c0_i32 : i32, i32, i32
  }
}

module attributes {stable_mosaic.version = 11 : i64} {
  func.func @_mm_stats_kernel(%arg0: i32, %arg1: i32, %arg2: i32, %arg3: memref<1x128x128xbf16, #tpu.memory_space<vmem>>, %arg4: memref<1x128x128xbf16, #tpu.memory_space<vmem>>, %arg5: memref<1x128x128xbf16, #tpu.memory_space<vmem>>, %arg6: memref<1x1x8x128xf32, #tpu.memory_space<vmem>>, %arg7: memref<1x1x8x128xf32, #tpu.memory_space<vmem>>) attributes {dimension_semantics = [#tpu.dimension_semantics<parallel>, #tpu.dimension_semantics<parallel>, #tpu.dimension_semantics<parallel>], iteration_bounds = array<i64: 4, 1, 1>, scalar_prefetch = 0 : i64, scratch_operands = 0 : i64, tpu.core_type = #tpu.core_type<tc>, window_params = [{transform_indices = @transform_0, window_bounds = array<i64: 1, 128, 128>}, {transform_indices = @transform_1, window_bounds = array<i64: 1, 128, 128>}, {transform_indices = @transform_2, window_bounds = array<i64: 1, 128, 128>}, {transform_indices = @transform_3, window_bounds = array<i64: 1, 1, 8, 128>}, {transform_indices = @transform_4, window_bounds = array<i64: 1, 1, 8, 128>}]} {
    %c0 = arith.constant 0 : index
    %c0_0 = arith.constant 0 : index
    %c0_1 = arith.constant 0 : index
    %0 = vector.load %arg3[%c0, %c0_0, %c0_1] : memref<1x128x128xbf16, #tpu.memory_space<vmem>>, vector<1x128x128xbf16>
    %1 = vector.shape_cast %0 : vector<1x128x128xbf16> to vector<128x128xbf16>
    %c0_2 = arith.constant 0 : index
    %c0_3 = arith.constant 0 : index
    %c0_4 = arith.constant 0 : index
    %2 = vector.load %arg4[%c0_2, %c0_3, %c0_4] : memref<1x128x128xbf16, #tpu.memory_space<vmem>>, vector<1x128x128xbf16>
    %3 = vector.shape_cast %2 : vector<1x128x128xbf16> to vector<128x128xbf16>
    %cst = arith.constant dense<0.000000e+00> : vector<128x128xf32>
    %4 = tpu.matmul %1, %3, %cst {dimension_numbers = #tpu.dot_dimension_numbers<[1], [0], [0], [1], [0, 0, 1, 1], [], []>} : vector<128x128xbf16>, vector<128x128xbf16>, vector<128x128xf32> -> vector<128x128xf32>
    %5 = arith.truncf %4 : vector<128x128xf32> to vector<128x128xbf16>
    %c0_5 = arith.constant 0 : index
    %c0_6 = arith.constant 0 : index
    %c0_7 = arith.constant 0 : index
    %6 = vector.load %arg5[%c0_5, %c0_6, %c0_7] : memref<1x128x128xbf16, #tpu.memory_space<vmem>>, vector<1x128x128xbf16>
    %7 = vector.shape_cast %6 : vector<1x128x128xbf16> to vector<128x128xbf16>
    %8 = vector.shape_cast %5 : vector<128x128xbf16> to vector<1x128x128xbf16>
    tpu.vector_store %arg5[%c0_5, %c0_6, %c0_7], %8 {strides = array<i32>} : memref<1x128x128xbf16, #tpu.memory_space<vmem>>, vector<1x128x128xbf16>,
    %cst_8 = arith.constant dense<0.000000e+00> : vector<128xf32>
    %9 = vector.multi_reduction <add>, %4, %cst_8 [0] : vector<128x128xf32> to vector<128xf32>
    %10 = vector.shape_cast %9 : vector<128xf32> to vector<1x128xf32>
    %11 = arith.mulf %4, %4 : vector<128x128xf32>
    %cst_9 = arith.constant dense<0.000000e+00> : vector<128xf32>
    %12 = vector.multi_reduction <add>, %11, %cst_9 [0] : vector<128x128xf32> to vector<128xf32>
    %13 = vector.shape_cast %12 : vector<128xf32> to vector<1x128xf32>
    %14 = vector.shape_cast %10 : vector<1x128xf32> to vector<1x1x1x128xf32>
    %15 = vector.shape_cast %14 : vector<1x1x1x128xf32> to vector<1x1x1x128xf32>
    %16 = vector.broadcast %15 : vector<1x1x1x128xf32> to vector<1x1x8x128xf32>
    %c0_10 = arith.constant 0 : index
    %c0_11 = arith.constant 0 : index
    %c0_12 = arith.constant 0 : index
    %c0_13 = arith.constant 0 : index
    %17 = vector.load %arg6[%c0_10, %c0_11, %c0_12, %c0_13] : memref<1x1x8x128xf32, #tpu.memory_space<vmem>>, vector<1x1x8x128xf32>
    tpu.vector_store %arg6[%c0_10, %c0_11, %c0_12, %c0_13], %16 {strides = array<i32>} : memref<1x1x8x128xf32, #tpu.memory_space<vmem>>, vector<1x1x8x128xf32>,
    %18 = vector.shape_cast %13 : vector<1x128xf32> to vector<1x1x1x128xf32>
    %19 = vector.shape_cast %18 : vector<1x1x1x128xf32> to vector<1x1x1x128xf32>
    %20 = vector.broadcast %19 : vector<1x1x1x128xf32> to vector<1x1x8x128xf32>
    %c0_14 = arith.constant 0 : index
    %c0_15 = arith.constant 0 : index
    %c0_16 = arith.constant 0 : index
    %c0_17 = arith.constant 0 : index
    %21 = vector.load %arg7[%c0_14, %c0_15, %c0_16, %c0_17] : memref<1x1x8x128xf32, #tpu.memory_space<vmem>>, vector<1x1x8x128xf32>
    tpu.vector_store %arg7[%c0_14, %c0_15, %c0_16, %c0_17], %20 {strides = array<i32>} : memref<1x1x8x128xf32, #tpu.memory_space<vmem>>, vector<1x1x8x128xf32>,
    return
  }
  func.func @transform_0(%arg0: i32, %arg1: i32, %arg2: i32) -> (i32, i32, i32) {
    %c0_i32 = arith.constant 0 : i32
    %c0_i32_0 = arith.constant 0 : i32
    return %arg0, %arg1, %c0_i32 : i32, i32, i32
  }
  func.func @transform_1(%arg0: i32, %arg1: i32, %arg2: i32) -> (i32, i32, i32) {
    %c0_i32 = arith.constant 0 : i32
    %c0_i32_0 = arith.constant 0 : i32
    return %arg0, %c0_i32, %arg2 : i32, i32, i32
  }
  func.func @transform_2(%arg0: i32, %arg1: i32, %arg2: i32) -> (i32, i32, i32) {
    %c0_i32 = arith.constant 0 : i32
    return %arg0, %arg1, %arg2 : i32, i32, i32
  }
  func.func @transform_3(%arg0: i32, %arg1: i32, %arg2: i32) -> (i32, i32, i32, i32) {
    %c0_i32 = arith.constant 0 : i32
    %c0_i32_0 = arith.constant 0 : i32
    return %arg0, %arg1, %c0_i32, %arg2 : i32, i32, i32, i32
  }
  func.func @transform_4(%arg0: i32, %arg1: i32, %arg2: i32) -> (i32, i32, i32, i32) {
    %c0_i32 = arith.constant 0 : i32
    %c0_i32_0 = arith.constant 0 : i32
    return %arg0, %arg1, %c0_i32, %arg2 : i32, i32, i32, i32
  }
}

module attributes {stable_mosaic.version = 11 : i64} {
  func.func @_bn_relu_kernel(%arg0: i32, %arg1: i32, %arg2: memref<1x512x128xbf16, #tpu.memory_space<vmem>>, %arg3: memref<1x128xf32, #tpu.memory_space<vmem>>, %arg4: memref<1x128xf32, #tpu.memory_space<vmem>>, %arg5: memref<1x512x128xbf16, #tpu.memory_space<vmem>>) attributes {dimension_semantics = [#tpu.dimension_semantics<parallel>, #tpu.dimension_semantics<parallel>], iteration_bounds = array<i64: 4, 1>, scalar_prefetch = 0 : i64, scratch_operands = 0 : i64, tpu.core_type = #tpu.core_type<tc>, window_params = [{transform_indices = @transform_0, window_bounds = array<i64: 1, 512, 128>}, {pipeline_mode = #tpu.pipeline_mode<synchronous>, transform_indices = @transform_1, window_bounds = array<i64: 1, 128>}, {pipeline_mode = #tpu.pipeline_mode<synchronous>, transform_indices = @transform_2, window_bounds = array<i64: 1, 128>}, {transform_indices = @transform_3, window_bounds = array<i64: 1, 512, 128>}]} {
    %c0 = arith.constant 0 : index
    %c0_0 = arith.constant 0 : index
    %c0_1 = arith.constant 0 : index
    %0 = vector.load %arg2[%c0, %c0_0, %c0_1] : memref<1x512x128xbf16, #tpu.memory_space<vmem>>, vector<1x512x128xbf16>
    %1 = vector.shape_cast %0 : vector<1x512x128xbf16> to vector<512x128xbf16>
    %2 = arith.extf %1 : vector<512x128xbf16> to vector<512x128xf32>
    %c0_2 = arith.constant 0 : index
    %c0_3 = arith.constant 0 : index
    %3 = vector.load %arg3[%c0_2, %c0_3] : memref<1x128xf32, #tpu.memory_space<vmem>>, vector<1x128xf32>
    %4 = vector.broadcast %3 : vector<1x128xf32> to vector<512x128xf32>
    %5 = arith.mulf %2, %4 : vector<512x128xf32>
    %c0_4 = arith.constant 0 : index
    %c0_5 = arith.constant 0 : index
    %6 = vector.load %arg4[%c0_4, %c0_5] : memref<1x128xf32, #tpu.memory_space<vmem>>, vector<1x128xf32>
    %7 = vector.broadcast %6 : vector<1x128xf32> to vector<512x128xf32>
    %8 = arith.addf %5, %7 : vector<512x128xf32>
    %cst = arith.constant 0.000000e+00 : f32
    %9 = vector.broadcast %cst : f32 to vector<512x128xf32>
    %10 = arith.maximumf %8, %9 : vector<512x128xf32>
    %11 = arith.truncf %10 : vector<512x128xf32> to vector<512x128xbf16>
    %c0_6 = arith.constant 0 : index
    %c0_7 = arith.constant 0 : index
    %c0_8 = arith.constant 0 : index
    %12 = vector.load %arg5[%c0_6, %c0_7, %c0_8] : memref<1x512x128xbf16, #tpu.memory_space<vmem>>, vector<1x512x128xbf16>
    %13 = vector.shape_cast %12 : vector<1x512x128xbf16> to vector<512x128xbf16>
    %14 = vector.shape_cast %11 : vector<512x128xbf16> to vector<1x512x128xbf16>
    tpu.vector_store %arg5[%c0_6, %c0_7, %c0_8], %14 {strides = array<i32>} : memref<1x512x128xbf16, #tpu.memory_space<vmem>>, vector<1x512x128xbf16>,
    return
  }
  func.func @transform_0(%arg0: i32, %arg1: i32) -> (i32, i32, i32) {
    %c0_i32 = arith.constant 0 : i32
    %c0_i32_0 = arith.constant 0 : i32
    return %arg0, %arg1, %c0_i32 : i32, i32, i32
  }
  func.func @transform_1(%arg0: i32, %arg1: i32) -> (i32, i32) {
    %c0_i32 = arith.constant 0 : i32
    %c0_i32_0 = arith.constant 0 : i32
    %c0_i32_1 = arith.constant 0 : i32
    return %c0_i32, %c0_i32_0 : i32, i32
  }
  func.func @transform_2(%arg0: i32, %arg1: i32) -> (i32, i32) {
    %c0_i32 = arith.constant 0 : i32
    %c0_i32_0 = arith.constant 0 : i32
    %c0_i32_1 = arith.constant 0 : i32
    return %c0_i32, %c0_i32_0 : i32, i32
  }
  func.func @transform_3(%arg0: i32, %arg1: i32) -> (i32, i32, i32) {
    %c0_i32 = arith.constant 0 : i32
    %c0_i32_0 = arith.constant 0 : i32
    return %arg0, %arg1, %c0_i32 : i32, i32, i32
  }
}

module attributes {stable_mosaic.version = 11 : i64} {
  func.func @_mm_stats_kernel(%arg0: i32, %arg1: i32, %arg2: i32, %arg3: memref<1x512x64xbf16, #tpu.memory_space<vmem>>, %arg4: memref<1x64x128xbf16, #tpu.memory_space<vmem>>, %arg5: memref<1x512x128xbf16, #tpu.memory_space<vmem>>, %arg6: memref<1x1x8x128xf32, #tpu.memory_space<vmem>>, %arg7: memref<1x1x8x128xf32, #tpu.memory_space<vmem>>) attributes {dimension_semantics = [#tpu.dimension_semantics<parallel>, #tpu.dimension_semantics<parallel>, #tpu.dimension_semantics<parallel>], iteration_bounds = array<i64: 4, 1, 1>, scalar_prefetch = 0 : i64, scratch_operands = 0 : i64, tpu.core_type = #tpu.core_type<tc>, window_params = [{transform_indices = @transform_0, window_bounds = array<i64: 1, 512, 64>}, {transform_indices = @transform_1, window_bounds = array<i64: 1, 64, 128>}, {transform_indices = @transform_2, window_bounds = array<i64: 1, 512, 128>}, {transform_indices = @transform_3, window_bounds = array<i64: 1, 1, 8, 128>}, {transform_indices = @transform_4, window_bounds = array<i64: 1, 1, 8, 128>}]} {
    %c0 = arith.constant 0 : index
    %c0_0 = arith.constant 0 : index
    %c0_1 = arith.constant 0 : index
    %0 = vector.load %arg3[%c0, %c0_0, %c0_1] : memref<1x512x64xbf16, #tpu.memory_space<vmem>>, vector<1x512x64xbf16>
    %1 = vector.shape_cast %0 : vector<1x512x64xbf16> to vector<512x64xbf16>
    %c0_2 = arith.constant 0 : index
    %c0_3 = arith.constant 0 : index
    %c0_4 = arith.constant 0 : index
    %2 = vector.load %arg4[%c0_2, %c0_3, %c0_4] : memref<1x64x128xbf16, #tpu.memory_space<vmem>>, vector<1x64x128xbf16>
    %3 = vector.shape_cast %2 : vector<1x64x128xbf16> to vector<64x128xbf16>
    %cst = arith.constant dense<0.000000e+00> : vector<512x128xf32>
    %4 = tpu.matmul %1, %3, %cst {dimension_numbers = #tpu.dot_dimension_numbers<[1], [0], [0], [1], [0, 0, 1, 1], [], []>} : vector<512x64xbf16>, vector<64x128xbf16>, vector<512x128xf32> -> vector<512x128xf32>
    %5 = arith.truncf %4 : vector<512x128xf32> to vector<512x128xbf16>
    %c0_5 = arith.constant 0 : index
    %c0_6 = arith.constant 0 : index
    %c0_7 = arith.constant 0 : index
    %6 = vector.load %arg5[%c0_5, %c0_6, %c0_7] : memref<1x512x128xbf16, #tpu.memory_space<vmem>>, vector<1x512x128xbf16>
    %7 = vector.shape_cast %6 : vector<1x512x128xbf16> to vector<512x128xbf16>
    %8 = vector.shape_cast %5 : vector<512x128xbf16> to vector<1x512x128xbf16>
    tpu.vector_store %arg5[%c0_5, %c0_6, %c0_7], %8 {strides = array<i32>} : memref<1x512x128xbf16, #tpu.memory_space<vmem>>, vector<1x512x128xbf16>,
    %cst_8 = arith.constant dense<0.000000e+00> : vector<128xf32>
    %9 = vector.multi_reduction <add>, %4, %cst_8 [0] : vector<512x128xf32> to vector<128xf32>
    %10 = vector.shape_cast %9 : vector<128xf32> to vector<1x128xf32>
    %11 = arith.mulf %4, %4 : vector<512x128xf32>
    %cst_9 = arith.constant dense<0.000000e+00> : vector<128xf32>
    %12 = vector.multi_reduction <add>, %11, %cst_9 [0] : vector<512x128xf32> to vector<128xf32>
    %13 = vector.shape_cast %12 : vector<128xf32> to vector<1x128xf32>
    %14 = vector.shape_cast %10 : vector<1x128xf32> to vector<1x1x1x128xf32>
    %15 = vector.shape_cast %14 : vector<1x1x1x128xf32> to vector<1x1x1x128xf32>
    %16 = vector.broadcast %15 : vector<1x1x1x128xf32> to vector<1x1x8x128xf32>
    %c0_10 = arith.constant 0 : index
    %c0_11 = arith.constant 0 : index
    %c0_12 = arith.constant 0 : index
    %c0_13 = arith.constant 0 : index
    %17 = vector.load %arg6[%c0_10, %c0_11, %c0_12, %c0_13] : memref<1x1x8x128xf32, #tpu.memory_space<vmem>>, vector<1x1x8x128xf32>
    tpu.vector_store %arg6[%c0_10, %c0_11, %c0_12, %c0_13], %16 {strides = array<i32>} : memref<1x1x8x128xf32, #tpu.memory_space<vmem>>, vector<1x1x8x128xf32>,
    %18 = vector.shape_cast %13 : vector<1x128xf32> to vector<1x1x1x128xf32>
    %19 = vector.shape_cast %18 : vector<1x1x1x128xf32> to vector<1x1x1x128xf32>
    %20 = vector.broadcast %19 : vector<1x1x1x128xf32> to vector<1x1x8x128xf32>
    %c0_14 = arith.constant 0 : index
    %c0_15 = arith.constant 0 : index
    %c0_16 = arith.constant 0 : index
    %c0_17 = arith.constant 0 : index
    %21 = vector.load %arg7[%c0_14, %c0_15, %c0_16, %c0_17] : memref<1x1x8x128xf32, #tpu.memory_space<vmem>>, vector<1x1x8x128xf32>
    tpu.vector_store %arg7[%c0_14, %c0_15, %c0_16, %c0_17], %20 {strides = array<i32>} : memref<1x1x8x128xf32, #tpu.memory_space<vmem>>, vector<1x1x8x128xf32>,
    return
  }
  func.func @transform_0(%arg0: i32, %arg1: i32, %arg2: i32) -> (i32, i32, i32) {
    %c0_i32 = arith.constant 0 : i32
    %c0_i32_0 = arith.constant 0 : i32
    return %arg0, %arg1, %c0_i32 : i32, i32, i32
  }
  func.func @transform_1(%arg0: i32, %arg1: i32, %arg2: i32) -> (i32, i32, i32) {
    %c0_i32 = arith.constant 0 : i32
    %c0_i32_0 = arith.constant 0 : i32
    return %arg0, %c0_i32, %arg2 : i32, i32, i32
  }
  func.func @transform_2(%arg0: i32, %arg1: i32, %arg2: i32) -> (i32, i32, i32) {
    %c0_i32 = arith.constant 0 : i32
    return %arg0, %arg1, %arg2 : i32, i32, i32
  }
  func.func @transform_3(%arg0: i32, %arg1: i32, %arg2: i32) -> (i32, i32, i32, i32) {
    %c0_i32 = arith.constant 0 : i32
    %c0_i32_0 = arith.constant 0 : i32
    return %arg0, %arg1, %c0_i32, %arg2 : i32, i32, i32, i32
  }
  func.func @transform_4(%arg0: i32, %arg1: i32, %arg2: i32) -> (i32, i32, i32, i32) {
    %c0_i32 = arith.constant 0 : i32
    %c0_i32_0 = arith.constant 0 : i32
    return %arg0, %arg1, %c0_i32, %arg2 : i32, i32, i32, i32
  }
}

module attributes {stable_mosaic.version = 11 : i64} {
  func.func @_mm_tanh_kernel(%arg0: i32, %arg1: i32, %arg2: i32, %arg3: memref<1x512x32xbf16, #tpu.memory_space<vmem>>, %arg4: memref<1x32x128xbf16, #tpu.memory_space<vmem>>, %arg5: memref<1x512x128xf32, #tpu.memory_space<vmem>>) attributes {dimension_semantics = [#tpu.dimension_semantics<parallel>, #tpu.dimension_semantics<parallel>, #tpu.dimension_semantics<parallel>], iteration_bounds = array<i64: 4, 4, 1>, scalar_prefetch = 0 : i64, scratch_operands = 0 : i64, tpu.core_type = #tpu.core_type<tc>, window_params = [{transform_indices = @transform_0, window_bounds = array<i64: 1, 512, 32>}, {transform_indices = @transform_1, window_bounds = array<i64: 1, 32, 128>}, {transform_indices = @transform_2, window_bounds = array<i64: 1, 512, 128>}]} {
    %c0 = arith.constant 0 : index
    %c0_0 = arith.constant 0 : index
    %c0_1 = arith.constant 0 : index
    %0 = vector.load %arg3[%c0, %c0_0, %c0_1] : memref<1x512x32xbf16, #tpu.memory_space<vmem>>, vector<1x512x32xbf16>
    %1 = vector.shape_cast %0 : vector<1x512x32xbf16> to vector<512x32xbf16>
    %c0_2 = arith.constant 0 : index
    %c0_3 = arith.constant 0 : index
    %c0_4 = arith.constant 0 : index
    %2 = vector.load %arg4[%c0_2, %c0_3, %c0_4] : memref<1x32x128xbf16, #tpu.memory_space<vmem>>, vector<1x32x128xbf16>
    %3 = vector.shape_cast %2 : vector<1x32x128xbf16> to vector<32x128xbf16>
    %cst = arith.constant dense<0.000000e+00> : vector<512x128xf32>
    %4 = tpu.matmul %1, %3, %cst {dimension_numbers = #tpu.dot_dimension_numbers<[1], [0], [0], [1], [0, 0, 1, 1], [], []>} : vector<512x32xbf16>, vector<32x128xbf16>, vector<512x128xf32> -> vector<512x128xf32>
    %5 = math.tanh %4 : vector<512x128xf32>
    %c0_5 = arith.constant 0 : index
    %c0_6 = arith.constant 0 : index
    %c0_7 = arith.constant 0 : index
    %6 = vector.load %arg5[%c0_5, %c0_6, %c0_7] : memref<1x512x128xf32, #tpu.memory_space<vmem>>, vector<1x512x128xf32>
    %7 = vector.shape_cast %6 : vector<1x512x128xf32> to vector<512x128xf32>
    %8 = vector.shape_cast %5 : vector<512x128xf32> to vector<1x512x128xf32>
    tpu.vector_store %arg5[%c0_5, %c0_6, %c0_7], %8 {strides = array<i32>} : memref<1x512x128xf32, #tpu.memory_space<vmem>>, vector<1x512x128xf32>,
    return
  }
  func.func @transform_0(%arg0: i32, %arg1: i32, %arg2: i32) -> (i32, i32, i32) {
    %c0_i32 = arith.constant 0 : i32
    %c0_i32_0 = arith.constant 0 : i32
    return %arg0, %arg1, %c0_i32 : i32, i32, i32
  }
  func.func @transform_1(%arg0: i32, %arg1: i32, %arg2: i32) -> (i32, i32, i32) {
    %c0_i32 = arith.constant 0 : i32
    %c0_i32_0 = arith.constant 0 : i32
    return %arg0, %c0_i32, %arg2 : i32, i32, i32
  }
  func.func @transform_2(%arg0: i32, %arg1: i32, %arg2: i32) -> (i32, i32, i32) {
    %c0_i32 = arith.constant 0 : i32
    return %arg0, %arg1, %arg2 : i32, i32, i32
  }
}

</mosaic_0001>

<bundles_post_ra>
// kernel: tile.17
= control target key start
LH: loop header
LB: loop body
LE: loop exit
PB: predicated region body
PF: predicated region fallthrough
CT: control target
= control target key end

     0   :  { %s28_s0 = inlined_call_operand.vmem [shape: f32[64], index: 0, kind: input, shape index: {}]   ;;  %s29_s1 = inlined_call_operand.vmem [shape: f32[16,64], index: 1, kind: output, shape index: {}]  }
   0x1   :  { %v4_v0 = vld [vmem:[%s28_s0] ss:$0 sm:$0xff] }
   0x2   :  { %5 = vst [vmem:[%s29_s1] sm:$0xff] %v4_v0  ;;  %8 = vst [vmem:[%s29_s1 + $0x8] sm:$0xff] %v4_v0 }

// kernel: tile.19
= control target key start
LH: loop header
LB: loop body
LE: loop exit
PB: predicated region body
PF: predicated region fallthrough
CT: control target
= control target key end

     0   :  { %vm3_vm0 = vcmask 523264   ;;  %vm10_vm1 = vcmask 1048064   ;;  %s125_s0 = inlined_call_operand.vmem [shape: f32[16,64], index: 0, kind: input, shape index: {}]   ;;  %s126_s1 = inlined_call_operand.vmem [shape: f32[1,1024], index: 1, kind: output, shape index: {}]  }
   0x1   :  { %v75_v0 = vld [vmem:[%s125_s0 + $0x1] ss:$2 sm:$0xff]   ;;  %v2_v1 = vld [vmem:[%s125_s0] ss:$2 sm:$0xff]   ;;  %s84_s0 = smov 64  }
   0x2   :  { %8 = vrot.lane.b32.xlu0 %v75_v0, %s84_s0  ;;  %4 = vst.msk [vmem:[#allocation0] ss:$8 sm:$0xf] %vm3_vm0, %v2_v1   ;;  %5 = vst.msk [vmem:[#allocation0] ss:$8 sm:$0xf0] %vm3_vm0, %v2_v1  }
  0x74   :  { %v9_v2 = vpop.permute.xlu0 %8  }
  0x75   :  { %11 = vst.msk [vmem:[#allocation0] ss:$8 sm:$0xf] %vm10_vm1, %v9_v2   ;;  %12 = vst.msk [vmem:[#allocation0] ss:$8 sm:$0xf0] %vm10_vm1, %v9_v2  }
  0x7c   :  { %v17_v3 = vld [vmem:[#allocation0] sm:$0x1]  ;;  %v22_v4 = vld [vmem:[#allocation0 + $0x8] sm:$0x1]  ;;  %v28_v5 = vld [vmem:[#allocation0 + $0x10] sm:$0x1] }
  0x7d   :  { %20 = vst [vmem:[%s126_s1] sm:$0x1] %v17_v3  ;;  %76 = vst [vmem:[%s126_s1 + $0x1] sm:$0x1] %v22_v4  ;;  %v35_v6 = vld [vmem:[#allocation0 + $0x18] sm:$0x1] }
  0x7e   :  { %77 = vst [vmem:[%s126_s1 + $0x2] sm:$0x1] %v28_v5  ;;  %v42_v7 = vld [vmem:[#allocation0 + $0x20] sm:$0x1]  ;;  %v49_v8 = vld [vmem:[#allocation0 + $0x28] sm:$0x1] }
  0x7f   :  { %78 = vst [vmem:[%s126_s1 + $0x3] sm:$0x1] %v35_v6  ;;  %79 = vst [vmem:[%s126_s1 + $0x4] sm:$0x1] %v42_v7  ;;  %v56_v9 = vld [vmem:[#allocation0 + $0x30] sm:$0x1] }
  0x80   :  { %80 = vst [vmem:[%s126_s1 + $0x5] sm:$0x1] %v49_v8  ;;  %v63_v10 = vld [vmem:[#allocation0 + $0x38] sm:$0x1]  ;;  %81 = vst [vmem:[%s126_s1 + $0x6] sm:$0x1] %v56_v9 }
  0x81   :  { %82 = vst [vmem:[%s126_s1 + $0x7] sm:$0x1] %v63_v10 }

// kernel: squeeze.11
= control target key start
LH: loop header
LB: loop body
LE: loop exit
PB: predicated region body
PF: predicated region fallthrough
CT: control target
= control target key end

     0   :  { %vm131_vm0 = vcmask 523264   ;;  %vm186_vm1 = vcmask 1047556   ;;  %v315_v37 = vmov 0.0   ;;  %s400_s0 = inlined_call_operand.vmem [shape: bf16[1,2,1024], index: 0, kind: input, shape index: {}]   ;;  %s401_s1 = inlined_call_operand.vmem [shape: bf16[2,4,4,64], index: 1, kind: output, shape index: {}]  }
   0x1   :  { %v293_v0 = vld [vmem:[%s400_s0 + $0x7] sm:$0x1]  ;;  %v294_v1 = vld [vmem:[%s400_s0 + $0x6] sm:$0x1]  ;;  %v295_v2 = vld [vmem:[%s400_s0 + $0x5] sm:$0x1] }
   0x2   :  { %v18_v3 = vunpack.c.l.bf16 %v293_v0  ;;  %v34_v4 = vunpack.c.l.bf16 %v294_v1  ;;  %v50_v5 = vunpack.c.l.bf16 %v295_v2  ;;  %v296_v6 = vld [vmem:[%s400_s0 + $0x4] sm:$0x1]  ;;  %v297_v7 = vld [vmem:[%s400_s0 + $0x3] sm:$0x1]  ;;  %v298_v8 = vld [vmem:[%s400_s0 + $0x2] sm:$0x1] }
   0x3   :  { %v66_v9 = vunpack.c.l.bf16 %v296_v6  ;;  %v82_v10 = vunpack.c.l.bf16 %v297_v7  ;;  %v98_v11 = vunpack.c.l.bf16 %v298_v8  ;;  %v299_v12 = vld [vmem:[%s400_s0 + $0x1] sm:$0x1]  ;;  %v126_v13 = vld [vmem:[%s400_s0] sm:$0x1]  ;;  %s314_s0 = smov 64  }
   0x4   :  { %21 = vst [vmem:[#allocation1 + $0x38] sm:$0x3] %v18_v3  ;;  %37 = vst [vmem:[#allocation1 + $0x30] sm:$0x3] %v34_v4  ;;  %v113_v14 = vunpack.c.l.bf16 %v299_v12  ;;  %v127_v15 = vunpack.c.l.bf16 %v126_v13 }
   0x5   :  { %53 = vst [vmem:[#allocation1 + $0x28] sm:$0x3] %v50_v5  ;;  %69 = vst [vmem:[#allocation1 + $0x20] sm:$0x3] %v66_v9 }
   0x6   :  { %85 = vst [vmem:[#allocation1 + $0x18] sm:$0x3] %v82_v10  ;;  %101 = vst [vmem:[#allocation1 + $0x10] sm:$0x3] %v98_v11 }
   0x7   :  { %116 = vst [vmem:[#allocation1 + $0x8] sm:$0x3] %v113_v14  ;;  %129 = vst [vmem:[#allocation1] sm:$0x3] %v127_v15 }
   0xb   :  { %v171_v17 = vld [vmem:[#allocation1 + $0x30] sm:$0x3]   ;;  %v178_v18 = vld [vmem:[#allocation1 + $0x38] sm:$0x3]  }
   0xc   :  { %v164_v16 = vld [vmem:[#allocation1 + $0x28] sm:$0x3]   ;;  %v157_v21 = vld [vmem:[#allocation1 + $0x20] sm:$0x3]   ;;  %174 = vst.msk [vmem:[#allocation0 + $0x18] sm:$0x1] %vm131_vm0, %v171_v17  }
   0xd   :  { %v143_v19 = vld [vmem:[#allocation1 + $0x10] sm:$0x3]   ;;  %v150_v20 = vld [vmem:[#allocation1 + $0x18] sm:$0x3]   ;;  %167 = vst.msk [vmem:[#allocation0 + $0x12] sm:$0x1] %vm131_vm0, %v164_v16  }
   0xe   :  { %169 = vst.msk [vmem:[#allocation0 + $0x31] sm:$0x2] %vm131_vm0, %v164_v16   ;;  %176 = vst.msk [vmem:[#allocation0 + $0x37] sm:$0x2] %vm131_vm0, %v171_v17   ;;  %v130_v22 = vld [vmem:[#allocation1] sm:$0x3]  }
   0xf   :  { %181 = vst.msk [vmem:[#allocation0 + $0x1a] sm:$0x1] %vm131_vm0, %v178_v18   ;;  %183 = vst.msk [vmem:[#allocation0 + $0x39] sm:$0x2] %vm131_vm0, %v178_v18   ;;  %v136_v23 = vld [vmem:[#allocation1 + $0x8] sm:$0x3]  }
  0x10   :  { %146 = vst.msk [vmem:[#allocation0 + $0x8] sm:$0x1] %vm131_vm0, %v143_v19   ;;  %148 = vst.msk [vmem:[#allocation0 + $0x27] sm:$0x2] %vm131_vm0, %v143_v19  }
  0x11   :  { %153 = vst.msk [vmem:[#allocation0 + $0xa] sm:$0x1] %vm131_vm0, %v150_v20   ;;  %155 = vst.msk [vmem:[#allocation0 + $0x29] sm:$0x2] %vm131_vm0, %v150_v20  }
  0x12   :  { %160 = vst.msk [vmem:[#allocation0 + $0x10] sm:$0x1] %vm131_vm0, %v157_v21   ;;  %162 = vst.msk [vmem:[#allocation0 + $0x2f] sm:$0x2] %vm131_vm0, %v157_v21  }
  0x13   :  { %132 = vst.msk [vmem:[#allocation0] sm:$0x1] %vm131_vm0, %v130_v22   ;;  %134 = vst.msk [vmem:[#allocation0 + $0x1f] sm:$0x2] %vm131_vm0, %v130_v22  }
  0x14   :  { %139 = vst.msk [vmem:[#allocation0 + $0x2] sm:$0x1] %vm131_vm0, %v136_v23   ;;  %141 = vst.msk [vmem:[#allocation0 + $0x21] sm:$0x2] %vm131_vm0, %v136_v23  }
  0x15   :  { %v184_v24 = vld [vmem:[#allocation1] ss:$8 sm:$0xf]   ;;  %v200_v27 = vld [vmem:[#allocation1 + $0x1] ss:$8 sm:$0xf]  }
  0x16   :  { %v185_v25 = vld [vmem:[#allocation1] ss:$8 sm:$0xf0]   ;;  %v202_v28 = vld [vmem:[#allocation1 + $0x1] ss:$8 sm:$0xf0]  }
  0x17   :  { %v187_v26 = vsel %vm186_vm1, %v185_v25, %v184_v24  ;;  %v204_v29 = vsel %vm186_vm1, %v202_v28, %v200_v27 }
  0x18   :  { %v309_v30 = vpack.i.bf16 %v204_v29, %v187_v26 }
  0x1a   :  { %310 = vrot.lane.b32.xlu0 %v309_v30, %s314_s0 }
  0x8c   :  { %v311_v31 = vpop.permute.xlu0 %310 }
  0x8d   :  { %v313_v32 = vunpack.i.h.bf16 %v311_v31  ;;  %v312_v33 = vunpack.i.l.bf16 %v311_v31 }
  0x8f   :  { %209 = vst.msk [vmem:[#allocation0 + $0x21] ss:$2 sm:$0x3] %vm131_vm0, %v313_v32   ;;  %211 = vst.msk [vmem:[#allocation0 + $0x25] ss:$2 sm:$0xc] %vm131_vm0, %v313_v32  }
  0x90   :  { %213 = vst.msk [vmem:[#allocation0 + $0x29] ss:$2 sm:$0x30] %vm131_vm0, %v313_v32   ;;  %215 = vst.msk [vmem:[#allocation0 + $0x2d] ss:$2 sm:$0xc0] %vm131_vm0, %v313_v32  }
  0x91   :  { %192 = vst.msk [vmem:[#allocation0 + $0x1] ss:$2 sm:$0x3] %vm131_vm0, %v312_v33   ;;  %194 = vst.msk [vmem:[#allocation0 + $0x5] ss:$2 sm:$0xc] %vm131_vm0, %v312_v33  }
  0x92   :  { %196 = vst.msk [vmem:[#allocation0 + $0x9] ss:$2 sm:$0x30] %vm131_vm0, %v312_v33   ;;  %198 = vst.msk [vmem:[#allocation0 + $0xd] ss:$2 sm:$0xc0] %vm131_vm0, %v312_v33  }
  0x96   :  { %v250_v34 = vld [vmem:[#allocation0 + $0x20] sm:$0xf]  ;;  %v258_v35 = vld [vmem:[#allocation0 + $0x28] sm:$0xf] }
  0x97   :  { %v266_v36 = vld [vmem:[#allocation0 + $0x30] sm:$0xf]  ;;  %v251_v38 = vpack.c.bf16 %v315_v37, %v250_v34  ;;  %v259_v39 = vpack.c.bf16 %v315_v37, %v258_v35  ;;  %v274_v48 = vld [vmem:[#allocation0 + $0x38] sm:$0xf] }
  0x98   :  { %v267_v40 = vpack.c.bf16 %v315_v37, %v266_v36  ;;  %v221_v41 = vld [vmem:[#allocation0] sm:$0xf]  ;;  %v227_v42 = vld [vmem:[#allocation0 + $0x8] sm:$0xf]  ;;  %v275_v50 = vpack.c.bf16 %v315_v37, %v274_v48 }
  0x99   :  { %v234_v43 = vld [vmem:[#allocation0 + $0x10] sm:$0xf]  ;;  %v222_v44 = vpack.c.bf16 %v315_v37, %v221_v41  ;;  %v228_v45 = vpack.c.bf16 %v315_v37, %v227_v42  ;;  %v242_v47 = vld [vmem:[#allocation0 + $0x18] sm:$0xf]  ;;  %303 = vst [vmem:[%s401_s1 + $0x8] sm:$0x3] %v251_v38 }
  0x9a   :  { %v235_v46 = vpack.c.bf16 %v315_v37, %v234_v43  ;;  %304 = vst [vmem:[%s401_s1 + $0xa] sm:$0x3] %v259_v39  ;;  %305 = vst [vmem:[%s401_s1 + $0xc] sm:$0x3] %v267_v40  ;;  %v243_v49 = vpack.c.bf16 %v315_v37, %v242_v47 }
  0x9b   :  { %225 = vst [vmem:[%s401_s1] sm:$0x3] %v222_v44  ;;  %300 = vst [vmem:[%s401_s1 + $0x2] sm:$0x3] %v228_v45 }
  0x9c   :  { %301 = vst [vmem:[%s401_s1 + $0x4] sm:$0x3] %v235_v46  ;;  %302 = vst [vmem:[%s401_s1 + $0x6] sm:$0x3] %v243_v49 }
  0x9d   :  { %306 = vst [vmem:[%s401_s1 + $0xe] sm:$0x3] %v275_v50 }

// kernel: _lambda_.9
= control target key start
LH: loop header
LB: loop body
LE: loop exit
PB: predicated region body
PF: predicated region fallthrough
CT: control target
= control target key end

     0   :  { %10 = vsyncpa [#allocation3], 0  ;;  %s1188_s0 = inlined_call_operand.vmem [shape: bf16[1,16,16], index: 0, kind: input, shape index: {}]   ;;  %s1189_s1 = inlined_call_operand.hbm [shape: bf16[1,16,1024], index: 1, kind: input, shape index: {}]   ;;  %s1190_s2 = inlined_call_operand.vmem [shape: bf16[1,16,1024], index: 2, kind: output, shape index: {0}]   ;;  %s1191_s3 = inlined_call_operand.vmem [shape: f32[1,1,8,1024], index: 3, kind: output, shape index: {1}]   ;;  %s1192_s4 = inlined_call_operand.vmem [shape: f32[1,1,8,1024], index: 4, kind: output, shape index: {2}]  }
   0x1   :  { %12 = vsyncpa [#allocation3 + $0x1], 0  ;;  %s1052_s15 = smov 0   ;;  %s1054_s16 = smov 0  }
   0x2   :  { %s1056_s17 = smov 0   ;;  %s1058_s18 = smov 0  }
   0x3   :  { %s1060_s19 = smov 0   ;;  %s1062_s20 = smov 0  }
   0x4 LB: > { %s839_s21 = sadd.s32 4294967295, %s1020_s20   ;;  %s30_s22 = sadd.s32 1, %s1016_s19  ;;  %s1020_s20 = sphi %s1062_s20, %s18_s20   ;;  %s1016_s19 = sphi %s1060_s19, %s1202_s19   ;;  %s1012_s18 = sphi %s1058_s18, %s1201_s18   ;;  %s1008_s17 = sphi %s1056_s17, %s1200_s17   ;;  %s1004_s16 = sphi %s1054_s16, %s1199_s16   ;;  %s1000_s15 = sphi %s1052_s15, %s1198_s15  }
   0x5   : > { %p31_p0 = scmp.ge.s32.totalorder %s30_s22, 2  ;;  %s74_s23 = sadd.s32 1, %s1008_s17 }
   0x6   : > { %p81_p1 = scmp.ne.s32.totalorder %s1008_s17, %s1004_s16  ;;  %p82_p2 = scmp.eq.s32.totalorder %s1020_s20, 0 }
   0x7   : > { %s1204_s22 = smov (%p31_p0, %s30_s22), 0  ;;  %p87_p4 = scmp.ne.s32.totalorder %s1004_s16, %s1000_s15 }
   0x8   : > { %p1088_p3 = por %p82_p2, %p81_p1  ;;  %s70_s25 = ssub.s32 %s1016_s19, %s1204_s22 }
   0x9   : > { %p88_p5 = scmp.eq.s32.totalorder %s839_s21, 0  ;;  %p72_p6 = scmp.eq.s32.totalorder %s70_s25, 0 }
   0xa   : > { %p115_p7 = scmp.eq.s32.totalorder %s839_s21, 1  ;;  %p882_p10 = scmp.lt.s32.totalorder %s1020_s20, 2 }
   0xb   : > { %p1095_p8 = por %p88_p5, %p87_p4  ;;  %s214_s29 = sand.u32 1, %s1008_s17  }
   0xc   : > { %s1100_s27 = scalar_select %p72_p6, %s1008_s17, %s74_s23  }
   0xd   : > { %p1102_p9 = por %p115_p7, %p81_p1  ;;  %s870_s30 = sshll.u32 %s1016_s19, 8 }
   0xe   : > { %s844_s5 = sshll.u32 %s214_s29, 5  ;;  %s226_s8 = scalar_lea.hbm %s1189_s1, %s870_s30 }
   0xf   : > { %s218_s9 = scalar_lea.vmem [#allocation2], %s844_s5  ;;  %p1114_p11 = pnand %p882_p10, %p1088_p3 }
  0x10   : > { %s227_s10 = sshll.u32 %s218_s9, 4  ;;  %p847_p12 = scmp.ge.s32.totalorder %s1020_s20, 1  ;;  %s228_s10 = int_to_ptr.vmem [resolvable:$true] %s227_s10 }
  0x11   : > { %s215_s12 = scalar_lea.sflag [#allocation3], %s214_s29  ;;  %p944_p13 = pneg %p1114_p11 }
  0x12   : > { %s955_s13 = scalar_lea.vmem %s228_s10, 512  ;;  %s1022_s14 = smov [#allocation2]  }
  0x13   : > { %p956_p0 = scmp.ne.s32.totalorder %s228_s10, %s955_s13  ;;  %s960_s15 = sshll.u32 %s1022_s14, 4  ;;  %s961_s15 = int_to_ptr.vmem [resolvable:$false] %s960_s15 }
  0x14   : > { %s962_s21 = scalar_lea.vmem %s961_s15, 1024  ;;  %p963_p4 = scmp.lt.s32.totalorder %s228_s10, %s961_s15 }
  0x15   : > { %p958_p1 = pnand %p956_p0, %p944_p13  ;;  %p964_p5 = scmp.lt.s32.totalorder %s962_s21, %s955_s13 }
  0x17   : > { %p959_p2 = pneg %p958_p1  ;;  %p965_p3 = por %p964_p5, %p963_p4 }
  0x19   : > { %p966_p6 = pnand %p965_p3, %p959_p2 }
  0x1b   : > { %969 = shalt.err (!%p966_p6)
}
  0x1c   : > { %s1023_s23 = smov 512   ;;  %s1024_s24 = smov 256  }
  0x1d   : > { %s1025_s25 = smov 16   ;;  %p235_p7 = scmp.lt.s32.totalorder %s1020_s20, 3 }
  0x1e   : > { %881 = dma.hbm_to_vmem [thread:$0]  (!%p1114_p11), %s226_s8, 512, %s228_s10, %s215_s12, %s1023_s23, %s1024_s24, %s1025_s25  }
  0x1f   : > { %p236_p10 = pnand %p847_p12, %p235_p7 }
  0x20   : > { %s241_s29 = sand.u32 (!%p236_p10), 1, %s1004_s16  }
  0x21   : > { %239 = sbr.rel (%p236_p10) target bundleno = 264 (0x108), region = 28  ;;  %s1127_s30 = sshll.u32 (!%p236_p10), %s241_s29, 5 }
  0x22   : > { %s242_s5 = scalar_lea.sflag (!%p236_p10), [#allocation3], %s241_s29  ;;  %s245_s6 = scalar_lea.vmem (!%p236_p10), [#allocation2], %s1127_s30 }
  0x26   : > { %995 = dma.done.wait (%p1095_p8), %s242_s5, 512  }
  0x27   : > { %997 = vsyncadd (%p1095_p8), %s242_s5, 4294966784  ;;  %v1026_v0 = vmov 0   ;;  %v935_v1 = vld [vmem:[%s245_s6 + $0x4] ss:$16 sps:$4 sm:$0xff]   ;;  %v937_v2 = vld [vmem:[%s245_s6 + $0xc] ss:$16 sps:$4 sm:$0xff]  }
  0x28   : > { %413 = vmatprep.mubr.bf16.mxu0 %v1026_v0  ;;  %456 = vmatprep.mubr.bf16.mxu1 %v1026_v0  ;;  %v939_v3 = vld [vmem:[%s245_s6] ss:$16 sps:$4 sm:$0xff]   ;;  %v940_v4 = vld [vmem:[%s245_s6 + $0x8] ss:$16 sps:$4 sm:$0xff]   ;;  %vm377_vm0 = vcmask 130048   ;;  %s850_s26 = sshll.u32 %s1012_s18, 2 }
  0x29   : > { %395 = vmatprep.subr.bf16.mxu0 %v935_v1  ;;  %438 = vmatprep.subr.bf16.mxu1 %v937_v2  ;;  %v941_v5 = vld [vmem:[%s1188_s0] sm:$0xff]   ;;  %s1139_s9 = scalar_lea.vmem [#allocation4], %s1127_s30  ;;  %p1143_p8 = scmp.lt.s32.totalorder %s850_s26, 7 }
  0x2a   : > { %396 = vmatpush1.bf16.msra.mxu0 %v939_v3  ;;  %439 = vmatpush1.bf16.msra.mxu1 %v940_v4  ;;  %s875_s24 = sshll.u32 (%p1102_p9), %s1012_s18, 4 }
  0x2b   : > { %s1206_s26 = smov (!%p1143_p8, %s850_s26), 7  ;;  %s607_s30 = scalar_lea.vmem (%p1102_p9), %s1190_s2, %s875_s24 }
  0x2c   : > { %s851_s11 = sshll.u32 %s1206_s26, 3 }
  0x2d   : > { %859 = vmatmul.mubr.msk.bf16.vlgmr.msra.gmra.mxu0 %vm377_vm0, %v941_v5  ;;  %860 = vmatmul.mubr.msk.bf16.vlgmr.msra.gmra.mxu1 %vm377_vm0, %v941_v5  ;;  %s329_s14 = scalar_lea.vmem %s1191_s3, %s851_s11  ;;  %s343_s23 = scalar_lea.vmem %s1192_s4, %s851_s11 }
  0xed   : > { %v415_v6 = vpop.f32.mrf.mxu0  ;;  %v458_v7 = vpop.f32.mrf.mxu1 }
  0xee   : > { %v523_v12 = vmul.f32 %v415_v6, %v415_v6  ;;  %v525_v13 = vmul.f32 %v458_v7, %v458_v7 }
  0xef   : > { %v417_v8 = vpop.f32.mrf.mxu0  ;;  %v460_v9 = vpop.f32.mrf.mxu1 }
  0xf0   : > { %v871_v10 = vpack.c.bf16 %v417_v8, %v415_v6  ;;  %v872_v11 = vpack.c.bf16 %v460_v9, %v458_v7  ;;  %v524_v20 = vmul.f32 %v417_v8, %v417_v8  ;;  %v526_v21 = vmul.f32 %v460_v9, %v460_v9 }
  0xf1   : > { %v419_v14 = vpop.f32.mrf.mxu0  ;;  %v462_v15 = vpop.f32.mrf.mxu1 }
  0xf2   : > { %491 = vst [vmem:[%s1139_s9] sm:$0xff] %v871_v10  ;;  %492 = vst [vmem:[%s1139_s9 + $0x8] sm:$0xff] %v872_v11  ;;  %v495_v16 = vadd.f32 %v419_v14, %v415_v6  ;;  %v527_v17 = vmul.f32 %v419_v14, %v419_v14  ;;  %v509_v18 = vadd.f32 %v462_v15, %v458_v7 }
  0xf3   : > { %v529_v19 = vmul.f32 %v462_v15, %v462_v15  ;;  %v421_v22 = vpop.f32.mrf.mxu0  ;;  %v464_v23 = vpop.f32.mrf.mxu1 }
  0xf4   : > { %v496_v24 = vrot.slane %v495_v16, 4  ;;  %v531_v25 = vadd.f32 %v527_v17, %v523_v12  ;;  %v510_v26 = vrot.slane %v509_v18, 4  ;;  %v873_v28 = vpack.c.bf16 %v421_v22, %v419_v14 }
  0xf5   : > { %v545_v27 = vadd.f32 %v529_v19, %v525_v13  ;;  %v502_v29 = vadd.f32 %v421_v22, %v417_v8  ;;  %v528_v30 = vmul.f32 %v421_v22, %v421_v22  ;;  %v874_v31 = vpack.c.bf16 %v464_v23, %v462_v15 }
  0xf6   : > { %v497_v32 = vadd.f32 %v496_v24, %v495_v16  ;;  %v532_v33 = vrot.slane %v531_v25, 4  ;;  %v511_v34 = vadd.f32 %v510_v26, %v509_v18  ;;  %493 = vst [vmem:[%s1139_s9 + $0x10] sm:$0xff] %v873_v28  ;;  %v516_v38 = vadd.f32 %v464_v23, %v460_v9 }
  0xf7   : > { %v546_v35 = vrot.slane %v545_v27, 4  ;;  %v503_v36 = vrot.slane %v502_v29, 4  ;;  %v538_v37 = vadd.f32 %v528_v30, %v524_v20  ;;  %494 = vst [vmem:[%s1139_s9 + $0x18] sm:$0xff] %v874_v31  ;;  %v530_v39 = vmul.f32 %v464_v23, %v464_v23 }
  0xf8   : > { %v498_v40 = vrot.slane %v497_v32, 2  ;;  %v533_v41 = vadd.f32 %v532_v33, %v531_v25  ;;  %v512_v42 = vrot.slane %v511_v34, 2  ;;  %v517_v46 = vrot.slane %v516_v38, 4 }
  0xf9   : > { %v547_v43 = vadd.f32 %v546_v35, %v545_v27  ;;  %v504_v44 = vadd.f32 %v503_v36, %v502_v29  ;;  %v539_v45 = vrot.slane %v538_v37, 4  ;;  %v552_v47 = vadd.f32 %v530_v39, %v526_v21  ;;  %v620_v18 = vld [vmem:[%s1139_s9] sm:$0xff] (%p1102_p9)  ;;  %v622_v19 = vld [vmem:[%s1139_s9 + $0x8] sm:$0xff] (%p1102_p9) }
  0xfa   : > { %v499_v48 = vadd.f32 %v498_v40, %v497_v32  ;;  %v534_v49 = vrot.slane %v533_v41, 2  ;;  %v513_v50 = vadd.f32 %v512_v42, %v511_v34  ;;  %v518_v54 = vadd.f32 %v517_v46, %v516_v38  ;;  %621 = vst [vmem:[%s607_s30] sm:$0xff] (%p1102_p9), %v620_v18  ;;  %623 = vst [vmem:[%s607_s30 + $0x8] sm:$0xff] (%p1102_p9), %v622_v19 }
  0xfb   : > { %v548_v51 = vrot.slane %v547_v43, 2  ;;  %v505_v52 = vrot.slane %v504_v44, 2  ;;  %v540_v53 = vadd.f32 %v539_v45, %v538_v37  ;;  %v553_v55 = vrot.slane %v552_v47, 4 }
  0xfc   : > { %v500_v56 = vrot.slane %v499_v48, 1  ;;  %v535_v57 = vadd.f32 %v534_v49, %v533_v41  ;;  %v519_v61 = vrot.slane %v518_v54, 2  ;;  %v514_v1 = vrot.slane %v513_v50, 1 }
  0xfd   : > { %v549_v58 = vadd.f32 %v548_v51, %v547_v43  ;;  %v506_v59 = vadd.f32 %v505_v52, %v504_v44  ;;  %v541_v60 = vrot.slane %v540_v53, 2  ;;  %v554_v62 = vadd.f32 %v553_v55, %v552_v47  ;;  %v624_v20 = vld [vmem:[%s1139_s9 + $0x10] sm:$0xff] (%p1102_p9) }
  0xfe   : > { %v501_v63 = vadd.f32 %v500_v56, %v499_v48  ;;  %v536_v0 = vrot.slane %v535_v57, 1  ;;  %v520_v4 = vadd.f32 %v519_v61, %v518_v54  ;;  %v515_v12 = vadd.f32 %v514_v1, %v513_v50  ;;  %v626_v21 = vld [vmem:[%s1139_s9 + $0x18] sm:$0xff] (%p1102_p9)  ;;  %625 = vst [vmem:[%s607_s30 + $0x20] sm:$0xff] (%p1102_p9), %v624_v20 }
  0xff   : > { %v507_v2 = vrot.slane %v506_v59, 1  ;;  %v542_v3 = vadd.f32 %v541_v60, %v540_v53  ;;  %v555_v5 = vrot.slane %v554_v62, 2  ;;  %v550_v7 = vrot.slane %v549_v58, 1  ;;  %627 = vst [vmem:[%s607_s30 + $0x28] sm:$0xff] (%p1102_p9), %v626_v21 }
 0x100   : > { %v537_v6 = vadd.f32 %v536_v0, %v535_v57  ;;  %559 = vst [vmem:[%s329_s14] sm:$0xff] %v501_v63  ;;  %v521_v10 = vrot.slane %v520_v4, 1  ;;  %561 = vst [vmem:[%s329_s14 + $0x10] sm:$0xff] %v515_v12 }
 0x101   : > { %v508_v8 = vadd.f32 %v507_v2, %v506_v59  ;;  %v543_v9 = vrot.slane %v542_v3, 1  ;;  %v556_v11 = vadd.f32 %v555_v5, %v554_v62  ;;  %v551_v16 = vadd.f32 %v550_v7, %v549_v58 }
 0x102   : > { %563 = vst [vmem:[%s343_s23] sm:$0xff] %v537_v6  ;;  %v522_v14 = vadd.f32 %v521_v10, %v520_v4 }
 0x103   : > { %v544_v13 = vadd.f32 %v543_v9, %v542_v3  ;;  %560 = vst [vmem:[%s329_s14 + $0x8] sm:$0xff] %v508_v8  ;;  %v557_v15 = vrot.slane %v556_v11, 1  ;;  %565 = vst [vmem:[%s343_s23 + $0x10] sm:$0xff] %v551_v16  ;;  %599 = sbr.rel (!%p1102_p9) target bundleno = 264 (0x108), region = 36 }
 0x104   : > { %562 = vst [vmem:[%s329_s14 + $0x18] sm:$0xff] %v522_v14 }
 0x105   : > { %564 = vst [vmem:[%s343_s23 + $0x8] sm:$0xff] %v544_v13  ;;  %v558_v17 = vadd.f32 %v557_v15, %v556_v11 }
 0x107   : > { %566 = vst [vmem:[%s343_s23 + $0x18] sm:$0xff] %v558_v17 }
 0x108 PF: > { %s18_s20 = sadd.s32 1, %s1020_s20   ;;  %s1198_s15 = smov %s1004_s16 }
 0x109   : > { %p15_p9 = scmp.ge.s32.totalorder %s18_s20, 4   ;;  %s1199_s16 = smov %s1008_s17 }
 0x10a   : > { %s1200_s17 = smov %s1100_s27  ;;  %s1201_s18 = smov %s1016_s19 }
 0x10b   : > { %s1202_s19 = smov %s1204_s22  ;;  %17 = sbr.rel (!%p15_p9) target bundleno = 4 (0x4), region = 118 }
 0x110   :  { %683 = vsyncpa [#allocation3], 1 }
 0x111   :  { %685 = vsyncpa [#allocation3 + $0x1], 1 }

// kernel: _lambda_.10
= control target key start
LH: loop header
LB: loop body
LE: loop exit
PB: predicated region body
PF: predicated region fallthrough
CT: control target
= control target key end

     0   :  { %v40_v0 = vlaneseq  ;;  %s320_s0 = inlined_call_operand.vmem [shape: bf16[1,16,1024], index: 0, kind: input, shape index: {}]   ;;  %s321_s1 = inlined_call_operand.vmem [shape: f32[1,1024], index: 1, kind: input, shape index: {}]   ;;  %s322_s2 = inlined_call_operand.vmem [shape: f32[1,1024], index: 2, kind: input, shape index: {}]   ;;  %s323_s3 = inlined_call_operand.vmem [shape: bf16[1,16,1024], index: 3, kind: output, shape index: {}]  }
   0x1   :  { %v14_v1 = vld [vmem:[%s320_s0] sm:$0xff]  ;;  %v15_v5 = vld [vmem:[%s320_s0 + $0x8] sm:$0xff]  ;;  %v16_v6 = vld [vmem:[%s320_s0 + $0x10] sm:$0xff] }
   0x2   :  { %v22_v2 = vunpack.c.l.bf16 %v14_v1  ;;  %v23_v3 = vunpack.c.h.bf16 %v14_v1  ;;  %v41_v4 = vshrl.u32 %v40_v0, 7  ;;  %v17_v7 = vld [vmem:[%s320_s0 + $0x18] sm:$0xff]  ;;  %v38_v8 = vld [vmem:[%s321_s1] sm:$0xff]  ;;  %v24_v10 = vunpack.c.l.bf16 %v15_v5  ;;  %v19_v55 = vld [vmem:[%s320_s0 + $0x28] sm:$0xff] }
   0x3   :  { %v96_v9 = vld [vmem:[%s322_s2] sm:$0xff]  ;;  %v25_v11 = vunpack.c.h.bf16 %v15_v5  ;;  %v26_v12 = vunpack.c.l.bf16 %v16_v6  ;;  %v27_v13 = vunpack.c.h.bf16 %v16_v6  ;;  %v28_v20 = vunpack.c.l.bf16 %v17_v7  ;;  %v20_v60 = vld [vmem:[%s320_s0 + $0x30] sm:$0xff] }
   0x4   :  { %v42_v14 = vsub.s32 0, %v41_v4  ;;  %v46_v15 = vsub.s32 1, %v41_v4  ;;  %v50_v16 = vsub.s32 2, %v41_v4  ;;  %v54_v17 = vsub.s32 3, %v41_v4  ;;  %v18_v54 = vld [vmem:[%s320_s0 + $0x20] sm:$0xff] }
   0x5   :  { %v58_v18 = vsub.s32 4, %v41_v4  ;;  %v62_v19 = vsub.s32 5, %v41_v4  ;;  %v29_v21 = vunpack.c.h.bf16 %v17_v7  ;;  %v66_v44 = vsub.s32 6, %v41_v4 }
   0x6   :  { %v43_v22 = vrot.slane %v38_v8, %v42_v14  ;;  %v47_v23 = vrot.slane %v38_v8, %v46_v15  ;;  %v101_v24 = vrot.slane %v96_v9, %v42_v14  ;;  %v105_v25 = vrot.slane %v96_v9, %v46_v15 }
   0x7   :  { %v51_v26 = vrot.slane %v38_v8, %v50_v16  ;;  %v55_v27 = vrot.slane %v38_v8, %v54_v17  ;;  %v109_v28 = vrot.slane %v96_v9, %v50_v16  ;;  %v113_v29 = vrot.slane %v96_v9, %v54_v17 }
   0x8   :  { %v80_v30 = vmul.f32 %v43_v22, %v22_v2  ;;  %v81_v31 = vmul.f32 %v47_v23, %v23_v3  ;;  %v59_v32 = vrot.slane %v38_v8, %v58_v18  ;;  %v63_v33 = vrot.slane %v38_v8, %v62_v19 }
   0x9   :  { %v82_v34 = vmul.f32 %v51_v26, %v24_v10  ;;  %v83_v35 = vmul.f32 %v55_v27, %v25_v11  ;;  %v117_v36 = vrot.slane %v96_v9, %v58_v18  ;;  %v121_v37 = vrot.slane %v96_v9, %v62_v19 }
   0xa   :  { %v138_v38 = vadd.f32 %v101_v24, %v80_v30  ;;  %v139_v39 = vadd.f32 %v105_v25, %v81_v31  ;;  %v84_v40 = vmul.f32 %v59_v32, %v26_v12  ;;  %v85_v41 = vmul.f32 %v63_v33, %v27_v13  ;;  %v21_v13 = vld [vmem:[%s320_s0 + $0x38] sm:$0xff] }
   0xb   :  { %v140_v42 = vadd.f32 %v109_v28, %v82_v34  ;;  %v141_v43 = vadd.f32 %v113_v29, %v83_v35  ;;  %v70_v45 = vsub.s32 7, %v41_v4  ;;  %v67_v52 = vrot.slane %v38_v8, %v66_v44 }
   0xc   :  { %v154_v46 = vmax.f32 %v138_v38, 0.0  ;;  %v155_v47 = vmax.f32 %v139_v39, 0.0  ;;  %v142_v48 = vadd.f32 %v117_v36, %v84_v40  ;;  %v143_v49 = vadd.f32 %v121_v37, %v85_v41 }
   0xd   :  { %v156_v50 = vmax.f32 %v140_v42, 0.0  ;;  %v157_v51 = vmax.f32 %v141_v43, 0.0  ;;  %v71_v53 = vrot.slane %v38_v8, %v70_v45  ;;  %v125_v59 = vrot.slane %v96_v9, %v66_v44 }
   0xe   :  { %v238_v56 = vpack.c.bf16 %v155_v47, %v154_v46  ;;  %v158_v57 = vmax.f32 %v142_v48, 0.0  ;;  %v159_v58 = vmax.f32 %v143_v49, 0.0  ;;  %v86_v62 = vmul.f32 %v67_v52, %v28_v20 }
   0xf   :  { %v239_v61 = vpack.c.bf16 %v157_v51, %v156_v50  ;;  %v87_v63 = vmul.f32 %v71_v53, %v29_v21  ;;  %v129_v0 = vrot.slane %v96_v9, %v70_v45  ;;  %v30_v2 = vunpack.c.l.bf16 %v18_v54 }
  0x10   :  { %218 = vst [vmem:[%s323_s3] sm:$0xff] %v238_v56  ;;  %v240_v1 = vpack.c.bf16 %v159_v58, %v158_v57  ;;  %v31_v3 = vunpack.c.h.bf16 %v18_v54  ;;  %v32_v4 = vunpack.c.l.bf16 %v19_v55  ;;  %v144_v5 = vadd.f32 %v125_v59, %v86_v62 }
  0x11   :  { %219 = vst [vmem:[%s323_s3 + $0x8] sm:$0xff] %v239_v61  ;;  %v145_v6 = vadd.f32 %v129_v0, %v87_v63  ;;  %v33_v7 = vunpack.c.h.bf16 %v19_v55  ;;  %v34_v8 = vunpack.c.l.bf16 %v20_v60  ;;  %v88_v9 = vmul.f32 %v43_v22, %v30_v2 }
  0x12   :  { %220 = vst [vmem:[%s323_s3 + $0x10] sm:$0xff] %v240_v1  ;;  %v89_v10 = vmul.f32 %v47_v23, %v31_v3  ;;  %v90_v11 = vmul.f32 %v51_v26, %v32_v4  ;;  %v35_v12 = vunpack.c.h.bf16 %v20_v60  ;;  %v160_v14 = vmax.f32 %v144_v5, 0.0 }
  0x13   :  { %v161_v15 = vmax.f32 %v145_v6, 0.0  ;;  %v91_v16 = vmul.f32 %v55_v27, %v33_v7  ;;  %v92_v17 = vmul.f32 %v59_v32, %v34_v8  ;;  %v146_v18 = vadd.f32 %v101_v24, %v88_v9 }
  0x14   :  { %v147_v19 = vadd.f32 %v105_v25, %v89_v10  ;;  %v148_v20 = vadd.f32 %v109_v28, %v90_v11  ;;  %v93_v21 = vmul.f32 %v63_v33, %v35_v12  ;;  %v36_v35 = vunpack.c.l.bf16 %v21_v13 }
  0x15   :  { %v241_v30 = vpack.c.bf16 %v161_v15, %v160_v14  ;;  %v149_v31 = vadd.f32 %v113_v29, %v91_v16  ;;  %v150_v34 = vadd.f32 %v117_v36, %v92_v17  ;;  %v162_v22 = vmax.f32 %v146_v18, 0.0 }
  0x16   :  { %v163_v23 = vmax.f32 %v147_v19, 0.0  ;;  %v164_v26 = vmax.f32 %v148_v20, 0.0  ;;  %v151_v38 = vadd.f32 %v121_v37, %v93_v21  ;;  %v37_v27 = vunpack.c.h.bf16 %v21_v13 }
  0x17   :  { %221 = vst [vmem:[%s323_s3 + $0x18] sm:$0xff] %v241_v30  ;;  %v165_v39 = vmax.f32 %v149_v31, 0.0  ;;  %v166_v40 = vmax.f32 %v150_v34, 0.0  ;;  %v94_v32 = vmul.f32 %v67_v52, %v36_v35 }
  0x18   :  { %v242_v24 = vpack.c.bf16 %v163_v23, %v162_v22  ;;  %v167_v25 = vmax.f32 %v151_v38, 0.0  ;;  %v95_v33 = vmul.f32 %v71_v53, %v37_v27 }
  0x19   :  { %v243_v28 = vpack.c.bf16 %v165_v39, %v164_v26  ;;  %v152_v41 = vadd.f32 %v125_v59, %v94_v32 }
  0x1a   :  { %222 = vst [vmem:[%s323_s3 + $0x20] sm:$0xff] %v242_v24  ;;  %v244_v29 = vpack.c.bf16 %v167_v25, %v166_v40  ;;  %v153_v36 = vadd.f32 %v129_v0, %v95_v33 }
  0x1b   :  { %223 = vst [vmem:[%s323_s3 + $0x28] sm:$0xff] %v243_v28  ;;  %v168_v37 = vmax.f32 %v152_v41, 0.0 }
  0x1c   :  { %224 = vst [vmem:[%s323_s3 + $0x30] sm:$0xff] %v244_v29  ;;  %v169_v42 = vmax.f32 %v153_v36, 0.0 }
  0x1e   :  { %v245_v43 = vpack.c.bf16 %v169_v42, %v168_v37 }
  0x20   :  { %225 = vst [vmem:[%s323_s3 + $0x38] sm:$0xff] %v245_v43 }

// kernel: _lambda_.11
= control target key start
LH: loop header
LB: loop body
LE: loop exit
PB: predicated region body
PF: predicated region fallthrough
CT: control target
= control target key end

     0   :  { %10 = vsyncpa [#allocation3], 0  ;;  %s1245_s0 = inlined_call_operand.vmem [shape: bf16[4,32,256], index: 0, kind: input, shape index: {}]   ;;  %s1246_s1 = inlined_call_operand.hbm [shape: bf16[4,256,128], index: 1, kind: input, shape index: {}]   ;;  %s1247_s2 = inlined_call_operand.vmem [shape: bf16[4,32,128], index: 2, kind: output, shape index: {0}]   ;;  %s1248_s3 = inlined_call_operand.vmem [shape: f32[4,1,8,128], index: 3, kind: output, shape index: {1}]   ;;  %s1249_s4 = inlined_call_operand.vmem [shape: f32[4,1,8,128], index: 4, kind: output, shape index: {2}]  }
   0x1   :  { %12 = vsyncpa [#allocation3 + $0x1], 0  ;;  %s1117_s15 = smov 0   ;;  %s1119_s16 = smov 0  }
   0x2   :  { %s1121_s17 = smov 0   ;;  %s1123_s18 = smov 0  }
   0x3   :  { %s1125_s19 = smov 0   ;;  %s1127_s20 = smov 0  }
   0x4 LB: > { %s827_s21 = sadd.s32 4294967295, %s1087_s20   ;;  %s37_s22 = sadd.s32 1, %s1083_s19  ;;  %s1087_s20 = sphi %s1127_s20, %s18_s20   ;;  %s1083_s19 = sphi %s1125_s19, %s1257_s19   ;;  %s1079_s18 = sphi %s1123_s18, %s1256_s18   ;;  %s1075_s17 = sphi %s1121_s17, %s1255_s17   ;;  %s1071_s16 = sphi %s1119_s16, %s1254_s16   ;;  %s1067_s15 = sphi %s1117_s15, %s1253_s15  }
   0x5   : > { %p39_p0 = scmp.ge.s32.totalorder %s37_s22, 4  ;;  %s74_s23 = sadd.s32 1, %s1075_s17 }
   0x6   : > { %p81_p1 = scmp.ne.s32.totalorder %s1075_s17, %s1071_s16  ;;  %p82_p2 = scmp.eq.s32.totalorder %s1087_s20, 0 }
   0x7   : > { %s1259_s22 = smov (%p39_p0, %s37_s22), 0  ;;  %p87_p4 = scmp.ne.s32.totalorder %s1071_s16, %s1067_s15 }
   0x8   : > { %p1153_p3 = por %p82_p2, %p81_p1  ;;  %s69_s25 = ssub.s32 %s1083_s19, %s1259_s22 }
   0x9   : > { %p88_p5 = scmp.eq.s32.totalorder %s827_s21, 0  ;;  %p72_p6 = scmp.eq.s32.totalorder %s69_s25, 0 }
   0xa   : > { %p936_p8 = scmp.lt.s32.totalorder %s1087_s20, 4  ;;  %s215_s28 = sand.u32 1, %s1075_s17  }
   0xb   : > { %p1160_p7 = por %p88_p5, %p87_p4  ;;  %s868_s29 = sshll.u32 %s1083_s19, 11 }
   0xc   : > { %s1166_s27 = scalar_select %p72_p6, %s1075_s17, %s74_s23  }
   0xd   : > { %s831_s30 = sshll.u32 %s215_s28, 7  ;;  %s226_s7 = scalar_lea.hbm %s1246_s1, %s868_s29 }
   0xe   : > { %s219_s8 = scalar_lea.vmem [#allocation2], %s831_s30  ;;  %p1175_p9 = pnand %p936_p8, %p1153_p3 }
   0xf   : > { %s227_s9 = sshll.u32 %s219_s8, 4  ;;  %s216_s11 = scalar_lea.sflag [#allocation3], %s215_s28  ;;  %s228_s9 = int_to_ptr.vmem [resolvable:$true] %s227_s9 }
  0x10   : > { %p1011_p10 = pneg %p1175_p9  ;;  %s1022_s12 = scalar_lea.vmem %s228_s9, 2048 }
  0x11   : > { %p1023_p11 = scmp.ne.s32.totalorder %s228_s9, %s1022_s12  ;;  %s1089_s13 = smov [#allocation2]  }
  0x12   : > { %s1027_s14 = sshll.u32 %s1089_s13, 4  ;;  %s1028_s14 = int_to_ptr.vmem [resolvable:$false] %s1027_s14 }
  0x13   : > { %p1025_p12 = pnand %p1023_p11, %p1011_p10  ;;  %s1029_s15 = scalar_lea.vmem %s1028_s14, 4096 }
  0x14   : > { %p1030_p0 = scmp.lt.s32.totalorder %s228_s9, %s1028_s14  ;;  %p1031_p1 = scmp.lt.s32.totalorder %s1029_s15, %s1022_s12 }
  0x15   : > { %p1026_p13 = pneg %p1025_p12 }
  0x16   : > { %p1032_p2 = por %p1031_p1, %p1030_p0 }
  0x18   : > { %p1033_p3 = pnand %p1032_p2, %p1026_p13 }
  0x1a   : > { %1036 = shalt.err (!%p1033_p3)
}
  0x1b   : > { %s1090_s21 = smov 64   ;;  %s1091_s23 = smov 4  }
  0x1c   : > { %935 = dma.hbm_to_vmem [thread:$0]  (!%p1175_p9), %s226_s7, 2048, %s228_s9, %s216_s11, %s1090_s21, %s1090_s21, %s1091_s23  }
  0x1d   : > { %p834_p4 = scmp.ge.s32.totalorder %s1087_s20, 1  ;;  %p235_p5 = scmp.lt.s32.totalorder %s1087_s20, 5 }
  0x1f   : > { %p236_p6 = pnand %p834_p4, %p235_p5 }
  0x20   : > { %s241_s24 = sand.u32 (!%p236_p6), 1, %s1071_s16  }
  0x21   : > { %239 = sbr.rel (%p236_p6) target bundleno = 294 (0x126), region = 28  ;;  %s835_s25 = sshll.u32 (!%p236_p6), %s241_s24, 7 }
  0x22   : > { %s242_s28 = scalar_lea.sflag (!%p236_p6), [#allocation3], %s241_s24  ;;  %s1186_s29 = scalar_lea.vmem (!%p236_p6), [#allocation2], %s835_s25 }
  0x26   : > { %1062 = dma.done.wait (%p1160_p7), %s242_s28, 2048  }
  0x27   : > { %1064 = vsyncadd (%p1160_p7), %s242_s28, 4294965248  ;;  %v987_v0 = vld [vmem:[%s1186_s29 + $0x78] sm:$0xff]   ;;  %v989_v2 = vld [vmem:[%s1186_s29 + $0x70] sm:$0xff]   ;;  %p308_p8 = scmp.lt.s32.totalorder %s1079_s18, 3 }
  0x28   : > { %v988_v1 = vld [vmem:[%s1186_s29 + $0x38] sm:$0xff]   ;;  %886 = vmatprep.subr.bf16.mxu0 %v987_v0  ;;  %914 = vmatprep.subr.bf16.mxu1 %v987_v0  ;;  %v990_v3 = vld [vmem:[%s1186_s29 + $0x30] sm:$0xff]   ;;  %v991_v4 = vld [vmem:[%s1186_s29 + $0x68] sm:$0xff]  }
  0x29   : > { %887 = vmatpush3.bf16.msra.mxu0 %v988_v1  ;;  %922 = vmatpush3.bf16.msra.mxu1 %v988_v1  ;;  %v992_v5 = vld [vmem:[%s1186_s29 + $0x28] sm:$0xff]   ;;  %s1261_s18 = smov (!%p308_p8, %s1079_s18), 3  ;;  %v993_v6 = vld [vmem:[%s1186_s29 + $0x60] sm:$0xff]   ;;  %v995_v8 = vld [vmem:[%s1186_s29 + $0x58] sm:$0xff]  }
  0x2a   : > { %888 = vmatprep.subr.bf16.mxu0 %v989_v2  ;;  %915 = vmatprep.subr.bf16.mxu1 %v989_v2  ;;  %v994_v7 = vld [vmem:[%s1186_s29 + $0x20] sm:$0xff]   ;;  %s869_s26 = sshll.u32 %s1261_s18, 5  ;;  %v996_v9 = vld [vmem:[%s1186_s29 + $0x18] sm:$0xff]   ;;  %v997_v10 = vld [vmem:[%s1186_s29 + $0x50] sm:$0xff]   ;;  %s870_s7 = sshll.u32 %s1261_s18, 4 }
  0x2b   : > { %s316_s6 = scalar_lea.vmem %s1245_s0, %s869_s26  ;;  %v998_v13 = vld [vmem:[%s1186_s29 + $0x10] sm:$0xff]   ;;  %v999_v14 = vld [vmem:[%s1186_s29 + $0x48] sm:$0xff]   ;;  %v1001_v16 = vld [vmem:[%s1186_s29 + $0x40] sm:$0xff]   ;;  %s329_s10 = scalar_lea.vmem %s1247_s2, %s870_s7 }
  0x2c   : > { %v1005_v11 = vld [vmem:[%s316_s6 + $0x4] ss:$8 sps:$4 sm:$0xff]   ;;  %v1008_v12 = vld [vmem:[%s316_s6 + $0x14] ss:$8 sps:$4 sm:$0xff]   ;;  %v1003_v18 = vld [vmem:[%s316_s6] ss:$8 sps:$4 sm:$0xff]  }
  0x2d   : > { %889 = vmatpush3.bf16.msra.mxu0 %v990_v3  ;;  %923 = vmatpush3.bf16.msra.mxu1 %v990_v3  ;;  %v1000_v15 = vld [vmem:[%s1186_s29 + $0x8] sm:$0xff]   ;;  %v1002_v17 = vld [vmem:[%s1186_s29] sm:$0xff]   ;;  %v1006_v19 = vld [vmem:[%s316_s6 + $0x10] ss:$8 sps:$4 sm:$0xff]   ;;  %s840_s11 = sshll.u32 %s1261_s18, 3 }
  0x2e   : > { %890 = vmatprep.subr.bf16.mxu0 %v991_v4  ;;  %916 = vmatprep.subr.bf16.mxu1 %v991_v4  ;;  %s340_s14 = scalar_lea.vmem %s1248_s3, %s840_s11  ;;  %s350_s23 = scalar_lea.vmem %s1249_s4, %s840_s11 }
  0x2f   : > { %536 = vmatprep.mubr.bf16.mxu0 %v1005_v11  ;;  %544 = vmatprep.mubr.bf16.mxu1 %v1008_v12 }
  0x31   : > { %891 = vmatpush3.bf16.msra.mxu0 %v992_v5  ;;  %924 = vmatpush3.bf16.msra.mxu1 %v992_v5 }
  0x32   : > { %892 = vmatprep.subr.bf16.mxu0 %v993_v6  ;;  %917 = vmatprep.subr.bf16.mxu1 %v993_v6 }
  0x35   : > { %893 = vmatpush3.bf16.msra.mxu0 %v994_v7  ;;  %925 = vmatpush3.bf16.msra.mxu1 %v994_v7 }
  0x36   : > { %894 = vmatprep.subr.bf16.mxu0 %v995_v8  ;;  %918 = vmatprep.subr.bf16.mxu1 %v995_v8 }
  0x39   : > { %895 = vmatpush3.bf16.msra.mxu0 %v996_v9  ;;  %926 = vmatpush3.bf16.msra.mxu1 %v996_v9 }
  0x3a   : > { %896 = vmatprep.subr.bf16.mxu0 %v997_v10  ;;  %919 = vmatprep.subr.bf16.mxu1 %v997_v10 }
  0x3d   : > { %897 = vmatpush3.bf16.msra.mxu0 %v998_v13  ;;  %927 = vmatpush3.bf16.msra.mxu1 %v998_v13 }
  0x3e   : > { %898 = vmatprep.subr.bf16.mxu0 %v999_v14  ;;  %920 = vmatprep.subr.bf16.mxu1 %v999_v14 }
  0x41   : > { %899 = vmatpush3.bf16.msra.mxu0 %v1000_v15  ;;  %928 = vmatpush3.bf16.msra.mxu1 %v1000_v15 }
  0x42   : > { %900 = vmatprep.subr.bf16.mxu0 %v1001_v16  ;;  %921 = vmatprep.subr.bf16.mxu1 %v1001_v16 }
  0x45   : > { %901 = vmatpush3.bf16.msra.mxu0 %v1002_v17  ;;  %929 = vmatpush3.bf16.msra.mxu1 %v1002_v17 }
  0x48   : > { %537 = vmatmul.mubr.bf16.vlgmr.msra.gmra.mxu0 %v1003_v18  ;;  %545 = vmatmul.mubr.bf16.vlgmr.msra.gmra.mxu1 %v1006_v19 }
 0x108   : > { %v902_v20 = vpop.f32.mrf.mxu0  ;;  %v908_v21 = vpop.f32.mrf.mxu1 }
 0x10a   : > { %v903_v22 = vpop.f32.mrf.mxu0  ;;  %v909_v23 = vpop.f32.mrf.mxu1 }
 0x10b   : > { %v904_v24 = vadd.f32 %v903_v22, %v902_v20  ;;  %v910_v29 = vadd.f32 %v909_v23, %v908_v21 }
 0x10c   : > { %v905_v25 = vpop.f32.mrf.mxu0  ;;  %v911_v26 = vpop.f32.mrf.mxu1 }
 0x10d   : > { %v582_v32 = vmul.f32 %v904_v24, %v904_v24  ;;  %v584_v37 = vmul.f32 %v910_v29, %v910_v29 }
 0x10e   : > { %v906_v27 = vpop.f32.mrf.mxu0  ;;  %v912_v28 = vpop.f32.mrf.mxu1 }
 0x10f   : > { %v907_v30 = vadd.f32 %v906_v27, %v905_v25  ;;  %v913_v31 = vadd.f32 %v912_v28, %v911_v26 }
 0x111   : > { %v878_v33 = vpack.c.bf16 %v907_v30, %v904_v24  ;;  %v573_v34 = vadd.f32 %v907_v30, %v904_v24  ;;  %v583_v35 = vmul.f32 %v907_v30, %v907_v30  ;;  %v883_v36 = vpack.c.bf16 %v913_v31, %v910_v29 }
 0x112   : > { %v585_v41 = vmul.f32 %v913_v31, %v913_v31 }
 0x113   : > { %879 = vst [vmem:[%s329_s10] sm:$0xff] %v878_v33   ;;  %v586_v38 = vadd.f32 %v583_v35, %v582_v32  ;;  %885 = vst [vmem:[%s329_s10 + $0x8] sm:$0xff] %v883_v36   ;;  %v574_v39 = vadd.f32 %v910_v29, %v573_v34 }
 0x115   : > { %v575_v40 = vadd.f32 %v913_v31, %v574_v39  ;;  %v587_v42 = vadd.f32 %v586_v38, %v584_v37 }
 0x117   : > { %v576_v43 = vrot.slane %v575_v40, 4  ;;  %v588_v44 = vadd.f32 %v587_v42, %v585_v41 }
 0x119   : > { %v577_v45 = vadd.f32 %v576_v43, %v575_v40  ;;  %v589_v46 = vrot.slane %v588_v44, 4 }
 0x11b   : > { %v578_v47 = vrot.slane %v577_v45, 2  ;;  %v590_v48 = vadd.f32 %v589_v46, %v588_v44 }
 0x11d   : > { %v579_v49 = vadd.f32 %v578_v47, %v577_v45  ;;  %v591_v50 = vrot.slane %v590_v48, 2 }
 0x11f   : > { %v580_v51 = vrot.slane %v579_v49, 1  ;;  %v592_v52 = vadd.f32 %v591_v50, %v590_v48 }
 0x121   : > { %v581_v53 = vadd.f32 %v580_v51, %v579_v49  ;;  %v593_v54 = vrot.slane %v592_v52, 1 }
 0x123   : > { %v594_v55 = vadd.f32 %v593_v54, %v592_v52  ;;  %595 = vst [vmem:[%s340_s14] sm:$0xff] %v581_v53 }
 0x125   : > { %596 = vst [vmem:[%s350_s23] sm:$0xff] %v594_v55 }
 0x126 PF: > { %s18_s20 = sadd.s32 1, %s1087_s20   ;;  %s1253_s15 = smov %s1071_s16 }
 0x127   : > { %p15_p7 = scmp.ge.s32.totalorder %s18_s20, 6   ;;  %s1254_s16 = smov %s1075_s17 }
 0x128   : > { %s1255_s17 = smov %s1166_s27  ;;  %s1256_s18 = smov %s1083_s19 }
 0x129   : > { %s1257_s19 = smov %s1259_s22  ;;  %17 = sbr.rel (!%p15_p7) target bundleno = 4 (0x4), region = 95 }
 0x12e   :  { %685 = vsyncpa [#allocation3], 1 }
 0x12f   :  { %687 = vsyncpa [#allocation3 + $0x1], 1 }

// kernel: _lambda_.12
= control target key start
LH: loop header
LB: loop body
LE: loop exit
PB: predicated region body
PF: predicated region fallthrough
CT: control target
= control target key end

     0   :  { %s462_s12 = smov 0   ;;  %s464_s13 = smov 0   ;;  %s501_s0 = inlined_call_operand.vmem [shape: bf16[4,32,128], index: 0, kind: input, shape index: {}]   ;;  %s502_s1 = inlined_call_operand.vmem [shape: f32[1,128], index: 1, kind: input, shape index: {}]   ;;  %s503_s2 = inlined_call_operand.vmem [shape: f32[1,128], index: 2, kind: input, shape index: {}]   ;;  %s504_s3 = inlined_call_operand.vmem [shape: bf16[4,32,128], index: 3, kind: output, shape index: {}]  }
   0x1   :  { %s466_s14 = smov 0  }
   0x2 LB: > { %s25_s15 = sadd.s32 1, %s436_s13  ;;  %p355_p0 = scmp.ge.s32.totalorder %s440_s14, 1  ;;  %s440_s14 = sphi %s466_s14, %s13_s14   ;;  %s436_s13 = sphi %s464_s13, %s506_s13   ;;  %s432_s12 = sphi %s462_s12, %s505_s12  }
   0x3   : > { %p27_p1 = scmp.ge.s32.totalorder %s25_s15, 4  ;;  %p158_p2 = scmp.lt.s32.totalorder %s440_s14, 5 }
   0x5   : > { %s508_s15 = smov (%p27_p1, %s25_s15), 0  ;;  %p159_p3 = pnand %p355_p0, %p158_p2 }
   0x6   : > { %p191_p4 = scmp.lt.s32.totalorder (!%p159_p3), %s432_s12, 3 }
   0x7   : > { %162 = sbr.rel (%p159_p3) target bundleno = 27 (0x1b), region = 32 }
   0xc   : > { %s510_s12 = smov (!%p191_p4, %s432_s12), 3  ;;  %v360_v2 = vld [vmem:[%s502_s1] ss:$0 sm:$0xff] }
   0xd   : > { %s368_s16 = sshll.u32 %s510_s12, 4  ;;  %v361_v7 = vld [vmem:[%s503_s2] ss:$0 sm:$0xff] }
   0xe   : > { %s198_s19 = scalar_lea.vmem %s501_s0, %s368_s16  ;;  %s208_s26 = scalar_lea.vmem %s504_s3, %s368_s16 }
   0xf   : > { %v375_v0 = vld [vmem:[%s198_s19] sm:$0xff]   ;;  %v392_v1 = vld [vmem:[%s198_s19 + $0x8] sm:$0xff]  }
  0x10   : > { %v376_v3 = vunpack.c.l.bf16 %v375_v0  ;;  %v377_v4 = vunpack.c.h.bf16 %v375_v0  ;;  %v380_v5 = vunpack.c.l.bf16 %v392_v1  ;;  %v381_v6 = vunpack.c.h.bf16 %v392_v1 }
  0x12   : > { %v225_v8 = vmul.f32 %v376_v3, %v360_v2  ;;  %v226_v9 = vmul.f32 %v377_v4, %v360_v2  ;;  %v227_v10 = vmul.f32 %v380_v5, %v360_v2  ;;  %v228_v11 = vmul.f32 %v381_v6, %v360_v2 }
  0x14   : > { %v236_v12 = vadd.f32 %v361_v7, %v225_v8  ;;  %v237_v13 = vadd.f32 %v361_v7, %v226_v9  ;;  %v238_v14 = vadd.f32 %v361_v7, %v227_v10  ;;  %v239_v15 = vadd.f32 %v361_v7, %v228_v11 }
  0x16   : > { %v240_v16 = vmax.f32 %v236_v12, 0.0  ;;  %v241_v17 = vmax.f32 %v237_v13, 0.0  ;;  %v242_v18 = vmax.f32 %v238_v14, 0.0  ;;  %v243_v19 = vmax.f32 %v239_v15, 0.0 }
  0x18   : > { %v385_v20 = vpack.c.bf16 %v241_v17, %v240_v16  ;;  %v390_v21 = vpack.c.bf16 %v243_v19, %v242_v18 }
  0x1a   : > { %386 = vst [vmem:[%s208_s26] sm:$0xff] %v385_v20   ;;  %393 = vst [vmem:[%s208_s26 + $0x8] sm:$0xff] %v390_v21  }
  0x1b PF: > { %s13_s14 = sadd.s32 1, %s440_s14   ;;  %s505_s12 = smov %s436_s13 }
  0x1c   : > { %p10_p5 = scmp.ge.s32.totalorder %s13_s14, 6   ;;  %s506_s13 = smov %s508_s15 }
  0x1e   :  { %12 = sbr.rel (!%p10_p5) target bundleno = 2 (0x2), region = 62 }

// kernel: _lambda_.14
= control target key start
LH: loop header
LB: loop body
LE: loop exit
PB: predicated region body
PF: predicated region fallthrough
CT: control target
= control target key end

     0   :  { %s672_s12 = smov 0   ;;  %s674_s13 = smov 0   ;;  %s774_s0 = inlined_call_operand.vmem [shape: bf16[4,128,128], index: 0, kind: input, shape index: {}]   ;;  %s775_s1 = inlined_call_operand.vmem [shape: f32[1,128], index: 1, kind: input, shape index: {}]   ;;  %s776_s2 = inlined_call_operand.vmem [shape: f32[1,128], index: 2, kind: input, shape index: {}]   ;;  %s777_s3 = inlined_call_operand.vmem [shape: bf16[4,128,128], index: 3, kind: output, shape index: {}]  }
   0x1   :  { %s676_s14 = smov 0  }
   0x2 LB: > { %s25_s15 = sadd.s32 1, %s646_s13  ;;  %p475_p0 = scmp.ge.s32.totalorder %s650_s14, 1  ;;  %s650_s14 = sphi %s676_s14, %s13_s14   ;;  %s646_s13 = sphi %s674_s13, %s779_s13   ;;  %s642_s12 = sphi %s672_s12, %s778_s12  }
   0x3   : > { %p27_p1 = scmp.ge.s32.totalorder %s25_s15, 4  ;;  %p158_p2 = scmp.lt.s32.totalorder %s650_s14, 5 }
   0x5   : > { %s781_s15 = smov (%p27_p1, %s25_s15), 0  ;;  %p159_p3 = pnand %p475_p0, %p158_p2 }
   0x6   : > { %p191_p4 = scmp.lt.s32.totalorder (!%p159_p3), %s642_s12, 3 }
   0x7   : > { %162 = sbr.rel (%p159_p3) target bundleno = 38 (0x26), region = 32 }
   0xc   : > { %s783_s12 = smov (!%p191_p4, %s642_s12), 3  ;;  %v703_v0 = vld [vmem:[%s775_s1] ss:$0 sm:$0xff] }
   0xd   : > { %s500_s16 = sshll.u32 %s783_s12, 6  ;;  %v712_v9 = vld [vmem:[%s776_s2] ss:$0 sm:$0xff] }
   0xe   : > { %s698_s19 = scalar_lea.vmem %s774_s0, %s500_s16  ;;  %s737_s26 = scalar_lea.vmem %s777_s3, %s500_s16 }
   0xf   : > { %v519_v1 = vld [vmem:[%s698_s19] sm:$0xff]   ;;  %v590_v2 = vld [vmem:[%s698_s19 + $0x8] sm:$0xff]   ;;  %v591_v3 = vld [vmem:[%s698_s19 + $0x10] sm:$0xff]  }
  0x10   : > { %v520_v4 = vunpack.c.l.bf16 %v519_v1  ;;  %v521_v5 = vunpack.c.h.bf16 %v519_v1  ;;  %v524_v6 = vunpack.c.l.bf16 %v590_v2  ;;  %v525_v7 = vunpack.c.h.bf16 %v590_v2  ;;  %v592_v8 = vld [vmem:[%s698_s19 + $0x18] sm:$0xff]   ;;  %v593_v30 = vld [vmem:[%s698_s19 + $0x20] sm:$0xff]   ;;  %v594_v35 = vld [vmem:[%s698_s19 + $0x28] sm:$0xff]  }
  0x11   : > { %v528_v10 = vunpack.c.l.bf16 %v591_v3  ;;  %v529_v11 = vunpack.c.h.bf16 %v591_v3  ;;  %v532_v12 = vunpack.c.l.bf16 %v592_v8  ;;  %v533_v13 = vunpack.c.h.bf16 %v592_v8  ;;  %v595_v40 = vld [vmem:[%s698_s19 + $0x30] sm:$0xff]   ;;  %v596_v45 = vld [vmem:[%s698_s19 + $0x38] sm:$0xff]  }
  0x12   : > { %v249_v14 = vmul.f32 %v520_v4, %v703_v0  ;;  %v250_v15 = vmul.f32 %v521_v5, %v703_v0  ;;  %v251_v16 = vmul.f32 %v524_v6, %v703_v0  ;;  %v252_v17 = vmul.f32 %v525_v7, %v703_v0 }
  0x13   : > { %v253_v18 = vmul.f32 %v528_v10, %v703_v0  ;;  %v254_v19 = vmul.f32 %v529_v11, %v703_v0  ;;  %v255_v20 = vmul.f32 %v532_v12, %v703_v0  ;;  %v256_v21 = vmul.f32 %v533_v13, %v703_v0 }
  0x14   : > { %v272_v22 = vadd.f32 %v712_v9, %v249_v14  ;;  %v273_v23 = vadd.f32 %v712_v9, %v250_v15  ;;  %v274_v24 = vadd.f32 %v712_v9, %v251_v16  ;;  %v275_v25 = vadd.f32 %v712_v9, %v252_v17 }
  0x15   : > { %v276_v26 = vadd.f32 %v712_v9, %v253_v18  ;;  %v277_v27 = vadd.f32 %v712_v9, %v254_v19  ;;  %v278_v28 = vadd.f32 %v712_v9, %v255_v20  ;;  %v279_v29 = vadd.f32 %v712_v9, %v256_v21 }
  0x16   : > { %v288_v31 = vmax.f32 %v272_v22, 0.0  ;;  %v289_v32 = vmax.f32 %v273_v23, 0.0  ;;  %v290_v33 = vmax.f32 %v274_v24, 0.0  ;;  %v291_v34 = vmax.f32 %v275_v25, 0.0 }
  0x17   : > { %v292_v36 = vmax.f32 %v276_v26, 0.0  ;;  %v293_v37 = vmax.f32 %v277_v27, 0.0  ;;  %v294_v38 = vmax.f32 %v278_v28, 0.0  ;;  %v295_v39 = vmax.f32 %v279_v29, 0.0 }
  0x18   : > { %v553_v41 = vpack.c.bf16 %v289_v32, %v288_v31  ;;  %v558_v42 = vpack.c.bf16 %v291_v34, %v290_v33  ;;  %v536_v43 = vunpack.c.l.bf16 %v593_v30  ;;  %v537_v44 = vunpack.c.h.bf16 %v593_v30 }
  0x19   : > { %v563_v46 = vpack.c.bf16 %v293_v37, %v292_v36  ;;  %v568_v47 = vpack.c.bf16 %v295_v39, %v294_v38  ;;  %v540_v48 = vunpack.c.l.bf16 %v594_v35  ;;  %v541_v49 = vunpack.c.h.bf16 %v594_v35 }
  0x1a   : > { %554 = vst [vmem:[%s737_s26] sm:$0xff] %v553_v41   ;;  %597 = vst [vmem:[%s737_s26 + $0x8] sm:$0xff] %v558_v42   ;;  %v257_v50 = vmul.f32 %v536_v43, %v703_v0  ;;  %v258_v51 = vmul.f32 %v537_v44, %v703_v0  ;;  %v544_v52 = vunpack.c.l.bf16 %v595_v40  ;;  %v545_v53 = vunpack.c.h.bf16 %v595_v40 }
  0x1b   : > { %598 = vst [vmem:[%s737_s26 + $0x10] sm:$0xff] %v563_v46   ;;  %599 = vst [vmem:[%s737_s26 + $0x18] sm:$0xff] %v568_v47   ;;  %v259_v54 = vmul.f32 %v540_v48, %v703_v0  ;;  %v260_v55 = vmul.f32 %v541_v49, %v703_v0  ;;  %v548_v56 = vunpack.c.l.bf16 %v596_v45  ;;  %v549_v57 = vunpack.c.h.bf16 %v596_v45 }
  0x1c   : > { %v280_v58 = vadd.f32 %v712_v9, %v257_v50  ;;  %v281_v59 = vadd.f32 %v712_v9, %v258_v51  ;;  %v261_v60 = vmul.f32 %v544_v52, %v703_v0  ;;  %v262_v61 = vmul.f32 %v545_v53, %v703_v0 }
  0x1d   : > { %v282_v62 = vadd.f32 %v712_v9, %v259_v54  ;;  %v283_v63 = vadd.f32 %v712_v9, %v260_v55  ;;  %v263_v1 = vmul.f32 %v548_v56, %v703_v0  ;;  %v264_v2 = vmul.f32 %v549_v57, %v703_v0 }
  0x1e   : > { %v296_v3 = vmax.f32 %v280_v58, 0.0  ;;  %v297_v4 = vmax.f32 %v281_v59, 0.0  ;;  %v284_v5 = vadd.f32 %v712_v9, %v261_v60  ;;  %v285_v6 = vadd.f32 %v712_v9, %v262_v61 }
  0x1f   : > { %v298_v7 = vmax.f32 %v282_v62, 0.0  ;;  %v299_v8 = vmax.f32 %v283_v63, 0.0  ;;  %v286_v10 = vadd.f32 %v712_v9, %v263_v1  ;;  %v287_v11 = vadd.f32 %v712_v9, %v264_v2 }
  0x20   : > { %v573_v12 = vpack.c.bf16 %v297_v4, %v296_v3  ;;  %v300_v13 = vmax.f32 %v284_v5, 0.0  ;;  %v301_v14 = vmax.f32 %v285_v6, 0.0 }
  0x21   : > { %v578_v15 = vpack.c.bf16 %v299_v8, %v298_v7  ;;  %v302_v0 = vmax.f32 %v286_v10, 0.0  ;;  %v303_v16 = vmax.f32 %v287_v11, 0.0 }
  0x22   : > { %600 = vst [vmem:[%s737_s26 + $0x20] sm:$0xff] %v573_v12   ;;  %v583_v17 = vpack.c.bf16 %v301_v14, %v300_v13 }
  0x23   : > { %601 = vst [vmem:[%s737_s26 + $0x28] sm:$0xff] %v578_v15   ;;  %v588_v18 = vpack.c.bf16 %v303_v16, %v302_v0 }
  0x24   : > { %602 = vst [vmem:[%s737_s26 + $0x30] sm:$0xff] %v583_v17  }
  0x25   : > { %603 = vst [vmem:[%s737_s26 + $0x38] sm:$0xff] %v588_v18  }
  0x26 PF: > { %s13_s14 = sadd.s32 1, %s650_s14   ;;  %s778_s12 = smov %s646_s13 }
  0x27   : > { %p10_p5 = scmp.ge.s32.totalorder %s13_s14, 6   ;;  %s779_s13 = smov %s781_s15 }
  0x29   :  { %12 = sbr.rel (!%p10_p5) target bundleno = 2 (0x2), region = 62 }

// kernel: _lambda_.13
= control target key start
LH: loop header
LB: loop body
LE: loop exit
PB: predicated region body
PF: predicated region fallthrough
CT: control target
= control target key end

     0   :  { %10 = vsyncpa [#allocation3], 0  ;;  %s1444_s0 = inlined_call_operand.vmem [shape: bf16[4,128,128], index: 0, kind: input, shape index: {}]   ;;  %s1445_s1 = inlined_call_operand.hbm [shape: bf16[4,128,128], index: 1, kind: input, shape index: {}]   ;;  %s1446_s2 = inlined_call_operand.vmem [shape: bf16[4,128,128], index: 2, kind: output, shape index: {0}]   ;;  %s1447_s3 = inlined_call_operand.vmem [shape: f32[4,1,8,128], index: 3, kind: output, shape index: {1}]   ;;  %s1448_s4 = inlined_call_operand.vmem [shape: f32[4,1,8,128], index: 4, kind: output, shape index: {2}]  }
   0x1   :  { %12 = vsyncpa [#allocation3 + $0x1], 0  ;;  %s1301_s15 = smov 0   ;;  %s1303_s16 = smov 0  }
   0x2   :  { %s1305_s17 = smov 0   ;;  %s1307_s18 = smov 0  }
   0x3   :  { %s1309_s19 = smov 0   ;;  %s1311_s20 = smov 0  }
   0x4 LB: > { %s941_s21 = sadd.s32 4294967295, %s1271_s20   ;;  %s37_s22 = sadd.s32 1, %s1267_s19  ;;  %s1271_s20 = sphi %s1311_s20, %s18_s20   ;;  %s1267_s19 = sphi %s1309_s19, %s1456_s19   ;;  %s1263_s18 = sphi %s1307_s18, %s1455_s18   ;;  %s1259_s17 = sphi %s1305_s17, %s1454_s17   ;;  %s1255_s16 = sphi %s1303_s16, %s1453_s16   ;;  %s1251_s15 = sphi %s1301_s15, %s1452_s15  }
   0x5   : > { %p39_p0 = scmp.ge.s32.totalorder %s37_s22, 4  ;;  %s74_s23 = sadd.s32 1, %s1259_s17 }
   0x6   : > { %p81_p1 = scmp.ne.s32.totalorder %s1259_s17, %s1255_s16  ;;  %p82_p2 = scmp.eq.s32.totalorder %s1271_s20, 0 }
   0x7   : > { %s1458_s22 = smov (%p39_p0, %s37_s22), 0  ;;  %p87_p4 = scmp.ne.s32.totalorder %s1255_s16, %s1251_s15 }
   0x8   : > { %p1337_p3 = por %p82_p2, %p81_p1  ;;  %s69_s25 = ssub.s32 %s1267_s19, %s1458_s22 }
   0x9   : > { %p88_p5 = scmp.eq.s32.totalorder %s941_s21, 0  ;;  %p72_p6 = scmp.eq.s32.totalorder %s69_s25, 0 }
   0xa   : > { %p1126_p8 = scmp.lt.s32.totalorder %s1271_s20, 4  ;;  %s214_s28 = sand.u32 1, %s1259_s17  }
   0xb   : > { %p1344_p7 = por %p88_p5, %p87_p4  ;;  %s990_s29 = sshll.u32 %s1267_s19, 10 }
   0xc   : > { %s1350_s27 = scalar_select %p72_p6, %s1259_s17, %s74_s23  }
   0xd   : > { %s945_s30 = sshll.u32 %s214_s28, 6  ;;  %s225_s7 = scalar_lea.hbm %s1445_s1, %s990_s29 }
   0xe   : > { %s218_s8 = scalar_lea.vmem [#allocation2], %s945_s30  ;;  %p1359_p9 = pnand %p1126_p8, %p1337_p3 }
   0xf   : > { %s226_s9 = sshll.u32 %s218_s8, 4  ;;  %s215_s11 = scalar_lea.sflag [#allocation3], %s214_s28  ;;  %s227_s9 = int_to_ptr.vmem [resolvable:$true] %s226_s9 }
  0x10   : > { %p1195_p10 = pneg %p1359_p9  ;;  %s1206_s12 = scalar_lea.vmem %s227_s9, 1024 }
  0x11   : > { %p1207_p11 = scmp.ne.s32.totalorder %s227_s9, %s1206_s12  ;;  %s1273_s13 = smov [#allocation2]  }
  0x12   : > { %s1211_s14 = sshll.u32 %s1273_s13, 4  ;;  %s1212_s14 = int_to_ptr.vmem [resolvable:$false] %s1211_s14 }
  0x13   : > { %p1209_p12 = pnand %p1207_p11, %p1195_p10  ;;  %s1213_s15 = scalar_lea.vmem %s1212_s14, 2048 }
  0x14   : > { %p1214_p0 = scmp.lt.s32.totalorder %s227_s9, %s1212_s14  ;;  %p1215_p1 = scmp.lt.s32.totalorder %s1213_s15, %s1206_s12 }
  0x15   : > { %p1210_p13 = pneg %p1209_p12 }
  0x16   : > { %p1216_p2 = por %p1215_p1, %p1214_p0 }
  0x18   : > { %p1217_p3 = pnand %p1216_p2, %p1210_p13 }
  0x1a   : > { %1220 = shalt.err (!%p1217_p3)
}
  0x1b   : > { %s1274_s21 = smov 64   ;;  %s1275_s23 = smov 4  }
  0x1c   : > { %1125 = dma.hbm_to_vmem [thread:$0]  (!%p1359_p9), %s225_s7, 1024, %s227_s9, %s215_s11, %s1274_s21, %s1274_s21, %s1275_s23  }
  0x1d   : > { %p948_p4 = scmp.ge.s32.totalorder %s1271_s20, 1  ;;  %p234_p5 = scmp.lt.s32.totalorder %s1271_s20, 5 }
  0x1f   : > { %p235_p6 = pnand %p948_p4, %p234_p5 }
  0x20   : > { %s240_s24 = sand.u32 (!%p235_p6), 1, %s1255_s16  }
  0x21   : > { %238 = sbr.rel (%p235_p6) target bundleno = 316 (0x13c), region = 28  ;;  %s949_s25 = sshll.u32 (!%p235_p6), %s240_s24, 6 }
  0x22   : > { %s241_s28 = scalar_lea.sflag (!%p235_p6), [#allocation3], %s240_s24  ;;  %s1370_s29 = scalar_lea.vmem (!%p235_p6), [#allocation2], %s949_s25 }
  0x26   : > { %1246 = dma.done.wait (%p1344_p7), %s241_s28, 1024  }
  0x27   : > { %1248 = vsyncadd (%p1344_p7), %s241_s28, 4294966272  ;;  %p306_p8 = scmp.lt.s32.totalorder %s1263_s18, 3  ;;  %v1177_v0 = vld [vmem:[%s1370_s29 + $0x38] sm:$0xff]   ;;  %v1178_v1 = vld [vmem:[%s1370_s29 + $0x30] sm:$0xff]  }
  0x28   : > { %1072 = vmatprep.subr.bf16.mxu0 %v1177_v0  ;;  %1104 = vmatprep.subr.bf16.mxu1 %v1177_v0  ;;  %v1179_v2 = vld [vmem:[%s1370_s29 + $0x28] sm:$0xff]   ;;  %v1180_v3 = vld [vmem:[%s1370_s29 + $0x20] sm:$0xff]   ;;  %v1181_v5 = vld [vmem:[%s1370_s29 + $0x18] sm:$0xff]  }
  0x29   : > { %s1460_s18 = smov (!%p306_p8, %s1263_s18), 3  ;;  %1073 = vmatpush3.bf16.msra.mxu0 %v1177_v0  ;;  %1112 = vmatpush3.bf16.msra.mxu1 %v1177_v0  ;;  %v1182_v7 = vld [vmem:[%s1370_s29 + $0x10] sm:$0xff]   ;;  %v1183_v8 = vld [vmem:[%s1370_s29 + $0x8] sm:$0xff]   ;;  %v1184_v9 = vld [vmem:[%s1370_s29] sm:$0xff]  }
  0x2a   : > { %s991_s30 = sshll.u32 %s1460_s18, 6  ;;  %1074 = vmatprep.subr.bf16.mxu0 %v1178_v1  ;;  %1105 = vmatprep.subr.bf16.mxu1 %v1178_v1  ;;  %s954_s10 = sshll.u32 %s1460_s18, 3 }
  0x2b   : > { %s1389_s6 = scalar_lea.vmem %s1444_s0, %s991_s30  ;;  %s1409_s9 = scalar_lea.vmem %s1446_s2, %s991_s30 }
  0x2c   : > { %v1185_v4 = vld [vmem:[%s1389_s6] sm:$0xff]   ;;  %v1186_v10 = vld [vmem:[%s1389_s6 + $0x8] sm:$0xff]   ;;  %v1187_v12 = vld [vmem:[%s1389_s6 + $0x10] sm:$0xff]   ;;  %s337_s13 = scalar_lea.vmem %s1447_s3, %s954_s10  ;;  %s347_s21 = scalar_lea.vmem %s1448_s4, %s954_s10 }
  0x2d   : > { %1075 = vmatpush3.bf16.msra.mxu0 %v1178_v1  ;;  %1113 = vmatpush3.bf16.msra.mxu1 %v1178_v1  ;;  %v1189_v6 = vld [vmem:[%s1389_s6 + $0x20] sm:$0xff]   ;;  %v1190_v11 = vld [vmem:[%s1389_s6 + $0x28] sm:$0xff]   ;;  %v1191_v13 = vld [vmem:[%s1389_s6 + $0x30] sm:$0xff]  }
  0x2e   : > { %1076 = vmatprep.subr.bf16.mxu0 %v1179_v2  ;;  %1106 = vmatprep.subr.bf16.mxu1 %v1179_v2  ;;  %v1188_v14 = vld [vmem:[%s1389_s6 + $0x18] sm:$0xff]  }
  0x2f   : > { %1088 = vmatprep.mubr.bf16.mxu0 %v1185_v4  ;;  %1096 = vmatprep.mubr.bf16.mxu1 %v1189_v6  ;;  %v1192_v15 = vld [vmem:[%s1389_s6 + $0x38] sm:$0xff]  }
  0x31   : > { %1077 = vmatpush3.bf16.msra.mxu0 %v1179_v2  ;;  %1114 = vmatpush3.bf16.msra.mxu1 %v1179_v2 }
  0x32   : > { %1078 = vmatprep.subr.bf16.mxu0 %v1180_v3  ;;  %1107 = vmatprep.subr.bf16.mxu1 %v1180_v3 }
  0x35   : > { %1079 = vmatpush3.bf16.msra.mxu0 %v1180_v3  ;;  %1115 = vmatpush3.bf16.msra.mxu1 %v1180_v3 }
  0x36   : > { %1080 = vmatprep.subr.bf16.mxu0 %v1181_v5  ;;  %1108 = vmatprep.subr.bf16.mxu1 %v1181_v5 }
  0x39   : > { %1081 = vmatpush3.bf16.msra.mxu0 %v1181_v5  ;;  %1116 = vmatpush3.bf16.msra.mxu1 %v1181_v5 }
  0x3a   : > { %1082 = vmatprep.subr.bf16.mxu0 %v1182_v7  ;;  %1109 = vmatprep.subr.bf16.mxu1 %v1182_v7 }
  0x3d   : > { %1083 = vmatpush3.bf16.msra.mxu0 %v1182_v7  ;;  %1117 = vmatpush3.bf16.msra.mxu1 %v1182_v7 }
  0x3e   : > { %1084 = vmatprep.subr.bf16.mxu0 %v1183_v8  ;;  %1110 = vmatprep.subr.bf16.mxu1 %v1183_v8 }
  0x41   : > { %1085 = vmatpush3.bf16.msra.mxu0 %v1183_v8  ;;  %1118 = vmatpush3.bf16.msra.mxu1 %v1183_v8 }
  0x42   : > { %1086 = vmatprep.subr.bf16.mxu0 %v1184_v9  ;;  %1111 = vmatprep.subr.bf16.mxu1 %v1184_v9 }
  0x45   : > { %1087 = vmatpush3.bf16.msra.mxu0 %v1184_v9  ;;  %1119 = vmatpush3.bf16.msra.mxu1 %v1184_v9 }
  0x48   : > { %1089 = vmatmul.mubr.bf16.vlgmr.msra.gmra.mxu0 %v1186_v10  ;;  %1097 = vmatmul.mubr.bf16.vlgmr.msra.gmra.mxu1 %v1190_v11 }
  0x49   : > { %1092 = vmatprep.mubr.bf16.mxu0 %v1187_v12  ;;  %1100 = vmatprep.mubr.bf16.mxu1 %v1191_v13 }
  0x50   : > { %1093 = vmatmul.mubr.bf16.gmra.mxu0 %v1188_v14  ;;  %1101 = vmatmul.mubr.bf16.gmra.mxu1 %v1192_v15 }
 0x108   : > { %v1090_v16 = vpop.f32.mrf.mxu0  ;;  %v1098_v17 = vpop.f32.mrf.mxu1 }
 0x109   : > { %v677_v33 = vmul.f32 %v1090_v16, %v1090_v16  ;;  %v685_v3 = vmul.f32 %v1098_v17, %v1098_v17 }
 0x10a   : > { %v511_v18 = vpop.f32.mrf.mxu0  ;;  %v543_v19 = vpop.f32.mrf.mxu1 }
 0x10b   : > { %v675_v24 = vmul.f32 %v511_v18, %v511_v18  ;;  %v683_v61 = vmul.f32 %v543_v19, %v543_v19 }
 0x10c   : > { %v1091_v20 = vpop.f32.mrf.mxu0  ;;  %v1099_v21 = vpop.f32.mrf.mxu1 }
 0x10d   : > { %v1017_v22 = vpack.c.bf16 %v1091_v20, %v1090_v16  ;;  %v1037_v23 = vpack.c.bf16 %v1099_v21, %v1098_v17  ;;  %v678_v38 = vmul.f32 %v1091_v20, %v1091_v20  ;;  %v686_v6 = vmul.f32 %v1099_v21, %v1099_v21 }
 0x10e   : > { %v514_v25 = vpop.f32.mrf.mxu0  ;;  %v546_v26 = vpop.f32.mrf.mxu1 }
 0x10f   : > { %1049 = vst [vmem:[%s1409_s9 + $0x8] sm:$0xff] %v1017_v22   ;;  %v1012_v27 = vpack.c.bf16 %v514_v25, %v511_v18  ;;  %v654_v28 = vadd.f32 %v514_v25, %v511_v18  ;;  %v676_v29 = vmul.f32 %v514_v25, %v514_v25  ;;  %1053 = vst [vmem:[%s1409_s9 + $0x28] sm:$0xff] %v1037_v23  }
 0x110   : > { %v1032_v30 = vpack.c.bf16 %v546_v26, %v543_v19  ;;  %v1094_v31 = vpop.f32.mrf.mxu0  ;;  %v1102_v32 = vpop.f32.mrf.mxu1  ;;  %v684_v1 = vmul.f32 %v546_v26, %v546_v26 }
 0x111   : > { %1013 = vst [vmem:[%s1409_s9] sm:$0xff] %v1012_v27   ;;  %v655_v34 = vadd.f32 %v1090_v16, %v654_v28  ;;  %v691_v35 = vadd.f32 %v676_v29, %v675_v24  ;;  %v681_v55 = vmul.f32 %v1094_v31, %v1094_v31  ;;  %v689_v15 = vmul.f32 %v1102_v32, %v1102_v32 }
 0x112   : > { %1052 = vst [vmem:[%s1409_s9 + $0x20] sm:$0xff] %v1032_v30   ;;  %v527_v36 = vpop.f32.mrf.mxu0  ;;  %v559_v37 = vpop.f32.mrf.mxu1 }
 0x113   : > { %v692_v39 = vadd.f32 %v691_v35, %v677_v33  ;;  %v656_v40 = vadd.f32 %v1091_v20, %v655_v34  ;;  %v679_v44 = vmul.f32 %v527_v36, %v527_v36  ;;  %v687_v10 = vmul.f32 %v559_v37, %v559_v37 }
 0x114   : > { %v1095_v41 = vpop.f32.mrf.mxu0  ;;  %v1103_v42 = vpop.f32.mrf.mxu1 }
 0x115   : > { %v657_v43 = vadd.f32 %v656_v40, %v527_v36  ;;  %v693_v45 = vadd.f32 %v692_v39, %v678_v38  ;;  %v1027_v46 = vpack.c.bf16 %v1095_v41, %v1094_v31  ;;  %v1047_v48 = vpack.c.bf16 %v1103_v42, %v1102_v32 }
 0x116   : > { %v530_v47 = vpop.f32.mrf.mxu0  ;;  %v562_v49 = vpop.f32.mrf.mxu1  ;;  %v682_v58 = vmul.f32 %v1095_v41, %v1095_v41 }
 0x117   : > { %v694_v50 = vadd.f32 %v693_v45, %v679_v44  ;;  %1051 = vst [vmem:[%s1409_s9 + $0x18] sm:$0xff] %v1027_v46   ;;  %v1022_v51 = vpack.c.bf16 %v530_v47, %v527_v36  ;;  %v658_v52 = vadd.f32 %v657_v43, %v530_v47  ;;  %v680_v53 = vmul.f32 %v530_v47, %v530_v47 }
 0x118   : > { %1055 = vst [vmem:[%s1409_s9 + $0x38] sm:$0xff] %v1047_v48   ;;  %v1042_v54 = vpack.c.bf16 %v562_v49, %v559_v37  ;;  %v688_v14 = vmul.f32 %v562_v49, %v562_v49 }
 0x119   : > { %1050 = vst [vmem:[%s1409_s9 + $0x10] sm:$0xff] %v1022_v51   ;;  %v659_v56 = vadd.f32 %v1094_v31, %v658_v52  ;;  %v695_v57 = vadd.f32 %v694_v50, %v680_v53 }
 0x11a   : > { %1054 = vst [vmem:[%s1409_s9 + $0x30] sm:$0xff] %v1042_v54  }
 0x11b   : > { %v660_v59 = vadd.f32 %v1095_v41, %v659_v56  ;;  %v696_v60 = vadd.f32 %v695_v57, %v681_v55 }
 0x11d   : > { %v697_v62 = vadd.f32 %v696_v60, %v682_v58  ;;  %v661_v63 = vadd.f32 %v660_v59, %v543_v19  ;;  %v690_v19 = vmul.f32 %v1103_v42, %v1103_v42 }
 0x11f   : > { %v662_v0 = vadd.f32 %v661_v63, %v546_v26  ;;  %v698_v2 = vadd.f32 %v697_v62, %v683_v61 }
 0x121   : > { %v663_v4 = vadd.f32 %v1098_v17, %v662_v0  ;;  %v699_v5 = vadd.f32 %v698_v2, %v684_v1 }
 0x123   : > { %v700_v7 = vadd.f32 %v699_v5, %v685_v3  ;;  %v664_v8 = vadd.f32 %v1099_v21, %v663_v4 }
 0x125   : > { %v665_v9 = vadd.f32 %v664_v8, %v559_v37  ;;  %v701_v11 = vadd.f32 %v700_v7, %v686_v6 }
 0x127   : > { %v702_v12 = vadd.f32 %v701_v11, %v687_v10  ;;  %v666_v13 = vadd.f32 %v665_v9, %v562_v49 }
 0x129   : > { %v667_v16 = vadd.f32 %v1102_v32, %v666_v13  ;;  %v703_v18 = vadd.f32 %v702_v12, %v688_v14 }
 0x12b   : > { %v668_v20 = vadd.f32 %v1103_v42, %v667_v16  ;;  %v704_v22 = vadd.f32 %v703_v18, %v689_v15 }
 0x12d   : > { %v669_v23 = vrot.slane %v668_v20, 4  ;;  %v705_v24 = vadd.f32 %v704_v22, %v690_v19 }
 0x12f   : > { %v670_v17 = vadd.f32 %v669_v23, %v668_v20  ;;  %v706_v25 = vrot.slane %v705_v24, 4 }
 0x131   : > { %v671_v26 = vrot.slane %v670_v17, 2  ;;  %v707_v27 = vadd.f32 %v706_v25, %v705_v24 }
 0x133   : > { %v672_v21 = vadd.f32 %v671_v26, %v670_v17  ;;  %v708_v28 = vrot.slane %v707_v27, 2 }
 0x135   : > { %v673_v29 = vrot.slane %v672_v21, 1  ;;  %v709_v30 = vadd.f32 %v708_v28, %v707_v27 }
 0x137   : > { %v674_v31 = vadd.f32 %v673_v29, %v672_v21  ;;  %v710_v32 = vrot.slane %v709_v30, 1 }
 0x139   : > { %v711_v33 = vadd.f32 %v710_v32, %v709_v30  ;;  %712 = vst [vmem:[%s337_s13] sm:$0xff] %v674_v31 }
 0x13b   : > { %713 = vst [vmem:[%s347_s21] sm:$0xff] %v711_v33 }
 0x13c PF: > { %s18_s20 = sadd.s32 1, %s1271_s20   ;;  %s1452_s15 = smov %s1255_s16 }
 0x13d   : > { %p15_p7 = scmp.ge.s32.totalorder %s18_s20, 6   ;;  %s1453_s16 = smov %s1259_s17 }
 0x13e   : > { %s1454_s17 = smov %s1350_s27  ;;  %s1455_s18 = smov %s1267_s19 }
 0x13f   : > { %s1456_s19 = smov %s1458_s22  ;;  %17 = sbr.rel (!%p15_p7) target bundleno = 4 (0x4), region = 95 }
 0x144   :  { %802 = vsyncpa [#allocation3], 1 }
 0x145   :  { %804 = vsyncpa [#allocation3 + $0x1], 1 }

// kernel: _lambda_.16
= control target key start
LH: loop header
LB: loop body
LE: loop exit
PB: predicated region body
PF: predicated region fallthrough
CT: control target
= control target key end

     0   :  { %s1512_s12 = smov 0   ;;  %s1514_s13 = smov 0   ;;  %s1758_s0 = inlined_call_operand.vmem [shape: bf16[4,512,128], index: 0, kind: input, shape index: {}]   ;;  %s1759_s1 = inlined_call_operand.vmem [shape: f32[1,128], index: 1, kind: input, shape index: {}]   ;;  %s1760_s2 = inlined_call_operand.vmem [shape: f32[1,128], index: 2, kind: input, shape index: {}]   ;;  %s1761_s3 = inlined_call_operand.vmem [shape: bf16[4,512,128], index: 3, kind: output, shape index: {}]  }
   0x1   :  { %s1516_s14 = smov 0  }
   0x2 LB: > { %s25_s15 = sadd.s32 1, %s1486_s13  ;;  %p955_p0 = scmp.ge.s32.totalorder %s1490_s14, 1  ;;  %s1490_s14 = sphi %s1516_s14, %s13_s14   ;;  %s1486_s13 = sphi %s1514_s13, %s1763_s13   ;;  %s1482_s12 = sphi %s1512_s12, %s1762_s12  }
   0x3   : > { %p27_p1 = scmp.ge.s32.totalorder %s25_s15, 4  ;;  %p158_p2 = scmp.lt.s32.totalorder %s1490_s14, 5 }
   0x5   : > { %s1765_s15 = smov (%p27_p1, %s25_s15), 0  ;;  %p159_p3 = pnand %p955_p0, %p158_p2 }
   0x6   : > { %p191_p4 = scmp.lt.s32.totalorder (!%p159_p3), %s1482_s12, 3 }
   0x7   : > { %162 = sbr.rel (%p159_p3) target bundleno = 94 (0x5e), region = 32 }
   0xc   : > { %s1767_s12 = smov (!%p191_p4, %s1482_s12), 3  ;;  %v1543_v0 = vld [vmem:[%s1759_s1] ss:$0 sm:$0xff] }
   0xd   : > { %s1028_s16 = sshll.u32 %s1767_s12, 8  ;;  %v1552_v9 = vld [vmem:[%s1760_s2] ss:$0 sm:$0xff] }
   0xe   : > { %s1538_s19 = scalar_lea.vmem %s1758_s0, %s1028_s16  ;;  %s1577_s26 = scalar_lea.vmem %s1761_s3, %s1028_s16 }
   0xf   : > { %v1095_v1 = vld [vmem:[%s1538_s19] sm:$0xff]   ;;  %v1382_v2 = vld [vmem:[%s1538_s19 + $0x8] sm:$0xff]   ;;  %v1383_v3 = vld [vmem:[%s1538_s19 + $0x10] sm:$0xff]  }
  0x10   : > { %v1096_v4 = vunpack.c.l.bf16 %v1095_v1  ;;  %v1097_v5 = vunpack.c.h.bf16 %v1095_v1  ;;  %v1100_v6 = vunpack.c.l.bf16 %v1382_v2  ;;  %v1101_v7 = vunpack.c.h.bf16 %v1382_v2  ;;  %v1384_v8 = vld [vmem:[%s1538_s19 + $0x18] sm:$0xff]   ;;  %v1385_v30 = vld [vmem:[%s1538_s19 + $0x20] sm:$0xff]   ;;  %v1386_v35 = vld [vmem:[%s1538_s19 + $0x28] sm:$0xff]  }
  0x11   : > { %v1104_v10 = vunpack.c.l.bf16 %v1383_v3  ;;  %v1105_v11 = vunpack.c.h.bf16 %v1383_v3  ;;  %v1108_v12 = vunpack.c.l.bf16 %v1384_v8  ;;  %v1109_v13 = vunpack.c.h.bf16 %v1384_v8  ;;  %v1387_v40 = vld [vmem:[%s1538_s19 + $0x30] sm:$0xff]   ;;  %v1388_v45 = vld [vmem:[%s1538_s19 + $0x38] sm:$0xff]   ;;  %v1389_v3 = vld [vmem:[%s1538_s19 + $0x40] sm:$0xff]  }
  0x12   : > { %v345_v14 = vmul.f32 %v1096_v4, %v1543_v0  ;;  %v346_v15 = vmul.f32 %v1097_v5, %v1543_v0  ;;  %v347_v16 = vmul.f32 %v1100_v6, %v1543_v0  ;;  %v348_v17 = vmul.f32 %v1101_v7, %v1543_v0 }
  0x13   : > { %v349_v18 = vmul.f32 %v1104_v10, %v1543_v0  ;;  %v350_v19 = vmul.f32 %v1105_v11, %v1543_v0  ;;  %v351_v20 = vmul.f32 %v1108_v12, %v1543_v0  ;;  %v352_v21 = vmul.f32 %v1109_v13, %v1543_v0  ;;  %v1390_v13 = vld [vmem:[%s1538_s19 + $0x48] sm:$0xff]  }
  0x14   : > { %v416_v22 = vadd.f32 %v1552_v9, %v345_v14  ;;  %v417_v23 = vadd.f32 %v1552_v9, %v346_v15  ;;  %v418_v24 = vadd.f32 %v1552_v9, %v347_v16  ;;  %v419_v25 = vadd.f32 %v1552_v9, %v348_v17 }
  0x15   : > { %v420_v26 = vadd.f32 %v1552_v9, %v349_v18  ;;  %v421_v27 = vadd.f32 %v1552_v9, %v350_v19  ;;  %v422_v28 = vadd.f32 %v1552_v9, %v351_v20  ;;  %v423_v29 = vadd.f32 %v1552_v9, %v352_v21  ;;  %v1391_v18 = vld [vmem:[%s1538_s19 + $0x50] sm:$0xff]  }
  0x16   : > { %v480_v31 = vmax.f32 %v416_v22, 0.0  ;;  %v481_v32 = vmax.f32 %v417_v23, 0.0  ;;  %v482_v33 = vmax.f32 %v418_v24, 0.0  ;;  %v483_v34 = vmax.f32 %v419_v25, 0.0  ;;  %v1392_v23 = vld [vmem:[%s1538_s19 + $0x58] sm:$0xff]  }
  0x17   : > { %v484_v36 = vmax.f32 %v420_v26, 0.0  ;;  %v485_v37 = vmax.f32 %v421_v27, 0.0  ;;  %v486_v38 = vmax.f32 %v422_v28, 0.0  ;;  %v487_v39 = vmax.f32 %v423_v29, 0.0 }
  0x18   : > { %v1225_v41 = vpack.c.bf16 %v481_v32, %v480_v31  ;;  %v1230_v42 = vpack.c.bf16 %v483_v34, %v482_v33  ;;  %v1112_v43 = vunpack.c.l.bf16 %v1385_v30  ;;  %v1113_v44 = vunpack.c.h.bf16 %v1385_v30 }
  0x19   : > { %v1235_v46 = vpack.c.bf16 %v485_v37, %v484_v36  ;;  %v1240_v47 = vpack.c.bf16 %v487_v39, %v486_v38  ;;  %v1116_v48 = vunpack.c.l.bf16 %v1386_v35  ;;  %v1117_v49 = vunpack.c.h.bf16 %v1386_v35 }
  0x1a   : > { %1226 = vst [vmem:[%s1577_s26] sm:$0xff] %v1225_v41   ;;  %1413 = vst [vmem:[%s1577_s26 + $0x8] sm:$0xff] %v1230_v42   ;;  %v353_v50 = vmul.f32 %v1112_v43, %v1543_v0  ;;  %v354_v51 = vmul.f32 %v1113_v44, %v1543_v0  ;;  %v1120_v52 = vunpack.c.l.bf16 %v1387_v40  ;;  %v1121_v53 = vunpack.c.h.bf16 %v1387_v40  ;;  %v1393_v40 = vld [vmem:[%s1538_s19 + $0x60] sm:$0xff]  }
  0x1b   : > { %1414 = vst [vmem:[%s1577_s26 + $0x10] sm:$0xff] %v1235_v46   ;;  %1415 = vst [vmem:[%s1577_s26 + $0x18] sm:$0xff] %v1240_v47   ;;  %v355_v54 = vmul.f32 %v1116_v48, %v1543_v0  ;;  %v356_v55 = vmul.f32 %v1117_v49, %v1543_v0  ;;  %v1124_v56 = vunpack.c.l.bf16 %v1388_v45  ;;  %v1125_v57 = vunpack.c.h.bf16 %v1388_v45 }
  0x1c   : > { %v424_v58 = vadd.f32 %v1552_v9, %v353_v50  ;;  %v425_v59 = vadd.f32 %v1552_v9, %v354_v51  ;;  %v357_v60 = vmul.f32 %v1120_v52, %v1543_v0  ;;  %v358_v61 = vmul.f32 %v1121_v53, %v1543_v0  ;;  %v1394_v53 = vld [vmem:[%s1538_s19 + $0x68] sm:$0xff]  }
  0x1d   : > { %v426_v62 = vadd.f32 %v1552_v9, %v355_v54  ;;  %v427_v63 = vadd.f32 %v1552_v9, %v356_v55  ;;  %v359_v1 = vmul.f32 %v1124_v56, %v1543_v0  ;;  %v360_v2 = vmul.f32 %v1125_v57, %v1543_v0 }
  0x1e   : > { %v488_v4 = vmax.f32 %v424_v58, 0.0  ;;  %v489_v5 = vmax.f32 %v425_v59, 0.0  ;;  %v428_v6 = vadd.f32 %v1552_v9, %v357_v60  ;;  %v429_v7 = vadd.f32 %v1552_v9, %v358_v61  ;;  %v1395_v58 = vld [vmem:[%s1538_s19 + $0x70] sm:$0xff]  }
  0x1f   : > { %v490_v8 = vmax.f32 %v426_v62, 0.0  ;;  %v491_v10 = vmax.f32 %v427_v63, 0.0  ;;  %v430_v11 = vadd.f32 %v1552_v9, %v359_v1  ;;  %v431_v12 = vadd.f32 %v1552_v9, %v360_v2  ;;  %v1396_v63 = vld [vmem:[%s1538_s19 + $0x78] sm:$0xff]  }
  0x20   : > { %v1245_v14 = vpack.c.bf16 %v489_v5, %v488_v4  ;;  %v492_v15 = vmax.f32 %v428_v6, 0.0  ;;  %v493_v16 = vmax.f32 %v429_v7, 0.0  ;;  %v1128_v17 = vunpack.c.l.bf16 %v1389_v3 }
  0x21   : > { %v1250_v19 = vpack.c.bf16 %v491_v10, %v490_v8  ;;  %v494_v20 = vmax.f32 %v430_v11, 0.0  ;;  %v495_v21 = vmax.f32 %v431_v12, 0.0  ;;  %v1129_v22 = vunpack.c.h.bf16 %v1389_v3 }
  0x22   : > { %1416 = vst [vmem:[%s1577_s26 + $0x20] sm:$0xff] %v1245_v14   ;;  %v1255_v24 = vpack.c.bf16 %v493_v16, %v492_v15  ;;  %v361_v25 = vmul.f32 %v1128_v17, %v1543_v0  ;;  %v1132_v26 = vunpack.c.l.bf16 %v1390_v13  ;;  %v1133_v27 = vunpack.c.h.bf16 %v1390_v13  ;;  %v1397_v14 = vld [vmem:[%s1538_s19 + $0x80] sm:$0xff]  }
  0x23   : > { %1417 = vst [vmem:[%s1577_s26 + $0x28] sm:$0xff] %v1250_v19   ;;  %v1260_v28 = vpack.c.bf16 %v495_v21, %v494_v20  ;;  %v362_v29 = vmul.f32 %v1129_v22, %v1543_v0  ;;  %v1136_v30 = vunpack.c.l.bf16 %v1391_v18  ;;  %v1137_v31 = vunpack.c.h.bf16 %v1391_v18 }
  0x24   : > { %1418 = vst [vmem:[%s1577_s26 + $0x30] sm:$0xff] %v1255_v24   ;;  %v432_v32 = vadd.f32 %v1552_v9, %v361_v25  ;;  %v363_v33 = vmul.f32 %v1132_v26, %v1543_v0  ;;  %v364_v34 = vmul.f32 %v1133_v27, %v1543_v0  ;;  %v1140_v35 = vunpack.c.l.bf16 %v1392_v23 }
  0x25   : > { %1419 = vst [vmem:[%s1577_s26 + $0x38] sm:$0xff] %v1260_v28   ;;  %v433_v36 = vadd.f32 %v1552_v9, %v362_v29  ;;  %v365_v37 = vmul.f32 %v1136_v30, %v1543_v0  ;;  %v366_v38 = vmul.f32 %v1137_v31, %v1543_v0  ;;  %v1141_v39 = vunpack.c.h.bf16 %v1392_v23  ;;  %v1398_v31 = vld [vmem:[%s1538_s19 + $0x88] sm:$0xff]  }
  0x26   : > { %v496_v41 = vmax.f32 %v432_v32, 0.0  ;;  %v434_v42 = vadd.f32 %v1552_v9, %v363_v33  ;;  %v435_v43 = vadd.f32 %v1552_v9, %v364_v34  ;;  %v367_v44 = vmul.f32 %v1140_v35, %v1543_v0 }
  0x27   : > { %v497_v45 = vmax.f32 %v433_v36, 0.0  ;;  %v436_v46 = vadd.f32 %v1552_v9, %v365_v37  ;;  %v437_v47 = vadd.f32 %v1552_v9, %v366_v38  ;;  %v368_v48 = vmul.f32 %v1141_v39, %v1543_v0  ;;  %v1399_v36 = vld [vmem:[%s1538_s19 + $0x90] sm:$0xff]  }
  0x28   : > { %v498_v49 = vmax.f32 %v434_v42, 0.0  ;;  %v499_v50 = vmax.f32 %v435_v43, 0.0  ;;  %v438_v51 = vadd.f32 %v1552_v9, %v367_v44  ;;  %v1144_v52 = vunpack.c.l.bf16 %v1393_v40 }
  0x29   : > { %v1265_v54 = vpack.c.bf16 %v497_v45, %v496_v41  ;;  %v500_v55 = vmax.f32 %v436_v46, 0.0  ;;  %v501_v56 = vmax.f32 %v437_v47, 0.0  ;;  %v439_v57 = vadd.f32 %v1552_v9, %v368_v48  ;;  %v1400_v41 = vld [vmem:[%s1538_s19 + $0x98] sm:$0xff]  }
  0x2a   : > { %v1270_v59 = vpack.c.bf16 %v499_v50, %v498_v49  ;;  %v502_v60 = vmax.f32 %v438_v51, 0.0  ;;  %v1145_v61 = vunpack.c.h.bf16 %v1393_v40  ;;  %v369_v62 = vmul.f32 %v1144_v52, %v1543_v0 }
  0x2b   : > { %1420 = vst [vmem:[%s1577_s26 + $0x40] sm:$0xff] %v1265_v54   ;;  %v1275_v1 = vpack.c.bf16 %v501_v56, %v500_v55  ;;  %v503_v2 = vmax.f32 %v439_v57, 0.0  ;;  %v1148_v3 = vunpack.c.l.bf16 %v1394_v53  ;;  %v1149_v4 = vunpack.c.h.bf16 %v1394_v53  ;;  %v1401_v54 = vld [vmem:[%s1538_s19 + $0xa0] sm:$0xff]  }
  0x2c   : > { %1421 = vst [vmem:[%s1577_s26 + $0x48] sm:$0xff] %v1270_v59   ;;  %v370_v5 = vmul.f32 %v1145_v61, %v1543_v0  ;;  %v440_v6 = vadd.f32 %v1552_v9, %v369_v62  ;;  %v1152_v7 = vunpack.c.l.bf16 %v1395_v58  ;;  %v1153_v8 = vunpack.c.h.bf16 %v1395_v58 }
  0x2d   : > { %1422 = vst [vmem:[%s1577_s26 + $0x50] sm:$0xff] %v1275_v1   ;;  %v1280_v10 = vpack.c.bf16 %v503_v2, %v502_v60  ;;  %v371_v11 = vmul.f32 %v1148_v3, %v1543_v0  ;;  %v372_v12 = vmul.f32 %v1149_v4, %v1543_v0  ;;  %v1156_v13 = vunpack.c.l.bf16 %v1396_v63  ;;  %v1402_v4 = vld [vmem:[%s1538_s19 + $0xa8] sm:$0xff]  }
  0x2e   : > { %v441_v15 = vadd.f32 %v1552_v9, %v370_v5  ;;  %v504_v16 = vmax.f32 %v440_v6, 0.0  ;;  %v373_v17 = vmul.f32 %v1152_v7, %v1543_v0  ;;  %v374_v18 = vmul.f32 %v1153_v8, %v1543_v0 }
  0x2f   : > { %1423 = vst [vmem:[%s1577_s26 + $0x58] sm:$0xff] %v1280_v10   ;;  %v442_v19 = vadd.f32 %v1552_v9, %v371_v11  ;;  %v443_v20 = vadd.f32 %v1552_v9, %v372_v12  ;;  %v1157_v21 = vunpack.c.h.bf16 %v1396_v63  ;;  %v375_v22 = vmul.f32 %v1156_v13, %v1543_v0 }
  0x30   : > { %v505_v23 = vmax.f32 %v441_v15, 0.0  ;;  %v444_v24 = vadd.f32 %v1552_v9, %v373_v17  ;;  %v445_v25 = vadd.f32 %v1552_v9, %v374_v18  ;;  %v1160_v26 = vunpack.c.l.bf16 %v1397_v14 }
  0x31   : > { %v506_v27 = vmax.f32 %v442_v19, 0.0  ;;  %v507_v28 = vmax.f32 %v443_v20, 0.0  ;;  %v376_v29 = vmul.f32 %v1157_v21, %v1543_v0  ;;  %v446_v30 = vadd.f32 %v1552_v9, %v375_v22  ;;  %v1404_v19 = vld [vmem:[%s1538_s19 + $0xb8] sm:$0xff]  }
  0x32   : > { %v1285_v32 = vpack.c.bf16 %v505_v23, %v504_v16  ;;  %v508_v33 = vmax.f32 %v444_v24, 0.0  ;;  %v509_v34 = vmax.f32 %v445_v25, 0.0  ;;  %v1161_v35 = vunpack.c.h.bf16 %v1397_v14  ;;  %v1403_v14 = vld [vmem:[%s1538_s19 + $0xb0] sm:$0xff]  }
  0x33   : > { %v1290_v37 = vpack.c.bf16 %v507_v28, %v506_v27  ;;  %v447_v38 = vadd.f32 %v1552_v9, %v376_v29  ;;  %v510_v39 = vmax.f32 %v446_v30, 0.0  ;;  %v377_v40 = vmul.f32 %v1160_v26, %v1543_v0 }
  0x34   : > { %1424 = vst [vmem:[%s1577_s26 + $0x60] sm:$0xff] %v1285_v32   ;;  %v1295_v42 = vpack.c.bf16 %v509_v34, %v508_v33  ;;  %v378_v43 = vmul.f32 %v1161_v35, %v1543_v0  ;;  %v1164_v44 = vunpack.c.l.bf16 %v1398_v31  ;;  %v1165_v45 = vunpack.c.h.bf16 %v1398_v31  ;;  %v1405_v32 = vld [vmem:[%s1538_s19 + $0xc0] sm:$0xff]  }
  0x35   : > { %1425 = vst [vmem:[%s1577_s26 + $0x68] sm:$0xff] %v1290_v37   ;;  %v511_v46 = vmax.f32 %v447_v38, 0.0  ;;  %v448_v47 = vadd.f32 %v1552_v9, %v377_v40  ;;  %v1168_v48 = vunpack.c.l.bf16 %v1399_v36  ;;  %v1169_v49 = vunpack.c.h.bf16 %v1399_v36 }
  0x36   : > { %1426 = vst [vmem:[%s1577_s26 + $0x70] sm:$0xff] %v1295_v42   ;;  %v449_v50 = vadd.f32 %v1552_v9, %v378_v43  ;;  %v379_v51 = vmul.f32 %v1164_v44, %v1543_v0  ;;  %v380_v52 = vmul.f32 %v1165_v45, %v1543_v0  ;;  %v1172_v53 = vunpack.c.l.bf16 %v1400_v41  ;;  %v1406_v45 = vld [vmem:[%s1538_s19 + $0xc8] sm:$0xff]  }
  0x37   : > { %v1300_v55 = vpack.c.bf16 %v511_v46, %v510_v39  ;;  %v512_v56 = vmax.f32 %v448_v47, 0.0  ;;  %v381_v57 = vmul.f32 %v1168_v48, %v1543_v0  ;;  %v382_v58 = vmul.f32 %v1169_v49, %v1543_v0 }
  0x38   : > { %v513_v59 = vmax.f32 %v449_v50, 0.0  ;;  %v450_v60 = vadd.f32 %v1552_v9, %v379_v51  ;;  %v451_v61 = vadd.f32 %v1552_v9, %v380_v52  ;;  %v1173_v62 = vunpack.c.h.bf16 %v1400_v41 }
  0x39   : > { %1427 = vst [vmem:[%s1577_s26 + $0x78] sm:$0xff] %v1300_v55   ;;  %v452_v63 = vadd.f32 %v1552_v9, %v381_v57  ;;  %v453_v1 = vadd.f32 %v1552_v9, %v382_v58  ;;  %v383_v2 = vmul.f32 %v1172_v53, %v1543_v0  ;;  %v1176_v3 = vunpack.c.l.bf16 %v1401_v54 }
  0x3a   : > { %v1305_v5 = vpack.c.bf16 %v513_v59, %v512_v56  ;;  %v514_v6 = vmax.f32 %v450_v60, 0.0  ;;  %v515_v7 = vmax.f32 %v451_v61, 0.0  ;;  %v384_v8 = vmul.f32 %v1173_v62, %v1543_v0 }
  0x3b   : > { %v516_v10 = vmax.f32 %v452_v63, 0.0  ;;  %v517_v11 = vmax.f32 %v453_v1, 0.0  ;;  %v454_v12 = vadd.f32 %v1552_v9, %v383_v2  ;;  %v1177_v13 = vunpack.c.h.bf16 %v1401_v54  ;;  %v1407_v54 = vld [vmem:[%s1538_s19 + $0xd0] sm:$0xff]   ;;  %v1408_v63 = vld [vmem:[%s1538_s19 + $0xd8] sm:$0xff]  }
  0x3c   : > { %1428 = vst [vmem:[%s1577_s26 + $0x80] sm:$0xff] %v1305_v5   ;;  %v1310_v15 = vpack.c.bf16 %v515_v7, %v514_v6  ;;  %v455_v16 = vadd.f32 %v1552_v9, %v384_v8  ;;  %v385_v17 = vmul.f32 %v1176_v3, %v1543_v0  ;;  %v1180_v18 = vunpack.c.l.bf16 %v1402_v4 }
  0x3d   : > { %v1315_v20 = vpack.c.bf16 %v517_v11, %v516_v10  ;;  %v518_v21 = vmax.f32 %v454_v12, 0.0  ;;  %v386_v22 = vmul.f32 %v1177_v13, %v1543_v0  ;;  %v1181_v23 = vunpack.c.h.bf16 %v1402_v4  ;;  %v1409_v10 = vld [vmem:[%s1538_s19 + $0xe0] sm:$0xff]  }
  0x3e   : > { %1429 = vst [vmem:[%s1577_s26 + $0x88] sm:$0xff] %v1310_v15   ;;  %v519_v24 = vmax.f32 %v455_v16, 0.0  ;;  %v456_v25 = vadd.f32 %v1552_v9, %v385_v17  ;;  %v387_v26 = vmul.f32 %v1180_v18, %v1543_v0  ;;  %v1184_v27 = vunpack.c.l.bf16 %v1403_v14 }
  0x3f   : > { %1430 = vst [vmem:[%s1577_s26 + $0x90] sm:$0xff] %v1315_v20   ;;  %v457_v28 = vadd.f32 %v1552_v9, %v386_v22  ;;  %v388_v29 = vmul.f32 %v1181_v23, %v1543_v0  ;;  %v1185_v30 = vunpack.c.h.bf16 %v1403_v14  ;;  %v1188_v31 = vunpack.c.l.bf16 %v1404_v19  ;;  %v1410_v23 = vld [vmem:[%s1538_s19 + $0xe8] sm:$0xff]  }
  0x40   : > { %v1320_v33 = vpack.c.bf16 %v519_v24, %v518_v21  ;;  %v520_v34 = vmax.f32 %v456_v25, 0.0  ;;  %v458_v35 = vadd.f32 %v1552_v9, %v387_v26  ;;  %v389_v36 = vmul.f32 %v1184_v27, %v1543_v0 }
  0x41   : > { %v521_v37 = vmax.f32 %v457_v28, 0.0  ;;  %v459_v38 = vadd.f32 %v1552_v9, %v388_v29  ;;  %v390_v39 = vmul.f32 %v1185_v30, %v1543_v0  ;;  %v1189_v40 = vunpack.c.h.bf16 %v1404_v19 }
  0x42   : > { %1431 = vst [vmem:[%s1577_s26 + $0x98] sm:$0xff] %v1320_v33   ;;  %v522_v41 = vmax.f32 %v458_v35, 0.0  ;;  %v460_v42 = vadd.f32 %v1552_v9, %v389_v36  ;;  %v391_v43 = vmul.f32 %v1188_v31, %v1543_v0  ;;  %v1192_v44 = vunpack.c.l.bf16 %v1405_v32 }
  0x43   : > { %v1325_v46 = vpack.c.bf16 %v521_v37, %v520_v34  ;;  %v523_v47 = vmax.f32 %v459_v38, 0.0  ;;  %v461_v48 = vadd.f32 %v1552_v9, %v390_v39  ;;  %v392_v49 = vmul.f32 %v1189_v40, %v1543_v0 }
  0x44   : > { %v524_v50 = vmax.f32 %v460_v42, 0.0  ;;  %v462_v51 = vadd.f32 %v1552_v9, %v391_v43  ;;  %v1193_v52 = vunpack.c.h.bf16 %v1405_v32  ;;  %v393_v53 = vmul.f32 %v1192_v44, %v1543_v0  ;;  %v1411_v32 = vld [vmem:[%s1538_s19 + $0xf0] sm:$0xff]  }
  0x45   : > { %1432 = vst [vmem:[%s1577_s26 + $0xa0] sm:$0xff] %v1325_v46   ;;  %v1330_v55 = vpack.c.bf16 %v523_v47, %v522_v41  ;;  %v525_v56 = vmax.f32 %v461_v48, 0.0  ;;  %v463_v57 = vadd.f32 %v1552_v9, %v392_v49  ;;  %v1196_v58 = vunpack.c.l.bf16 %v1406_v45  ;;  %v1412_v41 = vld [vmem:[%s1538_s19 + $0xf8] sm:$0xff]  }
  0x46   : > { %v526_v59 = vmax.f32 %v462_v51, 0.0  ;;  %v394_v60 = vmul.f32 %v1193_v52, %v1543_v0  ;;  %v464_v61 = vadd.f32 %v1552_v9, %v393_v53  ;;  %v1197_v62 = vunpack.c.h.bf16 %v1406_v45 }
  0x47   : > { %1433 = vst [vmem:[%s1577_s26 + $0xa8] sm:$0xff] %v1330_v55   ;;  %v1335_v1 = vpack.c.bf16 %v525_v56, %v524_v50  ;;  %v527_v2 = vmax.f32 %v463_v57, 0.0  ;;  %v395_v3 = vmul.f32 %v1196_v58, %v1543_v0  ;;  %v1200_v4 = vunpack.c.l.bf16 %v1407_v54 }
  0x48   : > { %v465_v5 = vadd.f32 %v1552_v9, %v394_v60  ;;  %v528_v6 = vmax.f32 %v464_v61, 0.0  ;;  %v396_v7 = vmul.f32 %v1197_v62, %v1543_v0  ;;  %v1201_v8 = vunpack.c.h.bf16 %v1407_v54 }
  0x49   : > { %1434 = vst [vmem:[%s1577_s26 + $0xb0] sm:$0xff] %v1335_v1   ;;  %v1340_v11 = vpack.c.bf16 %v527_v2, %v526_v59  ;;  %v466_v12 = vadd.f32 %v1552_v9, %v395_v3  ;;  %v397_v13 = vmul.f32 %v1200_v4, %v1543_v0  ;;  %v1204_v14 = vunpack.c.l.bf16 %v1408_v63 }
  0x4a   : > { %v529_v15 = vmax.f32 %v465_v5, 0.0  ;;  %v467_v16 = vadd.f32 %v1552_v9, %v396_v7  ;;  %v398_v17 = vmul.f32 %v1201_v8, %v1543_v0  ;;  %v1205_v18 = vunpack.c.h.bf16 %v1408_v63 }
  0x4b   : > { %1435 = vst [vmem:[%s1577_s26 + $0xb8] sm:$0xff] %v1340_v11   ;;  %v530_v19 = vmax.f32 %v466_v12, 0.0  ;;  %v468_v20 = vadd.f32 %v1552_v9, %v397_v13  ;;  %v399_v21 = vmul.f32 %v1204_v14, %v1543_v0  ;;  %v1208_v22 = vunpack.c.l.bf16 %v1409_v10 }
  0x4c   : > { %v1345_v24 = vpack.c.bf16 %v529_v15, %v528_v6  ;;  %v531_v25 = vmax.f32 %v467_v16, 0.0  ;;  %v469_v26 = vadd.f32 %v1552_v9, %v398_v17  ;;  %v400_v27 = vmul.f32 %v1205_v18, %v1543_v0 }
  0x4d   : > { %v532_v28 = vmax.f32 %v468_v20, 0.0  ;;  %v470_v29 = vadd.f32 %v1552_v9, %v399_v21  ;;  %v1209_v30 = vunpack.c.h.bf16 %v1409_v10  ;;  %v401_v31 = vmul.f32 %v1208_v22, %v1543_v0 }
  0x4e   : > { %1436 = vst [vmem:[%s1577_s26 + $0xc0] sm:$0xff] %v1345_v24   ;;  %v1350_v33 = vpack.c.bf16 %v531_v25, %v530_v19  ;;  %v533_v34 = vmax.f32 %v469_v26, 0.0  ;;  %v471_v35 = vadd.f32 %v1552_v9, %v400_v27  ;;  %v1212_v36 = vunpack.c.l.bf16 %v1410_v23 }
  0x4f   : > { %v534_v37 = vmax.f32 %v470_v29, 0.0  ;;  %v402_v38 = vmul.f32 %v1209_v30, %v1543_v0  ;;  %v472_v39 = vadd.f32 %v1552_v9, %v401_v31  ;;  %v1213_v40 = vunpack.c.h.bf16 %v1410_v23 }
  0x50   : > { %1437 = vst [vmem:[%s1577_s26 + $0xc8] sm:$0xff] %v1350_v33   ;;  %v1355_v42 = vpack.c.bf16 %v533_v34, %v532_v28  ;;  %v535_v43 = vmax.f32 %v471_v35, 0.0  ;;  %v403_v44 = vmul.f32 %v1212_v36, %v1543_v0  ;;  %v1216_v45 = vunpack.c.l.bf16 %v1411_v32 }
  0x51   : > { %v473_v46 = vadd.f32 %v1552_v9, %v402_v38  ;;  %v536_v47 = vmax.f32 %v472_v39, 0.0  ;;  %v404_v48 = vmul.f32 %v1213_v40, %v1543_v0  ;;  %v1217_v49 = vunpack.c.h.bf16 %v1411_v32 }
  0x52   : > { %1438 = vst [vmem:[%s1577_s26 + $0xd0] sm:$0xff] %v1355_v42   ;;  %v1360_v50 = vpack.c.bf16 %v535_v43, %v534_v37  ;;  %v474_v51 = vadd.f32 %v1552_v9, %v403_v44  ;;  %v405_v52 = vmul.f32 %v1216_v45, %v1543_v0  ;;  %v1220_v53 = vunpack.c.l.bf16 %v1412_v41 }
  0x53   : > { %v537_v54 = vmax.f32 %v473_v46, 0.0  ;;  %v475_v55 = vadd.f32 %v1552_v9, %v404_v48  ;;  %v406_v56 = vmul.f32 %v1217_v49, %v1543_v0  ;;  %v1221_v57 = vunpack.c.h.bf16 %v1412_v41 }
  0x54   : > { %1439 = vst [vmem:[%s1577_s26 + $0xd8] sm:$0xff] %v1360_v50   ;;  %v538_v58 = vmax.f32 %v474_v51, 0.0  ;;  %v476_v59 = vadd.f32 %v1552_v9, %v405_v52  ;;  %v407_v60 = vmul.f32 %v1220_v53, %v1543_v0 }
  0x55   : > { %v1365_v61 = vpack.c.bf16 %v537_v54, %v536_v47  ;;  %v539_v62 = vmax.f32 %v475_v55, 0.0  ;;  %v477_v63 = vadd.f32 %v1552_v9, %v406_v56  ;;  %v408_v1 = vmul.f32 %v1221_v57, %v1543_v0 }
  0x56   : > { %v540_v2 = vmax.f32 %v476_v59, 0.0  ;;  %v478_v3 = vadd.f32 %v1552_v9, %v407_v60 }
  0x57   : > { %1440 = vst [vmem:[%s1577_s26 + $0xe0] sm:$0xff] %v1365_v61   ;;  %v1370_v4 = vpack.c.bf16 %v539_v62, %v538_v58  ;;  %v541_v5 = vmax.f32 %v477_v63, 0.0  ;;  %v479_v6 = vadd.f32 %v1552_v9, %v408_v1 }
  0x58   : > { %v542_v7 = vmax.f32 %v478_v3, 0.0 }
  0x59   : > { %1441 = vst [vmem:[%s1577_s26 + $0xe8] sm:$0xff] %v1370_v4   ;;  %v1375_v8 = vpack.c.bf16 %v541_v5, %v540_v2  ;;  %v543_v10 = vmax.f32 %v479_v6, 0.0 }
  0x5b   : > { %1442 = vst [vmem:[%s1577_s26 + $0xf0] sm:$0xff] %v1375_v8   ;;  %v1380_v11 = vpack.c.bf16 %v543_v10, %v542_v7 }
  0x5d   : > { %1443 = vst [vmem:[%s1577_s26 + $0xf8] sm:$0xff] %v1380_v11  }
  0x5e PF: > { %s13_s14 = sadd.s32 1, %s1490_s14   ;;  %s1762_s12 = smov %s1486_s13 }
  0x5f   : > { %p10_p5 = scmp.ge.s32.totalorder %s13_s14, 6   ;;  %s1763_s13 = smov %s1765_s15 }
  0x61   :  { %12 = sbr.rel (!%p10_p5) target bundleno = 2 (0x2), region = 62 }

// kernel: _lambda_.15
= control target key start
LH: loop header
LB: loop body
LE: loop exit
PB: predicated region body
PF: predicated region fallthrough
CT: control target
= control target key end

     0   :  { %s2353_s15 = smov 0   ;;  %s2355_s16 = smov 0   ;;  %s2696_s0 = inlined_call_operand.vmem [shape: bf16[4,512,64], index: 0, kind: input, shape index: {}]   ;;  %s2697_s1 = inlined_call_operand.vmem [shape: bf16[4,64,128], index: 1, kind: input, shape index: {}]   ;;  %s2698_s2 = inlined_call_operand.vmem [shape: bf16[4,512,128], index: 2, kind: output, shape index: {0}]   ;;  %s2699_s3 = inlined_call_operand.vmem [shape: f32[4,1,8,128], index: 3, kind: output, shape index: {1}]   ;;  %s2700_s4 = inlined_call_operand.vmem [shape: f32[4,1,8,128], index: 4, kind: output, shape index: {2}]  }
   0x1   :  { %s2357_s17 = smov 0  }
   0x2 LB: > { %s34_s18 = sadd.s32 1, %s2322_s16  ;;  %p1727_p0 = scmp.ge.s32.totalorder %s2326_s17, 1  ;;  %s2326_s17 = sphi %s2357_s17, %s15_s17   ;;  %s2322_s16 = sphi %s2355_s16, %s2702_s16   ;;  %s2318_s15 = sphi %s2353_s15, %s2701_s15  }
   0x3   : > { %p36_p1 = scmp.ge.s32.totalorder %s34_s18, 4  ;;  %p220_p2 = scmp.lt.s32.totalorder %s2326_s17, 5 }
   0x5   : > { %s2704_s18 = smov (%p36_p1, %s34_s18), 0  ;;  %p221_p3 = pnand %p1727_p0, %p220_p2 }
   0x6   : > { %p286_p4 = scmp.lt.s32.totalorder (!%p221_p3), %s2318_s15, 3 }
   0x7   : > { %224 = sbr.rel (%p221_p3) target bundleno = 372 (0x174), region = 28 }
   0xc   : > { %s2706_s15 = smov (!%p286_p4, %s2318_s15), 3  ;;  %vm593_vm0 = vcmask 523264  }
   0xd   : > { %s1870_s19 = sshll.u32 %s2706_s15, 8  ;;  %s1871_s20 = sshll.u32 %s2706_s15, 5 }
   0xe   : > { %s302_s23 = scalar_lea.vmem %s2697_s1, %s1871_s20  ;;  %s2383_s26 = scalar_lea.vmem %s2696_s0, %s1870_s19 }
   0xf   : > { %v2268_v0 = vld [vmem:[%s302_s23 + $0x18] sm:$0xff]   ;;  %v2269_v1 = vld [vmem:[%s302_s23 + $0x10] sm:$0xff]   ;;  %v2270_v2 = vld [vmem:[%s302_s23 + $0x8] sm:$0xff]   ;;  %s2454_s29 = scalar_lea.vmem %s2698_s2, %s1870_s19  ;;  %s1734_s30 = sshll.u32 %s2706_s15, 3 }
  0x10   : > { %2164 = vmatprep.subr.bf16.mxu0 %v2268_v0  ;;  %2236 = vmatprep.subr.bf16.mxu1 %v2268_v0  ;;  %v2272_v3 = vld [vmem:[%s2383_s26] sm:$0xff]   ;;  %v2273_v5 = vld [vmem:[%s2383_s26 + $0x8] sm:$0xff]   ;;  %v2274_v6 = vld [vmem:[%s2383_s26 + $0x10] sm:$0xff]   ;;  %s325_s7 = scalar_lea.vmem %s2699_s3, %s1734_s30  ;;  %s335_s10 = scalar_lea.vmem %s2700_s4, %s1734_s30 }
  0x11   : > { %2165 = vmatpush3.bf16.msra.mxu0 %v2268_v0  ;;  %2240 = vmatpush3.bf16.msra.mxu1 %v2268_v0  ;;  %v2271_v4 = vld [vmem:[%s302_s23] sm:$0xff]   ;;  %v2275_v7 = vld [vmem:[%s2383_s26 + $0x18] sm:$0xff]   ;;  %v2289_v9 = vld [vmem:[%s2383_s26 + $0x88] sm:$0xff]  }
  0x12   : > { %2166 = vmatprep.subr.bf16.mxu0 %v2269_v1  ;;  %2237 = vmatprep.subr.bf16.mxu1 %v2269_v1  ;;  %v2288_v8 = vld [vmem:[%s2383_s26 + $0x80] sm:$0xff]   ;;  %v2290_v10 = vld [vmem:[%s2383_s26 + $0x90] sm:$0xff]   ;;  %v2291_v12 = vld [vmem:[%s2383_s26 + $0x98] sm:$0xff]  }
  0x13   : > { %2172 = vmatprep.mubr.msk.bf16.mxu0 %vm593_vm0, %v2272_v3  ;;  %2204 = vmatprep.mubr.msk.bf16.mxu1 %vm593_vm0, %v2288_v8  ;;  %v2276_v11 = vld [vmem:[%s2383_s26 + $0x20] sm:$0xff]   ;;  %v2277_v14 = vld [vmem:[%s2383_s26 + $0x28] sm:$0xff]   ;;  %v2278_v15 = vld [vmem:[%s2383_s26 + $0x30] sm:$0xff]  }
  0x14   : > { %v2292_v13 = vld [vmem:[%s2383_s26 + $0xa0] sm:$0xff]   ;;  %v2293_v16 = vld [vmem:[%s2383_s26 + $0xa8] sm:$0xff]   ;;  %v2294_v17 = vld [vmem:[%s2383_s26 + $0xb0] sm:$0xff]  }
  0x15   : > { %2167 = vmatpush3.bf16.msra.mxu0 %v2269_v1  ;;  %2241 = vmatpush3.bf16.msra.mxu1 %v2269_v1  ;;  %v2279_v18 = vld [vmem:[%s2383_s26 + $0x38] sm:$0xff]   ;;  %v2280_v19 = vld [vmem:[%s2383_s26 + $0x40] sm:$0xff]   ;;  %v2281_v22 = vld [vmem:[%s2383_s26 + $0x48] sm:$0xff]  }
  0x16   : > { %2168 = vmatprep.subr.bf16.mxu0 %v2270_v2  ;;  %2238 = vmatprep.subr.bf16.mxu1 %v2270_v2  ;;  %v2295_v20 = vld [vmem:[%s2383_s26 + $0xb8] sm:$0xff]   ;;  %v2296_v21 = vld [vmem:[%s2383_s26 + $0xc0] sm:$0xff]   ;;  %v2282_v23 = vld [vmem:[%s2383_s26 + $0x50] sm:$0xff]  }
  0x17   : > { %v2297_v24 = vld [vmem:[%s2383_s26 + $0xc8] sm:$0xff]   ;;  %v2298_v25 = vld [vmem:[%s2383_s26 + $0xd0] sm:$0xff]   ;;  %v2283_v26 = vld [vmem:[%s2383_s26 + $0x58] sm:$0xff]  }
  0x18   : > { %v2284_v27 = vld [vmem:[%s2383_s26 + $0x60] sm:$0xff]   ;;  %v2299_v28 = vld [vmem:[%s2383_s26 + $0xd8] sm:$0xff]   ;;  %v2285_v30 = vld [vmem:[%s2383_s26 + $0x68] sm:$0xff]  }
  0x19   : > { %2169 = vmatpush3.bf16.msra.mxu0 %v2270_v2  ;;  %2242 = vmatpush3.bf16.msra.mxu1 %v2270_v2  ;;  %v2300_v29 = vld [vmem:[%s2383_s26 + $0xe0] sm:$0xff]   ;;  %v2286_v31 = vld [vmem:[%s2383_s26 + $0x70] sm:$0xff]   ;;  %v2301_v32 = vld [vmem:[%s2383_s26 + $0xe8] sm:$0xff]  }
  0x1a   : > { %2170 = vmatprep.subr.bf16.mxu0 %v2271_v4  ;;  %2239 = vmatprep.subr.bf16.mxu1 %v2271_v4  ;;  %v2302_v33 = vld [vmem:[%s2383_s26 + $0xf0] sm:$0xff]   ;;  %v2287_v34 = vld [vmem:[%s2383_s26 + $0x78] sm:$0xff]  }
  0x1b   : > { %v2303_v35 = vld [vmem:[%s2383_s26 + $0xf8] sm:$0xff]  }
  0x1d   : > { %2171 = vmatpush3.bf16.msra.mxu0 %v2271_v4  ;;  %2243 = vmatpush3.bf16.msra.mxu1 %v2271_v4 }
  0x20   : > { %2173 = vmatmul.mubr.msk.bf16.vlgmr.msra.gmra.mxu0 %vm593_vm0, %v2273_v5  ;;  %2205 = vmatmul.mubr.msk.bf16.vlgmr.msra.gmra.mxu1 %vm593_vm0, %v2289_v9 }
  0x21   : > { %2176 = vmatprep.mubr.msk.bf16.mxu0 %vm593_vm0, %v2274_v6  ;;  %2208 = vmatprep.mubr.msk.bf16.mxu1 %vm593_vm0, %v2290_v10 }
  0x28   : > { %2177 = vmatmul.mubr.msk.bf16.gmra.mxu0 %vm593_vm0, %v2275_v7  ;;  %2209 = vmatmul.mubr.msk.bf16.gmra.mxu1 %vm593_vm0, %v2291_v12 }
  0x29   : > { %2180 = vmatprep.mubr.msk.bf16.mxu0 %vm593_vm0, %v2276_v11  ;;  %2212 = vmatprep.mubr.msk.bf16.mxu1 %vm593_vm0, %v2292_v13 }
  0x30   : > { %2181 = vmatmul.mubr.msk.bf16.gmra.mxu0 %vm593_vm0, %v2277_v14  ;;  %2213 = vmatmul.mubr.msk.bf16.gmra.mxu1 %vm593_vm0, %v2293_v16 }
  0x31   : > { %2184 = vmatprep.mubr.msk.bf16.mxu0 %vm593_vm0, %v2278_v15  ;;  %2216 = vmatprep.mubr.msk.bf16.mxu1 %vm593_vm0, %v2294_v17 }
  0x38   : > { %2185 = vmatmul.mubr.msk.bf16.gmra.mxu0 %vm593_vm0, %v2279_v18  ;;  %2217 = vmatmul.mubr.msk.bf16.gmra.mxu1 %vm593_vm0, %v2295_v20 }
  0x39   : > { %2188 = vmatprep.mubr.msk.bf16.mxu0 %vm593_vm0, %v2280_v19  ;;  %2220 = vmatprep.mubr.msk.bf16.mxu1 %vm593_vm0, %v2296_v21 }
  0x40   : > { %2189 = vmatmul.mubr.msk.bf16.gmra.mxu0 %vm593_vm0, %v2281_v22  ;;  %2221 = vmatmul.mubr.msk.bf16.gmra.mxu1 %vm593_vm0, %v2297_v24 }
  0x41   : > { %2192 = vmatprep.mubr.msk.bf16.mxu0 %vm593_vm0, %v2282_v23  ;;  %2224 = vmatprep.mubr.msk.bf16.mxu1 %vm593_vm0, %v2298_v25 }
  0x48   : > { %2193 = vmatmul.mubr.msk.bf16.gmra.mxu0 %vm593_vm0, %v2283_v26  ;;  %2225 = vmatmul.mubr.msk.bf16.gmra.mxu1 %vm593_vm0, %v2299_v28 }
  0x49   : > { %2196 = vmatprep.mubr.msk.bf16.mxu0 %vm593_vm0, %v2284_v27  ;;  %2228 = vmatprep.mubr.msk.bf16.mxu1 %vm593_vm0, %v2300_v29 }
  0x50   : > { %2197 = vmatmul.mubr.msk.bf16.gmra.mxu0 %vm593_vm0, %v2285_v30  ;;  %2229 = vmatmul.mubr.msk.bf16.gmra.mxu1 %vm593_vm0, %v2301_v32 }
  0x51   : > { %2200 = vmatprep.mubr.msk.bf16.mxu0 %vm593_vm0, %v2286_v31  ;;  %2232 = vmatprep.mubr.msk.bf16.mxu1 %vm593_vm0, %v2302_v33 }
  0x58   : > { %2201 = vmatmul.mubr.msk.bf16.gmra.mxu0 %vm593_vm0, %v2287_v34  ;;  %2233 = vmatmul.mubr.msk.bf16.gmra.mxu1 %vm593_vm0, %v2303_v35 }
  0xe0   : > { %v2174_v36 = vpop.f32.mrf.mxu0  ;;  %v2456_v40 = vpop.f32.mrf.mxu1 }
  0xe1   : > { %v1370_v48 = vmul.f32 %v2174_v36, %v2174_v36 }
  0xe2   : > { %v724_v37 = vpop.f32.mrf.mxu0  ;;  %v2459_v46 = vpop.f32.mrf.mxu1 }
  0xe3   : > { %v1368_v42 = vmul.f32 %v724_v37, %v724_v37 }
  0xe4   : > { %v2175_v38 = vpop.f32.mrf.mxu0  ;;  %v2462_v51 = vpop.f32.mrf.mxu1 }
  0xe5   : > { %v1945_v39 = vpack.c.bf16 %v2175_v38, %v2174_v36  ;;  %v2025_v53 = vpack.c.bf16 %v2462_v51, %v2456_v40  ;;  %v1371_v54 = vmul.f32 %v2175_v38, %v2175_v38 }
  0xe6   : > { %v727_v41 = vpop.f32.mrf.mxu0  ;;  %v2466_v57 = vpop.f32.mrf.mxu1 }
  0xe7   : > { %2097 = vst [vmem:[%s2454_s29 + $0x8] sm:$0xff] %v1945_v39   ;;  %v1940_v43 = vpack.c.bf16 %v727_v41, %v724_v37  ;;  %v1299_v44 = vadd.f32 %v727_v41, %v724_v37  ;;  %v1369_v45 = vmul.f32 %v727_v41, %v727_v41  ;;  %2113 = vst [vmem:[%s2454_s29 + $0x88] sm:$0xff] %v2025_v53  }
  0xe8   : > { %v2178_v47 = vpop.f32.mrf.mxu0  ;;  %v2020_v59 = vpack.c.bf16 %v2466_v57, %v2459_v46  ;;  %v2471_v0 = vpop.f32.mrf.mxu1 }
  0xe9   : > { %1941 = vst [vmem:[%s2454_s29] sm:$0xff] %v1940_v43   ;;  %v1300_v49 = vadd.f32 %v2174_v36, %v1299_v44  ;;  %v1432_v50 = vadd.f32 %v1369_v45, %v1368_v42  ;;  %v1374_v8 = vmul.f32 %v2178_v47, %v2178_v47 }
  0xea   : > { %v740_v52 = vpop.f32.mrf.mxu0  ;;  %2112 = vst [vmem:[%s2454_s29 + $0x80] sm:$0xff] %v2020_v59   ;;  %v2475_v6 = vpop.f32.mrf.mxu1 }
  0xeb   : > { %v1433_v55 = vadd.f32 %v1432_v50, %v1370_v48  ;;  %v1301_v56 = vadd.f32 %v2175_v38, %v1300_v49  ;;  %v1372_v61 = vmul.f32 %v740_v52, %v740_v52 }
  0xec   : > { %v2179_v58 = vpop.f32.mrf.mxu0  ;;  %v2478_v11 = vpop.f32.mrf.mxu1 }
  0xed   : > { %v1302_v60 = vadd.f32 %v1301_v56, %v740_v52  ;;  %v1434_v62 = vadd.f32 %v1433_v55, %v1371_v54  ;;  %v1955_v63 = vpack.c.bf16 %v2179_v58, %v2178_v47  ;;  %v2035_v13 = vpack.c.bf16 %v2478_v11, %v2471_v0 }
  0xee   : > { %v743_v1 = vpop.f32.mrf.mxu0  ;;  %v1375_v14 = vmul.f32 %v2179_v58, %v2179_v58  ;;  %v2482_v17 = vpop.f32.mrf.mxu1 }
  0xef   : > { %v1435_v2 = vadd.f32 %v1434_v62, %v1372_v61  ;;  %2099 = vst [vmem:[%s2454_s29 + $0x18] sm:$0xff] %v1955_v63   ;;  %v1950_v3 = vpack.c.bf16 %v743_v1, %v740_v52  ;;  %v1303_v4 = vadd.f32 %v1302_v60, %v743_v1  ;;  %v1373_v5 = vmul.f32 %v743_v1, %v743_v1 }
  0xf0   : > { %v2182_v7 = vpop.f32.mrf.mxu0  ;;  %2115 = vst [vmem:[%s2454_s29 + $0x98] sm:$0xff] %v2035_v13   ;;  %v2030_v19 = vpack.c.bf16 %v2482_v17, %v2475_v6  ;;  %v2487_v24 = vpop.f32.mrf.mxu1 }
  0xf1   : > { %2098 = vst [vmem:[%s2454_s29 + $0x10] sm:$0xff] %v1950_v3   ;;  %v1304_v9 = vadd.f32 %v2178_v47, %v1303_v4  ;;  %v1436_v10 = vadd.f32 %v1435_v2, %v1373_v5  ;;  %v1378_v32 = vmul.f32 %v2182_v7, %v2182_v7 }
  0xf2   : > { %v756_v12 = vpop.f32.mrf.mxu0  ;;  %2114 = vst [vmem:[%s2454_s29 + $0x90] sm:$0xff] %v2030_v19   ;;  %v2491_v30 = vpop.f32.mrf.mxu1 }
  0xf3   : > { %v1437_v15 = vadd.f32 %v1436_v10, %v1374_v8  ;;  %v1305_v16 = vadd.f32 %v2179_v58, %v1304_v9  ;;  %v1376_v21 = vmul.f32 %v756_v12, %v756_v12 }
  0xf4   : > { %v2183_v18 = vpop.f32.mrf.mxu0  ;;  %v2494_v35 = vpop.f32.mrf.mxu1 }
  0xf5   : > { %v1306_v20 = vadd.f32 %v1305_v16, %v756_v12  ;;  %v1438_v22 = vadd.f32 %v1437_v15, %v1375_v14  ;;  %v1965_v23 = vpack.c.bf16 %v2183_v18, %v2182_v7  ;;  %v2045_v37 = vpack.c.bf16 %v2494_v35, %v2487_v24 }
  0xf6   : > { %v759_v25 = vpop.f32.mrf.mxu0  ;;  %v1379_v38 = vmul.f32 %v2183_v18, %v2183_v18  ;;  %v2498_v42 = vpop.f32.mrf.mxu1 }
  0xf7   : > { %v1439_v26 = vadd.f32 %v1438_v22, %v1376_v21  ;;  %2101 = vst [vmem:[%s2454_s29 + $0x28] sm:$0xff] %v1965_v23   ;;  %v1960_v27 = vpack.c.bf16 %v759_v25, %v756_v12  ;;  %v1307_v28 = vadd.f32 %v1306_v20, %v759_v25  ;;  %v1377_v29 = vmul.f32 %v759_v25, %v759_v25 }
  0xf8   : > { %v2186_v31 = vpop.f32.mrf.mxu0  ;;  %2117 = vst [vmem:[%s2454_s29 + $0xa8] sm:$0xff] %v2045_v37   ;;  %v2040_v44 = vpack.c.bf16 %v2498_v42, %v2491_v30  ;;  %v2503_v50 = vpop.f32.mrf.mxu1 }
  0xf9   : > { %2100 = vst [vmem:[%s2454_s29 + $0x20] sm:$0xff] %v1960_v27   ;;  %v1308_v33 = vadd.f32 %v2182_v7, %v1307_v28  ;;  %v1440_v34 = vadd.f32 %v1439_v26, %v1377_v29  ;;  %v1382_v60 = vmul.f32 %v2186_v31, %v2186_v31 }
  0xfa   : > { %v772_v36 = vpop.f32.mrf.mxu0  ;;  %2116 = vst [vmem:[%s2454_s29 + $0xa0] sm:$0xff] %v2040_v44   ;;  %v2507_v58 = vpop.f32.mrf.mxu1 }
  0xfb   : > { %v1441_v39 = vadd.f32 %v1440_v34, %v1378_v32  ;;  %v1309_v41 = vadd.f32 %v2183_v18, %v1308_v33  ;;  %v1380_v47 = vmul.f32 %v772_v36, %v772_v36 }
  0xfc   : > { %v2187_v43 = vpop.f32.mrf.mxu0  ;;  %v2510_v63 = vpop.f32.mrf.mxu1 }
  0xfd   : > { %v1310_v45 = vadd.f32 %v1309_v41, %v772_v36  ;;  %v1442_v48 = vadd.f32 %v1441_v39, %v1379_v38  ;;  %v1975_v49 = vpack.c.bf16 %v2187_v43, %v2186_v31  ;;  %v2055_v2 = vpack.c.bf16 %v2510_v63, %v2503_v50 }
  0xfe   : > { %v775_v52 = vpop.f32.mrf.mxu0  ;;  %v1383_v3 = vmul.f32 %v2187_v43, %v2187_v43  ;;  %v2514_v7 = vpop.f32.mrf.mxu1 }
  0xff   : > { %v1443_v53 = vadd.f32 %v1442_v48, %v1380_v47  ;;  %2103 = vst [vmem:[%s2454_s29 + $0x38] sm:$0xff] %v1975_v49   ;;  %v1970_v54 = vpack.c.bf16 %v775_v52, %v772_v36  ;;  %v1311_v55 = vadd.f32 %v1310_v45, %v775_v52  ;;  %v1381_v56 = vmul.f32 %v775_v52, %v775_v52 }
 0x100   : > { %v2190_v59 = vpop.f32.mrf.mxu0  ;;  %2119 = vst [vmem:[%s2454_s29 + $0xb8] sm:$0xff] %v2055_v2   ;;  %v2050_v9 = vpack.c.bf16 %v2514_v7, %v2507_v58  ;;  %v2519_v15 = vpop.f32.mrf.mxu1 }
 0x101   : > { %2102 = vst [vmem:[%s2454_s29 + $0x30] sm:$0xff] %v1970_v54   ;;  %v1312_v61 = vadd.f32 %v2186_v31, %v1311_v55  ;;  %v1444_v62 = vadd.f32 %v1443_v53, %v1381_v56  ;;  %v1386_v25 = vmul.f32 %v2190_v59, %v2190_v59 }
 0x102   : > { %v788_v1 = vpop.f32.mrf.mxu0  ;;  %2118 = vst [vmem:[%s2454_s29 + $0xb0] sm:$0xff] %v2050_v9   ;;  %v2523_v22 = vpop.f32.mrf.mxu1 }
 0x103   : > { %v1445_v4 = vadd.f32 %v1444_v62, %v1382_v60  ;;  %v1313_v5 = vadd.f32 %v2187_v43, %v1312_v61  ;;  %v1384_v12 = vmul.f32 %v788_v1, %v788_v1 }
 0x104   : > { %v2191_v8 = vpop.f32.mrf.mxu0  ;;  %v2526_v28 = vpop.f32.mrf.mxu1 }
 0x105   : > { %v1314_v10 = vadd.f32 %v1313_v5, %v788_v1  ;;  %v1446_v13 = vadd.f32 %v1445_v4, %v1383_v3  ;;  %v1985_v14 = vpack.c.bf16 %v2191_v8, %v2190_v59  ;;  %v2065_v31 = vpack.c.bf16 %v2526_v28, %v2519_v15 }
 0x106   : > { %v791_v16 = vpop.f32.mrf.mxu0  ;;  %v1387_v32 = vmul.f32 %v2191_v8, %v2191_v8  ;;  %v2530_v36 = vpop.f32.mrf.mxu1 }
 0x107   : > { %v1447_v18 = vadd.f32 %v1446_v13, %v1384_v12  ;;  %2105 = vst [vmem:[%s2454_s29 + $0x48] sm:$0xff] %v1985_v14   ;;  %v1980_v19 = vpack.c.bf16 %v791_v16, %v788_v1  ;;  %v1315_v20 = vadd.f32 %v1314_v10, %v791_v16  ;;  %v1385_v21 = vmul.f32 %v791_v16, %v791_v16 }
 0x108   : > { %v2194_v23 = vpop.f32.mrf.mxu0  ;;  %2121 = vst [vmem:[%s2454_s29 + $0xc8] sm:$0xff] %v2065_v31   ;;  %v2060_v38 = vpack.c.bf16 %v2530_v36, %v2523_v22  ;;  %v2535_v45 = vpop.f32.mrf.mxu1 }
 0x109   : > { %2104 = vst [vmem:[%s2454_s29 + $0x40] sm:$0xff] %v1980_v19   ;;  %v1316_v26 = vadd.f32 %v2190_v59, %v1315_v20  ;;  %v1448_v27 = vadd.f32 %v1447_v18, %v1385_v21  ;;  %v1390_v56 = vmul.f32 %v2194_v23, %v2194_v23 }
 0x10a   : > { %v804_v29 = vpop.f32.mrf.mxu0  ;;  %2120 = vst [vmem:[%s2454_s29 + $0xc0] sm:$0xff] %v2060_v38   ;;  %v2539_v54 = vpop.f32.mrf.mxu1 }
 0x10b   : > { %v1449_v33 = vadd.f32 %v1448_v27, %v1386_v25  ;;  %v1317_v34 = vadd.f32 %v2191_v8, %v1316_v26  ;;  %v1388_v41 = vmul.f32 %v804_v29, %v804_v29 }
 0x10c   : > { %v2195_v37 = vpop.f32.mrf.mxu0  ;;  %v2542_v61 = vpop.f32.mrf.mxu1 }
 0x10d   : > { %v1318_v39 = vadd.f32 %v1317_v34, %v804_v29  ;;  %v1450_v43 = vadd.f32 %v1449_v33, %v1387_v32  ;;  %v1995_v44 = vpack.c.bf16 %v2195_v37, %v2194_v23  ;;  %v2075_v1 = vpack.c.bf16 %v2542_v61, %v2535_v45 }
 0x10e   : > { %v807_v47 = vpop.f32.mrf.mxu0  ;;  %v1391_v2 = vmul.f32 %v2195_v37, %v2195_v37  ;;  %v2546_v5 = vpop.f32.mrf.mxu1 }
 0x10f   : > { %v1451_v48 = vadd.f32 %v1450_v43, %v1388_v41  ;;  %2107 = vst [vmem:[%s2454_s29 + $0x58] sm:$0xff] %v1995_v44   ;;  %v1990_v49 = vpack.c.bf16 %v807_v47, %v804_v29  ;;  %v1319_v52 = vadd.f32 %v1318_v39, %v807_v47  ;;  %v1389_v53 = vmul.f32 %v807_v47, %v807_v47 }
 0x110   : > { %v2198_v55 = vpop.f32.mrf.mxu0  ;;  %2123 = vst [vmem:[%s2454_s29 + $0xd8] sm:$0xff] %v2075_v1   ;;  %v2070_v9 = vpack.c.bf16 %v2546_v5, %v2539_v54  ;;  %v2551_v16 = vpop.f32.mrf.mxu1 }
 0x111   : > { %2106 = vst [vmem:[%s2454_s29 + $0x50] sm:$0xff] %v1990_v49   ;;  %v1320_v59 = vadd.f32 %v2194_v23, %v1319_v52  ;;  %v1452_v60 = vadd.f32 %v1451_v48, %v1389_v53  ;;  %v1394_v27 = vmul.f32 %v2198_v55, %v2198_v55 }
 0x112   : > { %v820_v62 = vpop.f32.mrf.mxu0  ;;  %2122 = vst [vmem:[%s2454_s29 + $0xd0] sm:$0xff] %v2070_v9   ;;  %v2555_v25 = vpop.f32.mrf.mxu1 }
 0x113   : > { %v1453_v3 = vadd.f32 %v1452_v60, %v1390_v56  ;;  %v1321_v4 = vadd.f32 %v2195_v37, %v1320_v59  ;;  %v1392_v12 = vmul.f32 %v820_v62, %v820_v62 }
 0x114   : > { %v2199_v8 = vpop.f32.mrf.mxu0  ;;  %v2558_v32 = vpop.f32.mrf.mxu1 }
 0x115   : > { %v1322_v10 = vadd.f32 %v1321_v4, %v820_v62  ;;  %v1454_v13 = vadd.f32 %v1453_v3, %v1391_v2  ;;  %v2005_v14 = vpack.c.bf16 %v2199_v8, %v2198_v55  ;;  %v2085_v34 = vpack.c.bf16 %v2558_v32, %v2551_v16 }
 0x116   : > { %v823_v18 = vpop.f32.mrf.mxu0  ;;  %v1395_v37 = vmul.f32 %v2199_v8, %v2199_v8  ;;  %v2562_v41 = vpop.f32.mrf.mxu1 }
 0x117   : > { %v1455_v19 = vadd.f32 %v1454_v13, %v1392_v12  ;;  %2109 = vst [vmem:[%s2454_s29 + $0x68] sm:$0xff] %v2005_v14   ;;  %v2000_v20 = vpack.c.bf16 %v823_v18, %v820_v62  ;;  %v1323_v21 = vadd.f32 %v1322_v10, %v823_v18  ;;  %v1393_v23 = vmul.f32 %v823_v18, %v823_v18 }
 0x118   : > { %v2202_v26 = vpop.f32.mrf.mxu0  ;;  %2125 = vst [vmem:[%s2454_s29 + $0xe8] sm:$0xff] %v2085_v34   ;;  %v2080_v44 = vpack.c.bf16 %v2562_v41, %v2555_v25  ;;  %v2567_v53 = vpop.f32.mrf.mxu1  ;;  %v1403_v34 = vmul.f32 %v2462_v51, %v2462_v51 }
 0x119   : > { %2108 = vst [vmem:[%s2454_s29 + $0x60] sm:$0xff] %v2000_v20   ;;  %v1324_v29 = vadd.f32 %v2198_v55, %v1323_v21  ;;  %v1456_v31 = vadd.f32 %v1455_v19, %v1393_v23  ;;  %v1398_v2 = vmul.f32 %v2202_v26, %v2202_v26  ;;  %v1400_v19 = vmul.f32 %v2459_v46, %v2459_v46 }
 0x11a   : > { %v836_v33 = vpop.f32.mrf.mxu0  ;;  %2124 = vst [vmem:[%s2454_s29 + $0xe0] sm:$0xff] %v2080_v44   ;;  %v2571_v1 = vpop.f32.mrf.mxu1 }
 0x11b   : > { %v1457_v38 = vadd.f32 %v1456_v31, %v1394_v27  ;;  %v1325_v39 = vadd.f32 %v2199_v8, %v1324_v29  ;;  %v1396_v48 = vmul.f32 %v836_v33, %v836_v33  ;;  %v1402_v29 = vmul.f32 %v2456_v40, %v2456_v40 }
 0x11c   : > { %v2203_v43 = vpop.f32.mrf.mxu0  ;;  %v2574_v8 = vpop.f32.mrf.mxu1 }
 0x11d   : > { %v1326_v47 = vadd.f32 %v1325_v39, %v836_v33  ;;  %v1458_v49 = vadd.f32 %v1457_v38, %v1395_v37  ;;  %v2015_v52 = vpack.c.bf16 %v2203_v43, %v2202_v26  ;;  %v2095_v9 = vpack.c.bf16 %v2574_v8, %v2567_v53 }
 0x11e   : > { %v839_v55 = vpop.f32.mrf.mxu0  ;;  %v1399_v10 = vmul.f32 %v2203_v43, %v2203_v43  ;;  %v2578_v14 = vpop.f32.mrf.mxu1  ;;  %v1404_v39 = vmul.f32 %v2475_v6, %v2475_v6 }
 0x11f   : > { %v1459_v56 = vadd.f32 %v1458_v49, %v1396_v48  ;;  %2111 = vst [vmem:[%s2454_s29 + $0x78] sm:$0xff] %v2015_v52   ;;  %v2010_v59 = vpack.c.bf16 %v839_v55, %v836_v33  ;;  %v1327_v60 = vadd.f32 %v1326_v47, %v839_v55  ;;  %v1397_v62 = vmul.f32 %v839_v55, %v839_v55 }
 0x120   : > { %2127 = vst [vmem:[%s2454_s29 + $0xf8] sm:$0xff] %v2095_v9   ;;  %v2090_v18 = vpack.c.bf16 %v2578_v14, %v2571_v1  ;;  %v1405_v47 = vmul.f32 %v2482_v17, %v2482_v17 }
 0x121   : > { %2110 = vst [vmem:[%s2454_s29 + $0x70] sm:$0xff] %v2010_v59   ;;  %v1328_v3 = vadd.f32 %v2202_v26, %v1327_v60  ;;  %v1460_v4 = vadd.f32 %v1459_v56, %v1397_v62  ;;  %v1401_v26 = vmul.f32 %v2466_v57, %v2466_v57  ;;  %v1408_v56 = vmul.f32 %v2491_v30, %v2491_v30 }
 0x122   : > { %2126 = vst [vmem:[%s2454_s29 + $0xf0] sm:$0xff] %v2090_v18   ;;  %v1409_v62 = vmul.f32 %v2498_v42, %v2498_v42  ;;  %v1413_v18 = vmul.f32 %v2514_v7, %v2514_v7 }
 0x123   : > { %v1329_v12 = vadd.f32 %v2203_v43, %v1328_v3  ;;  %v1461_v13 = vadd.f32 %v1460_v4, %v1398_v2 }
 0x125   : > { %v1462_v20 = vadd.f32 %v1461_v13, %v1399_v10  ;;  %v1330_v21 = vadd.f32 %v1329_v12, %v2459_v46  ;;  %v1412_v10 = vmul.f32 %v2507_v58, %v2507_v58 }
 0x127   : > { %v1331_v23 = vadd.f32 %v1330_v21, %v2466_v57  ;;  %v1463_v27 = vadd.f32 %v1462_v20, %v1400_v19 }
 0x129   : > { %v1332_v31 = vadd.f32 %v2456_v40, %v1331_v23  ;;  %v1464_v33 = vadd.f32 %v1463_v27, %v1401_v26  ;;  %v1406_v40 = vmul.f32 %v2471_v0, %v2471_v0  ;;  %v1416_v26 = vmul.f32 %v2523_v22, %v2523_v22 }
 0x12b   : > { %v1465_v37 = vadd.f32 %v1464_v33, %v1402_v29  ;;  %v1333_v38 = vadd.f32 %v2462_v51, %v1332_v31  ;;  %v1407_v51 = vmul.f32 %v2478_v11, %v2478_v11  ;;  %v1417_v31 = vmul.f32 %v2530_v36, %v2530_v36 }
 0x12d   : > { %v1334_v46 = vadd.f32 %v1333_v38, %v2475_v6  ;;  %v1466_v43 = vadd.f32 %v1465_v37, %v1403_v34 }
 0x12f   : > { %v1467_v57 = vadd.f32 %v1466_v43, %v1404_v39  ;;  %v1335_v44 = vadd.f32 %v1334_v46, %v2482_v17  ;;  %v1420_v46 = vmul.f32 %v2539_v54, %v2539_v54 }
 0x131   : > { %v1336_v48 = vadd.f32 %v2471_v0, %v1335_v44  ;;  %v1468_v49 = vadd.f32 %v1467_v57, %v1405_v47  ;;  %v1410_v0 = vmul.f32 %v2487_v24, %v2487_v24  ;;  %v1421_v57 = vmul.f32 %v2546_v5, %v2546_v5 }
 0x133   : > { %v1469_v52 = vadd.f32 %v1468_v49, %v1406_v40  ;;  %v1337_v55 = vadd.f32 %v2478_v11, %v1336_v48  ;;  %v1411_v11 = vmul.f32 %v2494_v35, %v2494_v35  ;;  %v1424_v49 = vmul.f32 %v2555_v25, %v2555_v25 }
 0x135   : > { %v1338_v6 = vadd.f32 %v1337_v55, %v2491_v30  ;;  %v1470_v59 = vadd.f32 %v1469_v52, %v1407_v51  ;;  %v1425_v55 = vmul.f32 %v2562_v41, %v2562_v41 }
 0x137   : > { %v1471_v60 = vadd.f32 %v1470_v59, %v1408_v56  ;;  %v1339_v17 = vadd.f32 %v1338_v6, %v2498_v42 }
 0x139   : > { %v1340_v2 = vadd.f32 %v2487_v24, %v1339_v17  ;;  %v1472_v3 = vadd.f32 %v1471_v60, %v1409_v62  ;;  %v1414_v24 = vmul.f32 %v2503_v50, %v2503_v50  ;;  %v1428_v17 = vmul.f32 %v2571_v1, %v2571_v1 }
 0x13b   : > { %v1473_v4 = vadd.f32 %v1472_v3, %v1410_v0  ;;  %v1341_v9 = vadd.f32 %v2494_v35, %v1340_v2  ;;  %v1415_v35 = vmul.f32 %v2510_v63, %v2510_v63  ;;  %v1430_v2 = vmul.f32 %v2567_v53, %v2567_v53 }
 0x13d   : > { %v1342_v30 = vadd.f32 %v1341_v9, %v2507_v58  ;;  %v1474_v12 = vadd.f32 %v1473_v4, %v1411_v11 }
 0x13f   : > { %v1475_v13 = vadd.f32 %v1474_v12, %v1412_v10  ;;  %v1343_v42 = vadd.f32 %v1342_v30, %v2514_v7 }
 0x141   : > { %v1344_v19 = vadd.f32 %v2503_v50, %v1343_v42  ;;  %v1476_v20 = vadd.f32 %v1475_v13, %v1413_v18  ;;  %v1418_v50 = vmul.f32 %v2519_v15, %v2519_v15 }
 0x143   : > { %v1477_v21 = vadd.f32 %v1476_v20, %v1414_v24  ;;  %v1345_v23 = vadd.f32 %v2510_v63, %v1344_v19  ;;  %v1419_v63 = vmul.f32 %v2526_v28, %v2526_v28 }
 0x145   : > { %v1346_v58 = vadd.f32 %v1345_v23, %v2523_v22  ;;  %v1478_v27 = vadd.f32 %v1477_v21, %v1415_v35 }
 0x147   : > { %v1479_v29 = vadd.f32 %v1478_v27, %v1416_v26  ;;  %v1347_v7 = vadd.f32 %v1346_v58, %v2530_v36 }
 0x149   : > { %v1348_v33 = vadd.f32 %v2519_v15, %v1347_v7  ;;  %v1480_v34 = vadd.f32 %v1479_v29, %v1417_v31  ;;  %v1422_v15 = vmul.f32 %v2535_v45, %v2535_v45 }
 0x14b   : > { %v1481_v37 = vadd.f32 %v1480_v34, %v1418_v50  ;;  %v1349_v38 = vadd.f32 %v2526_v28, %v1348_v33  ;;  %v1423_v28 = vmul.f32 %v2542_v61, %v2542_v61 }
 0x14d   : > { %v1350_v22 = vadd.f32 %v1349_v38, %v2539_v54  ;;  %v1482_v39 = vadd.f32 %v1481_v37, %v1419_v63 }
 0x14f   : > { %v1483_v43 = vadd.f32 %v1482_v39, %v1420_v46  ;;  %v1351_v36 = vadd.f32 %v1350_v22, %v2546_v5 }
 0x151   : > { %v1352_v44 = vadd.f32 %v2535_v45, %v1351_v36  ;;  %v1484_v47 = vadd.f32 %v1483_v43, %v1421_v57  ;;  %v1426_v45 = vmul.f32 %v2551_v16, %v2551_v16 }
 0x153   : > { %v1485_v40 = vadd.f32 %v1484_v47, %v1422_v15  ;;  %v1353_v48 = vadd.f32 %v2542_v61, %v1352_v44  ;;  %v1427_v61 = vmul.f32 %v2558_v32, %v2558_v32 }
 0x155   : > { %v1354_v54 = vadd.f32 %v1353_v48, %v2555_v25  ;;  %v1486_v51 = vadd.f32 %v1485_v40, %v1423_v28 }
 0x157   : > { %v1487_v52 = vadd.f32 %v1486_v51, %v1424_v49  ;;  %v1355_v5 = vadd.f32 %v1354_v54, %v2562_v41 }
 0x159   : > { %v1356_v6 = vadd.f32 %v2551_v16, %v1355_v5  ;;  %v1488_v56 = vadd.f32 %v1487_v52, %v1425_v55  ;;  %v1429_v16 = vmul.f32 %v2578_v14, %v2578_v14 }
 0x15b   : > { %v1489_v59 = vadd.f32 %v1488_v56, %v1426_v45  ;;  %v1357_v60 = vadd.f32 %v2558_v32, %v1356_v6  ;;  %v1431_v32 = vmul.f32 %v2574_v8, %v2574_v8 }
 0x15d   : > { %v1358_v25 = vadd.f32 %v1357_v60, %v2571_v1  ;;  %v1490_v62 = vadd.f32 %v1489_v59, %v1427_v61 }
 0x15f   : > { %v1491_v41 = vadd.f32 %v1490_v62, %v1428_v17  ;;  %v1359_v0 = vadd.f32 %v1358_v25, %v2578_v14 }
 0x161   : > { %v1360_v3 = vadd.f32 %v2567_v53, %v1359_v0  ;;  %v1492_v11 = vadd.f32 %v1491_v41, %v1429_v16 }
 0x163   : > { %v1361_v4 = vadd.f32 %v2574_v8, %v1360_v3  ;;  %v1493_v1 = vadd.f32 %v1492_v11, %v1430_v2 }
 0x165   : > { %v1362_v9 = vrot.slane %v1361_v4, 4  ;;  %v1494_v30 = vadd.f32 %v1493_v1, %v1431_v32 }
 0x167   : > { %v1363_v10 = vadd.f32 %v1362_v9, %v1361_v4  ;;  %v1495_v12 = vrot.slane %v1494_v30, 4 }
 0x169   : > { %v1364_v13 = vrot.slane %v1363_v10, 2  ;;  %v1496_v42 = vadd.f32 %v1495_v12, %v1494_v30 }
 0x16b   : > { %v1365_v14 = vadd.f32 %v1364_v13, %v1363_v10  ;;  %v1497_v18 = vrot.slane %v1496_v42, 2 }
 0x16d   : > { %v1366_v24 = vrot.slane %v1365_v14, 1  ;;  %v1498_v19 = vadd.f32 %v1497_v18, %v1496_v42 }
 0x16f   : > { %v1367_v53 = vadd.f32 %v1366_v24, %v1365_v14  ;;  %v1499_v20 = vrot.slane %v1498_v19, 1 }
 0x171   : > { %v1500_v8 = vadd.f32 %v1499_v20, %v1498_v19  ;;  %1501 = vst [vmem:[%s325_s7] sm:$0xff] %v1367_v53 }
 0x173   : > { %1502 = vst [vmem:[%s335_s10] sm:$0xff] %v1500_v8 }
 0x174 PF: > { %s15_s17 = sadd.s32 1, %s2326_s17   ;;  %s2701_s15 = smov %s2322_s16 }
 0x175   : > { %p12_p5 = scmp.ge.s32.totalorder %s15_s17, 6   ;;  %s2702_s16 = smov %s2704_s18 }
 0x177   :  { %14 = sbr.rel (!%p12_p5) target bundleno = 2 (0x2), region = 85 }

// kernel: _lambda_.17
= control target key start
LH: loop header
LB: loop body
LE: loop exit
PB: predicated region body
PF: predicated region fallthrough
CT: control target
= control target key end

     0   :  { %s1550_s9 = smov 0   ;;  %s1552_s10 = smov 0   ;;  %s1740_s0 = inlined_call_operand.vmem [shape: bf16[4,2048,32], index: 0, kind: input, shape index: {}]   ;;  %s1741_s1 = inlined_call_operand.vmem [shape: bf16[4,32,128], index: 1, kind: input, shape index: {}]   ;;  %s1742_s2 = inlined_call_operand.vmem [shape: f32[4,2048,128], index: 2, kind: output, shape index: {}]  }
   0x1   :  { %s1554_s11 = smov 0   ;;  %s1556_s12 = smov 0  }
   0x2   :  { %s1558_s13 = smov 0  }
   0x3 LB: > { %s27_s14 = sadd.s32 1, %s1525_s11  ;;  %s31_s15 = sadd.s32 1, %s1529_s12  ;;  %s1533_s13 = sphi %s1558_s13, %s12_s13   ;;  %s1529_s12 = sphi %s1556_s12, %s1746_s12   ;;  %s1525_s11 = sphi %s1554_s11, %s1745_s11   ;;  %s1521_s10 = sphi %s1552_s10, %s1744_s10   ;;  %s1517_s9 = sphi %s1550_s9, %s1743_s9  }
   0x4   : > { %p29_p0 = scmp.ge.s32.totalorder %s27_s14, 4  ;;  %p1109_p1 = scmp.ge.s32.totalorder %s1533_s13, 1 }
   0x5   : > { %p157_p2 = scmp.lt.s32.totalorder %s1533_s13, 17 }
   0x6   : > { %s1748_s14 = smov (%p29_p0, %s27_s14), 0  ;;  %s1750_s15 = smov (!%p29_p0, %s31_s15), %s1529_s12 }
   0x7   : > { %p158_p3 = pnand %p1109_p1, %p157_p2  ;;  %p33_p4 = scmp.ge.s32.totalorder %s1750_s15, 4 }
   0x8   : > { %s1110_s16 = sshll.u32 (!%p158_p3), %s1517_s9, 6  ;;  %p199_p5 = scmp.lt.s32.totalorder (!%p158_p3), %s1521_s10, 3 }
   0x9   : > { %s1752_s15 = smov (%p33_p4, %s1750_s15), 0  ;;  %161 = sbr.rel (%p158_p3) target bundleno = 297 (0x129), region = 28 }
   0xa   : > { %p201_p6 = scmp.lt.s32.totalorder (!%p158_p3), %s1110_s16, 255 }
   0xe   : > { %s1754_s10 = smov (!%p199_p5, %s1521_s10), 3  ;;  %s1756_s16 = smov (!%p201_p6, %s1110_s16), 255  ;;  %vm470_vm0 = vcmask 261120  }
   0xf   : > { %s1111_s17 = sshll.u32 %s1754_s10, 8  ;;  %s1186_s18 = sshll.u32 %s1754_s10, 4 }
  0x10   : > { %s1580_s19 = sadd.s32 %s1111_s17, %s1756_s16  ;;  %s215_s22 = scalar_lea.vmem %s1741_s1, %s1186_s18 }
  0x11   : > { %s1112_s23 = sshll.u32 %s1580_s19, 2  ;;  %v1333_v0 = vld [vmem:[%s215_s22 + $0x8] sm:$0xff]   ;;  %v1334_v1 = vld [vmem:[%s215_s22] sm:$0xff]   ;;  %s1117_s27 = sshll.u32 %s1580_s19, 3 }
  0x12   : > { %s1589_s26 = scalar_lea.vmem %s1740_s0, %s1112_s23  ;;  %1221 = vmatprep.subr.bf16.mxu0 %v1333_v0  ;;  %1289 = vmatprep.subr.bf16.mxu1 %v1333_v0  ;;  %s1659_s30 = scalar_lea.vmem %s1742_s2, %s1117_s27 }
  0x13   : > { %v1335_v2 = vld [vmem:[%s1589_s26] sm:$0xff]   ;;  %1222 = vmatpush3.bf16.msra.mxu0 %v1333_v0  ;;  %1291 = vmatpush3.bf16.msra.mxu1 %v1333_v0  ;;  %v1337_v4 = vld [vmem:[%s1589_s26 + $0x8] sm:$0xff]   ;;  %v1339_v6 = vld [vmem:[%s1589_s26 + $0x10] sm:$0xff]  }
  0x14   : > { %v1336_v3 = vld [vmem:[%s1589_s26 + $0x80] sm:$0xff]   ;;  %1223 = vmatprep.subr.bf16.mxu0 %v1334_v1  ;;  %1290 = vmatprep.subr.bf16.mxu1 %v1334_v1  ;;  %v1338_v5 = vld [vmem:[%s1589_s26 + $0x88] sm:$0xff]   ;;  %v1340_v7 = vld [vmem:[%s1589_s26 + $0x90] sm:$0xff]  }
  0x15   : > { %1225 = vmatprep.mubr.msk.bf16.mxu0 %vm470_vm0, %v1335_v2  ;;  %1257 = vmatprep.mubr.msk.bf16.mxu1 %vm470_vm0, %v1336_v3  ;;  %v1341_v8 = vld [vmem:[%s1589_s26 + $0x18] sm:$0xff]   ;;  %v1343_v10 = vld [vmem:[%s1589_s26 + $0x20] sm:$0xff]   ;;  %v1345_v12 = vld [vmem:[%s1589_s26 + $0x28] sm:$0xff]  }
  0x16   : > { %v1342_v9 = vld [vmem:[%s1589_s26 + $0x98] sm:$0xff]   ;;  %v1344_v11 = vld [vmem:[%s1589_s26 + $0xa0] sm:$0xff]   ;;  %v1346_v13 = vld [vmem:[%s1589_s26 + $0xa8] sm:$0xff]  }
  0x17   : > { %1224 = vmatpush3.bf16.msra.mxu0 %v1334_v1  ;;  %1292 = vmatpush3.bf16.msra.mxu1 %v1334_v1  ;;  %v1347_v14 = vld [vmem:[%s1589_s26 + $0x30] sm:$0xff]   ;;  %v1349_v16 = vld [vmem:[%s1589_s26 + $0x38] sm:$0xff]   ;;  %v1351_v18 = vld [vmem:[%s1589_s26 + $0x40] sm:$0xff]  }
  0x18   : > { %v1348_v15 = vld [vmem:[%s1589_s26 + $0xb0] sm:$0xff]   ;;  %v1350_v17 = vld [vmem:[%s1589_s26 + $0xb8] sm:$0xff]   ;;  %v1352_v19 = vld [vmem:[%s1589_s26 + $0xc0] sm:$0xff]  }
  0x19   : > { %v1353_v20 = vld [vmem:[%s1589_s26 + $0x48] sm:$0xff]   ;;  %v1355_v22 = vld [vmem:[%s1589_s26 + $0x50] sm:$0xff]   ;;  %v1357_v24 = vld [vmem:[%s1589_s26 + $0x58] sm:$0xff]  }
  0x1a   : > { %1226 = vmatmul.mubr.msk.bf16.vlgmr.msra.gmra.mxu0 %vm470_vm0, %v1337_v4  ;;  %1258 = vmatmul.mubr.msk.bf16.vlgmr.msra.gmra.mxu1 %vm470_vm0, %v1338_v5  ;;  %v1354_v21 = vld [vmem:[%s1589_s26 + $0xc8] sm:$0xff]   ;;  %v1356_v23 = vld [vmem:[%s1589_s26 + $0xd0] sm:$0xff]   ;;  %v1358_v25 = vld [vmem:[%s1589_s26 + $0xd8] sm:$0xff]  }
  0x1b   : > { %1229 = vmatprep.mubr.msk.bf16.mxu0 %vm470_vm0, %v1339_v6  ;;  %1261 = vmatprep.mubr.msk.bf16.mxu1 %vm470_vm0, %v1340_v7  ;;  %v1359_v26 = vld [vmem:[%s1589_s26 + $0x60] sm:$0xff]   ;;  %v1361_v28 = vld [vmem:[%s1589_s26 + $0x68] sm:$0xff]   ;;  %v1363_v30 = vld [vmem:[%s1589_s26 + $0x70] sm:$0xff]  }
  0x1c   : > { %v1360_v27 = vld [vmem:[%s1589_s26 + $0xe0] sm:$0xff]   ;;  %v1362_v29 = vld [vmem:[%s1589_s26 + $0xe8] sm:$0xff]   ;;  %v1364_v31 = vld [vmem:[%s1589_s26 + $0xf0] sm:$0xff]  }
  0x1d   : > { %v1365_v32 = vld [vmem:[%s1589_s26 + $0x78] sm:$0xff]  }
  0x1e   : > { %v1366_v33 = vld [vmem:[%s1589_s26 + $0xf8] sm:$0xff]  }
  0x22   : > { %1230 = vmatmul.mubr.msk.bf16.gmra.mxu0 %vm470_vm0, %v1341_v8  ;;  %1262 = vmatmul.mubr.msk.bf16.gmra.mxu1 %vm470_vm0, %v1342_v9 }
  0x23   : > { %1233 = vmatprep.mubr.msk.bf16.mxu0 %vm470_vm0, %v1343_v10  ;;  %1265 = vmatprep.mubr.msk.bf16.mxu1 %vm470_vm0, %v1344_v11 }
  0x2a   : > { %1234 = vmatmul.mubr.msk.bf16.gmra.mxu0 %vm470_vm0, %v1345_v12  ;;  %1266 = vmatmul.mubr.msk.bf16.gmra.mxu1 %vm470_vm0, %v1346_v13 }
  0x2b   : > { %1237 = vmatprep.mubr.msk.bf16.mxu0 %vm470_vm0, %v1347_v14  ;;  %1269 = vmatprep.mubr.msk.bf16.mxu1 %vm470_vm0, %v1348_v15 }
  0x32   : > { %1238 = vmatmul.mubr.msk.bf16.gmra.mxu0 %vm470_vm0, %v1349_v16  ;;  %1270 = vmatmul.mubr.msk.bf16.gmra.mxu1 %vm470_vm0, %v1350_v17 }
  0x33   : > { %1241 = vmatprep.mubr.msk.bf16.mxu0 %vm470_vm0, %v1351_v18  ;;  %1273 = vmatprep.mubr.msk.bf16.mxu1 %vm470_vm0, %v1352_v19 }
  0x3a   : > { %1242 = vmatmul.mubr.msk.bf16.gmra.mxu0 %vm470_vm0, %v1353_v20  ;;  %1274 = vmatmul.mubr.msk.bf16.gmra.mxu1 %vm470_vm0, %v1354_v21 }
  0x3b   : > { %1245 = vmatprep.mubr.msk.bf16.mxu0 %vm470_vm0, %v1355_v22  ;;  %1277 = vmatprep.mubr.msk.bf16.mxu1 %vm470_vm0, %v1356_v23 }
  0x42   : > { %1246 = vmatmul.mubr.msk.bf16.gmra.mxu0 %vm470_vm0, %v1357_v24  ;;  %1278 = vmatmul.mubr.msk.bf16.gmra.mxu1 %vm470_vm0, %v1358_v25 }
  0x43   : > { %1249 = vmatprep.mubr.msk.bf16.mxu0 %vm470_vm0, %v1359_v26  ;;  %1281 = vmatprep.mubr.msk.bf16.mxu1 %vm470_vm0, %v1360_v27 }
  0x4a   : > { %1250 = vmatmul.mubr.msk.bf16.gmra.mxu0 %vm470_vm0, %v1361_v28  ;;  %1282 = vmatmul.mubr.msk.bf16.gmra.mxu1 %vm470_vm0, %v1362_v29 }
  0x4b   : > { %1253 = vmatprep.mubr.msk.bf16.mxu0 %vm470_vm0, %v1363_v30  ;;  %1285 = vmatprep.mubr.msk.bf16.mxu1 %vm470_vm0, %v1364_v31 }
  0x52   : > { %1254 = vmatmul.mubr.msk.bf16.gmra.mxu0 %vm470_vm0, %v1365_v32  ;;  %1286 = vmatmul.mubr.msk.bf16.gmra.mxu1 %vm470_vm0, %v1366_v33 }
  0xda   : > { %v1227_v34 = vpop.f32.mrf.mxu0  ;;  %v1259_v35 = vpop.f32.mrf.mxu1 }
  0xdb   : > { %1367 = vtanh.f32 %v1227_v34 }
  0xdc   : > { %1369 = vtanh.f32 %v1259_v35  ;;  %v601_v36 = vpop.f32.mrf.mxu0  ;;  %v729_v37 = vpop.f32.mrf.mxu1 }
  0xdd   : > { %1371 = vtanh.f32 %v601_v36 }
  0xde   : > { %1373 = vtanh.f32 %v729_v37  ;;  %v1228_v38 = vpop.f32.mrf.mxu0  ;;  %v1260_v39 = vpop.f32.mrf.mxu1 }
  0xdf   : > { %1375 = vtanh.f32 %v1228_v38 }
  0xe0   : > { %1377 = vtanh.f32 %v1260_v39  ;;  %v604_v40 = vpop.f32.mrf.mxu0  ;;  %v732_v41 = vpop.f32.mrf.mxu1 }
  0xe1   : > { %1379 = vtanh.f32 %v604_v40 }
  0xe2   : > { %1381 = vtanh.f32 %v732_v41  ;;  %v1231_v42 = vpop.f32.mrf.mxu0  ;;  %v1263_v43 = vpop.f32.mrf.mxu1 }
  0xe3   : > { %1383 = vtanh.f32 %v1231_v42 }
  0xe4   : > { %1385 = vtanh.f32 %v1263_v43  ;;  %v617_v44 = vpop.f32.mrf.mxu0  ;;  %v745_v45 = vpop.f32.mrf.mxu1 }
  0xe5   : > { %1387 = vtanh.f32 %v617_v44 }
  0xe6   : > { %1389 = vtanh.f32 %v745_v45  ;;  %v1232_v46 = vpop.f32.mrf.mxu0  ;;  %v1264_v47 = vpop.f32.mrf.mxu1 }
  0xe7   : > { %1391 = vtanh.f32 %v1232_v46 }
  0xe8   : > { %v1368_v48 = vpop.eup %1367  ;;  %1393 = vtanh.f32 %v1264_v47  ;;  %v620_v49 = vpop.f32.mrf.mxu0 }
  0xe9   : > { %v748_v50 = vpop.f32.mrf.mxu1  ;;  %v1370_v51 = vpop.eup %1369  ;;  %922 = vst [vmem:[%s1659_s30 + $0x10] sm:$0xff] %v1368_v48  ;;  %1395 = vtanh.f32 %v620_v49 }
  0xea   : > { %v1372_v52 = vpop.eup %1371  ;;  %954 = vst [vmem:[%s1659_s30 + $0x110] sm:$0xff] %v1370_v51  ;;  %1397 = vtanh.f32 %v748_v50  ;;  %v1235_v53 = vpop.f32.mrf.mxu0 }
  0xeb   : > { %v1267_v54 = vpop.f32.mrf.mxu1  ;;  %v1374_v55 = vpop.eup %1373  ;;  %920 = vst [vmem:[%s1659_s30] sm:$0xff] %v1372_v52  ;;  %1399 = vtanh.f32 %v1235_v53 }
  0xec   : > { %v1376_v56 = vpop.eup %1375  ;;  %952 = vst [vmem:[%s1659_s30 + $0x100] sm:$0xff] %v1374_v55  ;;  %1401 = vtanh.f32 %v1267_v54  ;;  %v633_v57 = vpop.f32.mrf.mxu0 }
  0xed   : > { %v761_v58 = vpop.f32.mrf.mxu1  ;;  %v1378_v59 = vpop.eup %1377  ;;  %923 = vst [vmem:[%s1659_s30 + $0x18] sm:$0xff] %v1376_v56  ;;  %1403 = vtanh.f32 %v633_v57 }
  0xee   : > { %v1380_v60 = vpop.eup %1379  ;;  %955 = vst [vmem:[%s1659_s30 + $0x118] sm:$0xff] %v1378_v59  ;;  %1405 = vtanh.f32 %v761_v58  ;;  %v1236_v61 = vpop.f32.mrf.mxu0 }
  0xef   : > { %v1268_v62 = vpop.f32.mrf.mxu1  ;;  %v1382_v63 = vpop.eup %1381  ;;  %921 = vst [vmem:[%s1659_s30 + $0x8] sm:$0xff] %v1380_v60  ;;  %1407 = vtanh.f32 %v1236_v61 }
  0xf0   : > { %v1384_v0 = vpop.eup %1383  ;;  %953 = vst [vmem:[%s1659_s30 + $0x108] sm:$0xff] %v1382_v63  ;;  %1409 = vtanh.f32 %v1268_v62  ;;  %v636_v1 = vpop.f32.mrf.mxu0 }
  0xf1   : > { %v764_v2 = vpop.f32.mrf.mxu1  ;;  %v1386_v3 = vpop.eup %1385  ;;  %926 = vst [vmem:[%s1659_s30 + $0x30] sm:$0xff] %v1384_v0  ;;  %1411 = vtanh.f32 %v636_v1 }
  0xf2   : > { %v1388_v4 = vpop.eup %1387  ;;  %958 = vst [vmem:[%s1659_s30 + $0x130] sm:$0xff] %v1386_v3  ;;  %1413 = vtanh.f32 %v764_v2  ;;  %v1239_v5 = vpop.f32.mrf.mxu0 }
  0xf3   : > { %v1271_v6 = vpop.f32.mrf.mxu1  ;;  %v1390_v7 = vpop.eup %1389  ;;  %924 = vst [vmem:[%s1659_s30 + $0x20] sm:$0xff] %v1388_v4  ;;  %1415 = vtanh.f32 %v1239_v5 }
  0xf4   : > { %v1392_v8 = vpop.eup %1391  ;;  %956 = vst [vmem:[%s1659_s30 + $0x120] sm:$0xff] %v1390_v7  ;;  %1417 = vtanh.f32 %v1271_v6  ;;  %v649_v9 = vpop.f32.mrf.mxu0 }
  0xf5   : > { %v777_v10 = vpop.f32.mrf.mxu1  ;;  %v1394_v11 = vpop.eup %1393  ;;  %927 = vst [vmem:[%s1659_s30 + $0x38] sm:$0xff] %v1392_v8  ;;  %1419 = vtanh.f32 %v649_v9 }
  0xf6   : > { %v1396_v12 = vpop.eup %1395  ;;  %959 = vst [vmem:[%s1659_s30 + $0x138] sm:$0xff] %v1394_v11  ;;  %1421 = vtanh.f32 %v777_v10  ;;  %v1240_v13 = vpop.f32.mrf.mxu0 }
  0xf7   : > { %v1272_v14 = vpop.f32.mrf.mxu1  ;;  %v1398_v15 = vpop.eup %1397  ;;  %925 = vst [vmem:[%s1659_s30 + $0x28] sm:$0xff] %v1396_v12  ;;  %1423 = vtanh.f32 %v1240_v13 }
  0xf8   : > { %v1400_v16 = vpop.eup %1399  ;;  %957 = vst [vmem:[%s1659_s30 + $0x128] sm:$0xff] %v1398_v15  ;;  %1425 = vtanh.f32 %v1272_v14  ;;  %v652_v17 = vpop.f32.mrf.mxu0 }
  0xf9   : > { %v780_v18 = vpop.f32.mrf.mxu1  ;;  %v1402_v19 = vpop.eup %1401  ;;  %930 = vst [vmem:[%s1659_s30 + $0x50] sm:$0xff] %v1400_v16  ;;  %1427 = vtanh.f32 %v652_v17 }
  0xfa   : > { %v1404_v20 = vpop.eup %1403  ;;  %962 = vst [vmem:[%s1659_s30 + $0x150] sm:$0xff] %v1402_v19  ;;  %1429 = vtanh.f32 %v780_v18  ;;  %v1243_v21 = vpop.f32.mrf.mxu0 }
  0xfb   : > { %v1275_v22 = vpop.f32.mrf.mxu1  ;;  %v1406_v23 = vpop.eup %1405  ;;  %928 = vst [vmem:[%s1659_s30 + $0x40] sm:$0xff] %v1404_v20  ;;  %1431 = vtanh.f32 %v1243_v21 }
  0xfc   : > { %v1408_v24 = vpop.eup %1407  ;;  %960 = vst [vmem:[%s1659_s30 + $0x140] sm:$0xff] %v1406_v23  ;;  %1433 = vtanh.f32 %v1275_v22  ;;  %v665_v25 = vpop.f32.mrf.mxu0 }
  0xfd   : > { %v793_v26 = vpop.f32.mrf.mxu1  ;;  %v1410_v27 = vpop.eup %1409  ;;  %931 = vst [vmem:[%s1659_s30 + $0x58] sm:$0xff] %v1408_v24  ;;  %1435 = vtanh.f32 %v665_v25 }
  0xfe   : > { %v1412_v28 = vpop.eup %1411  ;;  %963 = vst [vmem:[%s1659_s30 + $0x158] sm:$0xff] %v1410_v27  ;;  %1437 = vtanh.f32 %v793_v26  ;;  %v1244_v29 = vpop.f32.mrf.mxu0 }
  0xff   : > { %v1276_v30 = vpop.f32.mrf.mxu1  ;;  %v1414_v31 = vpop.eup %1413  ;;  %929 = vst [vmem:[%s1659_s30 + $0x48] sm:$0xff] %v1412_v28  ;;  %1439 = vtanh.f32 %v1244_v29 }
 0x100   : > { %v1416_v32 = vpop.eup %1415  ;;  %961 = vst [vmem:[%s1659_s30 + $0x148] sm:$0xff] %v1414_v31  ;;  %1441 = vtanh.f32 %v1276_v30  ;;  %v668_v33 = vpop.f32.mrf.mxu0 }
 0x101   : > { %v796_v34 = vpop.f32.mrf.mxu1  ;;  %v1418_v35 = vpop.eup %1417  ;;  %934 = vst [vmem:[%s1659_s30 + $0x70] sm:$0xff] %v1416_v32  ;;  %1443 = vtanh.f32 %v668_v33 }
 0x102   : > { %v1420_v36 = vpop.eup %1419  ;;  %966 = vst [vmem:[%s1659_s30 + $0x170] sm:$0xff] %v1418_v35  ;;  %1445 = vtanh.f32 %v796_v34  ;;  %v1247_v37 = vpop.f32.mrf.mxu0 }
 0x103   : > { %v1279_v38 = vpop.f32.mrf.mxu1  ;;  %v1422_v39 = vpop.eup %1421  ;;  %932 = vst [vmem:[%s1659_s30 + $0x60] sm:$0xff] %v1420_v36  ;;  %1447 = vtanh.f32 %v1247_v37 }
 0x104   : > { %v1424_v40 = vpop.eup %1423  ;;  %964 = vst [vmem:[%s1659_s30 + $0x160] sm:$0xff] %v1422_v39  ;;  %1449 = vtanh.f32 %v1279_v38  ;;  %v681_v41 = vpop.f32.mrf.mxu0 }
 0x105   : > { %v809_v42 = vpop.f32.mrf.mxu1  ;;  %v1426_v43 = vpop.eup %1425  ;;  %935 = vst [vmem:[%s1659_s30 + $0x78] sm:$0xff] %v1424_v40  ;;  %1451 = vtanh.f32 %v681_v41 }
 0x106   : > { %v1428_v44 = vpop.eup %1427  ;;  %967 = vst [vmem:[%s1659_s30 + $0x178] sm:$0xff] %v1426_v43  ;;  %1453 = vtanh.f32 %v809_v42  ;;  %v1248_v45 = vpop.f32.mrf.mxu0 }
 0x107   : > { %v1280_v46 = vpop.f32.mrf.mxu1  ;;  %v1430_v47 = vpop.eup %1429  ;;  %933 = vst [vmem:[%s1659_s30 + $0x68] sm:$0xff] %v1428_v44  ;;  %1455 = vtanh.f32 %v1248_v45 }
 0x108   : > { %v1432_v48 = vpop.eup %1431  ;;  %965 = vst [vmem:[%s1659_s30 + $0x168] sm:$0xff] %v1430_v47  ;;  %1457 = vtanh.f32 %v1280_v46  ;;  %v684_v49 = vpop.f32.mrf.mxu0 }
 0x109   : > { %v812_v50 = vpop.f32.mrf.mxu1  ;;  %v1434_v51 = vpop.eup %1433  ;;  %938 = vst [vmem:[%s1659_s30 + $0x90] sm:$0xff] %v1432_v48  ;;  %1459 = vtanh.f32 %v684_v49 }
 0x10a   : > { %v1436_v52 = vpop.eup %1435  ;;  %970 = vst [vmem:[%s1659_s30 + $0x190] sm:$0xff] %v1434_v51  ;;  %1461 = vtanh.f32 %v812_v50  ;;  %v1251_v53 = vpop.f32.mrf.mxu0 }
 0x10b   : > { %v1283_v54 = vpop.f32.mrf.mxu1  ;;  %v1438_v55 = vpop.eup %1437  ;;  %936 = vst [vmem:[%s1659_s30 + $0x80] sm:$0xff] %v1436_v52  ;;  %1463 = vtanh.f32 %v1251_v53 }
 0x10c   : > { %v1440_v56 = vpop.eup %1439  ;;  %968 = vst [vmem:[%s1659_s30 + $0x180] sm:$0xff] %v1438_v55  ;;  %1465 = vtanh.f32 %v1283_v54  ;;  %v697_v57 = vpop.f32.mrf.mxu0 }
 0x10d   : > { %v825_v58 = vpop.f32.mrf.mxu1  ;;  %v1442_v59 = vpop.eup %1441  ;;  %939 = vst [vmem:[%s1659_s30 + $0x98] sm:$0xff] %v1440_v56  ;;  %1467 = vtanh.f32 %v697_v57 }
 0x10e   : > { %v1444_v60 = vpop.eup %1443  ;;  %971 = vst [vmem:[%s1659_s30 + $0x198] sm:$0xff] %v1442_v59  ;;  %1469 = vtanh.f32 %v825_v58  ;;  %v1252_v61 = vpop.f32.mrf.mxu0 }
 0x10f   : > { %v1284_v62 = vpop.f32.mrf.mxu1  ;;  %v1446_v63 = vpop.eup %1445  ;;  %937 = vst [vmem:[%s1659_s30 + $0x88] sm:$0xff] %v1444_v60  ;;  %1471 = vtanh.f32 %v1252_v61 }
 0x110   : > { %v1448_v0 = vpop.eup %1447  ;;  %969 = vst [vmem:[%s1659_s30 + $0x188] sm:$0xff] %v1446_v63  ;;  %1473 = vtanh.f32 %v1284_v62  ;;  %v700_v1 = vpop.f32.mrf.mxu0 }
 0x111   : > { %v828_v2 = vpop.f32.mrf.mxu1  ;;  %v1450_v3 = vpop.eup %1449  ;;  %942 = vst [vmem:[%s1659_s30 + $0xb0] sm:$0xff] %v1448_v0  ;;  %1475 = vtanh.f32 %v700_v1 }
 0x112   : > { %v1452_v4 = vpop.eup %1451  ;;  %974 = vst [vmem:[%s1659_s30 + $0x1b0] sm:$0xff] %v1450_v3  ;;  %1477 = vtanh.f32 %v828_v2  ;;  %v1255_v5 = vpop.f32.mrf.mxu0 }
 0x113   : > { %v1287_v6 = vpop.f32.mrf.mxu1  ;;  %v1454_v7 = vpop.eup %1453  ;;  %940 = vst [vmem:[%s1659_s30 + $0xa0] sm:$0xff] %v1452_v4  ;;  %1479 = vtanh.f32 %v1255_v5 }
 0x114   : > { %v1456_v8 = vpop.eup %1455  ;;  %972 = vst [vmem:[%s1659_s30 + $0x1a0] sm:$0xff] %v1454_v7  ;;  %1481 = vtanh.f32 %v1287_v6  ;;  %v713_v9 = vpop.f32.mrf.mxu0 }
 0x115   : > { %v841_v10 = vpop.f32.mrf.mxu1  ;;  %v1458_v11 = vpop.eup %1457  ;;  %943 = vst [vmem:[%s1659_s30 + $0xb8] sm:$0xff] %v1456_v8  ;;  %1483 = vtanh.f32 %v713_v9 }
 0x116   : > { %v1460_v12 = vpop.eup %1459  ;;  %975 = vst [vmem:[%s1659_s30 + $0x1b8] sm:$0xff] %v1458_v11  ;;  %1485 = vtanh.f32 %v841_v10  ;;  %v1256_v13 = vpop.f32.mrf.mxu0 }
 0x117   : > { %v1288_v14 = vpop.f32.mrf.mxu1  ;;  %v1462_v15 = vpop.eup %1461  ;;  %941 = vst [vmem:[%s1659_s30 + $0xa8] sm:$0xff] %v1460_v12  ;;  %1487 = vtanh.f32 %v1256_v13 }
 0x118   : > { %v1464_v16 = vpop.eup %1463  ;;  %973 = vst [vmem:[%s1659_s30 + $0x1a8] sm:$0xff] %v1462_v15  ;;  %1489 = vtanh.f32 %v1288_v14  ;;  %v716_v17 = vpop.f32.mrf.mxu0 }
 0x119   : > { %v844_v18 = vpop.f32.mrf.mxu1  ;;  %v1466_v19 = vpop.eup %1465  ;;  %946 = vst [vmem:[%s1659_s30 + $0xd0] sm:$0xff] %v1464_v16  ;;  %1491 = vtanh.f32 %v716_v17 }
 0x11a   : > { %v1468_v20 = vpop.eup %1467  ;;  %978 = vst [vmem:[%s1659_s30 + $0x1d0] sm:$0xff] %v1466_v19  ;;  %1493 = vtanh.f32 %v844_v18 }
 0x11b   : > { %v1470_v21 = vpop.eup %1469  ;;  %944 = vst [vmem:[%s1659_s30 + $0xc0] sm:$0xff] %v1468_v20 }
 0x11c   : > { %v1472_v22 = vpop.eup %1471  ;;  %976 = vst [vmem:[%s1659_s30 + $0x1c0] sm:$0xff] %v1470_v21 }
 0x11d   : > { %v1474_v23 = vpop.eup %1473  ;;  %947 = vst [vmem:[%s1659_s30 + $0xd8] sm:$0xff] %v1472_v22 }
 0x11e   : > { %v1476_v24 = vpop.eup %1475  ;;  %979 = vst [vmem:[%s1659_s30 + $0x1d8] sm:$0xff] %v1474_v23 }
 0x11f   : > { %v1478_v25 = vpop.eup %1477  ;;  %945 = vst [vmem:[%s1659_s30 + $0xc8] sm:$0xff] %v1476_v24 }
 0x120   : > { %v1480_v26 = vpop.eup %1479  ;;  %977 = vst [vmem:[%s1659_s30 + $0x1c8] sm:$0xff] %v1478_v25 }
 0x121   : > { %v1482_v27 = vpop.eup %1481  ;;  %950 = vst [vmem:[%s1659_s30 + $0xf0] sm:$0xff] %v1480_v26 }
 0x122   : > { %v1484_v28 = vpop.eup %1483  ;;  %982 = vst [vmem:[%s1659_s30 + $0x1f0] sm:$0xff] %v1482_v27 }
 0x123   : > { %v1486_v29 = vpop.eup %1485  ;;  %948 = vst [vmem:[%s1659_s30 + $0xe0] sm:$0xff] %v1484_v28 }
 0x124   : > { %v1488_v30 = vpop.eup %1487  ;;  %980 = vst [vmem:[%s1659_s30 + $0x1e0] sm:$0xff] %v1486_v29 }
 0x125   : > { %v1490_v31 = vpop.eup %1489  ;;  %951 = vst [vmem:[%s1659_s30 + $0xf8] sm:$0xff] %v1488_v30 }
 0x126   : > { %v1492_v32 = vpop.eup %1491  ;;  %983 = vst [vmem:[%s1659_s30 + $0x1f8] sm:$0xff] %v1490_v31 }
 0x127   : > { %v1494_v33 = vpop.eup %1493  ;;  %949 = vst [vmem:[%s1659_s30 + $0xe8] sm:$0xff] %v1492_v32 }
 0x128   : > { %981 = vst [vmem:[%s1659_s30 + $0x1e8] sm:$0xff] %v1494_v33 }
 0x129 PF: > { %s12_s13 = sadd.s32 1, %s1533_s13   ;;  %s1743_s9 = smov %s1525_s11 }
 0x12a   : > { %p9_p7 = scmp.ge.s32.totalorder %s12_s13, 18   ;;  %s1744_s10 = smov %s1529_s12 }
 0x12b   : > { %s1745_s11 = smov %s1748_s14  ;;  %s1746_s12 = smov %s1752_s15 }
 0x12c   :  { %11 = sbr.rel (!%p9_p7) target bundleno = 3 (0x3), region = 61 }

</bundles_post_ra>
